<compile_context>
chip_gen: v7x
topology: tpu7x:2x2x1
jax: 0.10.0
libtpu: 0.0.40
codegen_flags: <defaults>
</compile_context>

<pallas_src>
import math
import functools

import jax
import jax.numpy as jnp
from jax.experimental import pallas as pl
from jax.experimental.pallas import tpu as pltpu


def encoder_block_kernel(x_ref, m_ref,
                         wqkv_ref, bqkv_ref, wo_ref, bo_ref,
                         g1_ref, be1_ref,
                         w1_ref, bf1_ref, w2_ref, bf2_ref,
                         g2_ref, be2_ref,
                         o_ref, *, eps):
    h = pl.program_id(1)
    last_h = pl.num_programs(1) - 1

    x = x_ref[0]                                   # (S, D) f32
    S, D = x.shape
    depth = wo_ref.shape[0]                        # per-head width
    inv_scale = jnp.float32(1.0 / math.sqrt(depth))
    eps = jnp.float32(eps)
    cdt = wqkv_ref.dtype                           # matmul operand dtype

    def linear(inp, w_ref, b_ref):
        # MXU matmul in the weight dtype, f32 accumulation, f32 bias add.
        return (jnp.dot(inp.astype(w_ref.dtype), w_ref[...],
                        preferred_element_type=jnp.float32) + b_ref[0])

    # --- this head's attention contribution ------------------------------
    # Fused per-head Q|K|V projection: one (S, D) @ (D, 3*depth) matmul.
    qkv = (jnp.dot(x.astype(cdt), wqkv_ref[0],
                   preferred_element_type=jnp.float32)
           + bqkv_ref[0])                          # (S, 3*depth) f32
    q = qkv[:, 0:depth] * inv_scale                # scale folded into Q once
    k = qkv[:, depth:2 * depth]
    v = qkv[:, 2 * depth:3 * depth]

    # q @ k^T without materializing the transpose: contract the last dims.
    sc = jax.lax.dot_general(q.astype(cdt), k.astype(cdt),
                             (((1,), (1,)), ((), ())),
                             preferred_element_type=jnp.float32)   # (S, S)
    # Mask stays in its own (compute) dtype; promotion happens in the subtract
    # (no extra resident f32 S^2 buffer).  Exact for binary 0/1 masks.
    sc = sc - m_ref[0] * jnp.asarray(1e6, dtype=m_ref.dtype)
    sc = sc - jnp.max(sc, axis=-1, keepdims=True)                  # stable
    p = jnp.exp(sc)
    row_sum = jnp.sum(p, axis=-1, keepdims=True)                   # (S, 1)
    oh = jnp.dot(p.astype(cdt), v.astype(cdt),
                 preferred_element_type=jnp.float32)               # (S, depth)
    # Deferred normalization on (S, depth) instead of (S, S); exact reciprocal
    # keeps the f32 path inside the 1e-4 reference tolerance.
    oh = oh * pl.reciprocal(row_sum, approx=False)

    # Merge-by-accumulation: contract with this head's (depth, D) rows of W_o
    # and accumulate into the resident full-lane-width output block.
    contrib = jnp.dot(oh.astype(cdt), wo_ref[...],
                      preferred_element_type=jnp.float32)          # (S, D)

    @pl.when(h == 0)
    def _():
        o_ref[0] = contrib.astype(o_ref.dtype)

    @pl.when(h > 0)
    def _():
        o_ref[0] = o_ref[0] + contrib.astype(o_ref.dtype)

    # --- epilogue: residual + LN + FFN + residual + LN (last head only) ---
    @pl.when(h == last_h)
    def _():
        def layernorm(inp, g_ref, b_ref):
            mu = jnp.mean(inp, axis=-1, keepdims=True)
            c = inp - mu                           # centered once, reused
            var = jnp.mean(c * c, axis=-1, keepdims=True)
            return c * jax.lax.rsqrt(var + eps) * g_ref[0] + b_ref[0]

        mha = o_ref[0] + bo_ref[0]                 # add W_o bias once
        h1 = layernorm(x + mha, g1_ref, be1_ref)
        ff = jnp.maximum(linear(h1, w1_ref, bf1_ref), 0.0)
        ff = linear(ff, w2_ref, bf2_ref)
        o_ref[0] = layernorm(h1 + ff, g2_ref, be2_ref).astype(o_ref.dtype)


def _vmem_limit_bytes():
    # Generation-aware VMEM limit: ~75% of physical, capped at 96 MiB.
    # v5e/v6e (128 MiB) -> 96 MiB; v7x (64 MiB) -> 48 MiB.
    try:
        cap = int(pltpu.get_tpu_info().vmem_capacity_bytes)
    except Exception:
        cap = 128 * 1024 * 1024
    return min((cap * 3) // 4, 96 * 1024 * 1024)


def encoder_block(x, mask, params, *, num_heads, eps,
                  compute_dtype=jnp.float32):
    """x: (B, S, D) f32, mask: (B, S, S) f32 (1 = masked-out position).

    compute_dtype controls the matmul-operand dtype (f32 or bf16); accumulation
    and all elementwise/softmax/LayerNorm math stay f32.
    """
    B, S, D = x.shape
    HID = params["w1"].shape[1]
    depth = D // num_heads
    cdt = compute_dtype

    # --- wrapper-side weight prep (one-time, plain XLA) -------------------
    def heads_last(w):           # (D, D) -> (H, D, depth); head-major columns
        return w.reshape(D, num_heads, depth).transpose(1, 0, 2)

    wqkv = jnp.concatenate(
        [heads_last(params["wq"]), heads_last(params["wk"]),
         heads_last(params["wv"])], axis=-1).astype(cdt)        # (H, D, 3*depth)
    bqkv = jnp.concatenate(
        [params["bq"].reshape(num_heads, 1, depth),
         params["bk"].reshape(num_heads, 1, depth),
         params["bv"].reshape(num_heads, 1, depth)], axis=-1)   # (H, 1, 3*depth) f32
    wo = params["wo"].astype(cdt)
    w1 = params["w1"].astype(cdt)
    w2 = params["w2"].astype(cdt)
    mask_c = mask.astype(cdt)

    kernel = functools.partial(encoder_block_kernel, eps=eps)

    def build(single_buffer_consts):
        def const_spec(shape):
            # Constant over the whole grid -> single-buffer (no overlap value).
            imap = lambda b, h: (0, 0)
            if single_buffer_consts:
                return pl.BlockSpec(shape, imap, pipeline_mode=pl.Buffered(1))
            return pl.BlockSpec(shape, imap)

        in_specs = [
            pl.BlockSpec((1, S, D), lambda b, h: (b, 0, 0)),          # x
            pl.BlockSpec((1, S, S), lambda b, h: (b, 0, 0)),          # mask
            pl.BlockSpec((1, D, 3 * depth), lambda b, h: (h, 0, 0)),  # wqkv (per head)
            pl.BlockSpec((1, 1, 3 * depth), lambda b, h: (h, 0, 0)),  # bqkv (per head)
            pl.BlockSpec((depth, D), lambda b, h: (h, 0)),            # wo rows (per head)
            const_spec((1, D)),                                       # bo
            const_spec((1, D)), const_spec((1, D)),                   # ln1 gamma, beta
            const_spec((D, HID)), const_spec((1, HID)),               # ff w1, b1
            const_spec((HID, D)), const_spec((1, D)),                 # ff w2, b2
            const_spec((1, D)), const_spec((1, D)),                   # ln2 gamma, beta
        ]
        return pl.pallas_call(
            kernel,
            out_shape=jax.ShapeDtypeStruct((B, S, D), jnp.float32),
            grid_spec=pltpu.PrefetchScalarGridSpec(
                num_scalar_prefetch=0,
                grid=(B, num_heads),
                in_specs=in_specs,
                out_specs=pl.BlockSpec((1, S, D), lambda b, h: (b, 0, 0)),
            ),
            compiler_params=pltpu.CompilerParams(
                dimension_semantics=("parallel", "arbitrary"),
                vmem_limit_bytes=_vmem_limit_bytes()),
        )

    args = (x, mask_c, wqkv, bqkv, wo, params["bo"],
            params["g1"], params["be1"],
            w1, params["b1"], w2, params["b2"],
            params["g2"], params["be2"])

    try:
        return jax.block_until_ready(build(True)(*args))
    except Exception:
        # Fallback if this jax version's Mosaic lowering rejects
        # pipeline_mode=pl.Buffered(1) on constant-index BlockSpecs.
        return jax.block_until_ready(build(False)(*args))


def encoder_block_ref(x, mask, params, *, num_heads, eps):
    """Pure-JAX reference mirroring the PyTorch forward (f32)."""
    B, S, D = x.shape
    depth = D // num_heads
    scale = math.sqrt(depth)

    def lin(t, w, b):
        return t @ w + b[0]

    q = lin(x, params["wq"], params["bq"])
    k = lin(x, params["wk"], params["bk"])
    v = lin(x, params["wv"], params["bv"])

    def split(t):
        return t.reshape(B, S, num_heads, depth).transpose(0, 2, 1, 3)

    qh, kh, vh = split(q), split(k), split(v)
    sc = jnp.einsum("bhqd,bhkd->bhqk", qh, kh) / scale
    sc = sc - mask[:, None, :, :] * 1e6
    p = jax.nn.softmax(sc, axis=-1)
    att = jnp.einsum("bhqk,bhkd->bhqd", p, vh)
    att = att.transpose(0, 2, 1, 3).reshape(B, S, D)
    mha = lin(att, params["wo"], params["bo"])

    def ln(t, g, b):
        mu = t.mean(-1, keepdims=True)
        var = ((t - mu) ** 2).mean(-1, keepdims=True)
        return (t - mu) / jnp.sqrt(var + eps) * g[0] + b[0]

    h1 = ln(x + mha, params["g1"], params["be1"])
    ff = jax.nn.relu(lin(h1, params["w1"], params["b1"]))
    ff = lin(ff, params["w2"], params["b2"])
    return ln(h1 + ff, params["g2"], params["be2"])


if __name__ == "__main__":
    # Small shapes: batch=2, seq=8, d_model=32, num_heads=4, hidden=64
    B, S, D, NH, HID = 2, 8, 32, 4, 64
    EPS = 1e-6

    key = jax.random.PRNGKey(0)
    keys = jax.random.split(key, 16)

    def w(k, shape, scale=0.05):
        return jax.random.normal(k, shape, jnp.float32) * scale

    params = {
        "wq": w(keys[0], (D, D)), "bq": w(keys[1], (1, D)),
        "wk": w(keys[2], (D, D)), "bk": w(keys[3], (1, D)),
        "wv": w(keys[4], (D, D)), "bv": w(keys[5], (1, D)),
        "wo": w(keys[6], (D, D)), "bo": w(keys[7], (1, D)),
        "g1": jnp.ones((1, D), jnp.float32),
        "be1": jnp.zeros((1, D), jnp.float32),
        "w1": w(keys[8], (D, HID)), "b1": w(keys[9], (1, HID)),
        "w2": w(keys[10], (HID, D)), "b2": w(keys[11], (1, D)),
        "g2": jnp.ones((1, D), jnp.float32),
        "be2": jnp.zeros((1, D), jnp.float32),
    }

    x = jax.random.normal(keys[12], (B, S, D), jnp.float32)
    # binary mask (1 = masked-out position), broadcast over heads
    mask = (jax.random.uniform(keys[13], (B, S, S)) > 0.8).astype(jnp.float32)

    ref = encoder_block_ref(x, mask, params, num_heads=NH, eps=EPS)

    # f32 path: must match the f32 reference tightly.
    out = encoder_block(x, mask, params, num_heads=NH, eps=EPS)
    out = jax.block_until_ready(out)
    assert out.shape == (B, S, D)
    assert jnp.allclose(out, ref, atol=1e-4, rtol=1e-4), \
        f"f32 max err {jnp.max(jnp.abs(out - ref))}"

    # bf16 matmul-operand path (2x MXU rate, half weight/mask DMA);
    # f32 accumulation kept, so only a loose tolerance vs. the f32 reference.
    out_bf16 = jax.block_until_ready(
        encoder_block(x, mask, params, num_heads=NH, eps=EPS,
                      compute_dtype=jnp.bfloat16))
    assert jnp.allclose(out_bf16, ref, atol=5e-2, rtol=5e-2), \
        f"bf16 max err {jnp.max(jnp.abs(out_bf16 - ref))}"

    print("KERNEL_OK")
</pallas_src>

<mosaic_0001>
module attributes {stable_mosaic.version = 11 : i64} {
  func.func @encoder_block_kernel(%arg0: i32, %arg1: i32, %arg2: memref<1x8x32xf32, #tpu.memory_space<vmem>>, %arg3: memref<1x8x8xf32, #tpu.memory_space<vmem>>, %arg4: memref<1x32x24xf32, #tpu.memory_space<vmem>>, %arg5: memref<1x1x24xf32, #tpu.memory_space<vmem>>, %arg6: memref<8x32xf32, #tpu.memory_space<vmem>>, %arg7: memref<1x32xf32, #tpu.memory_space<vmem>>, %arg8: memref<1x32xf32, #tpu.memory_space<vmem>>, %arg9: memref<1x32xf32, #tpu.memory_space<vmem>>, %arg10: memref<32x64xf32, #tpu.memory_space<vmem>>, %arg11: memref<1x64xf32, #tpu.memory_space<vmem>>, %arg12: memref<64x32xf32, #tpu.memory_space<vmem>>, %arg13: memref<1x32xf32, #tpu.memory_space<vmem>>, %arg14: memref<1x32xf32, #tpu.memory_space<vmem>>, %arg15: memref<1x32xf32, #tpu.memory_space<vmem>>, %arg16: memref<1x8x32xf32, #tpu.memory_space<vmem>>) attributes {dimension_semantics = [#tpu.dimension_semantics<parallel>, #tpu.dimension_semantics<arbitrary>], iteration_bounds = array<i64: 2, 4>, scalar_prefetch = 0 : i64, scratch_operands = 0 : i64, tpu.core_type = #tpu.core_type<tc>, window_params = [{transform_indices = @transform_0, window_bounds = array<i64: 1, 8, 32>}, {transform_indices = @transform_1, window_bounds = array<i64: 1, 8, 8>}, {transform_indices = @transform_2, window_bounds = array<i64: 1, 32, 24>}, {transform_indices = @transform_3, window_bounds = array<i64: 1, 1, 24>}, {transform_indices = @transform_4, window_bounds = array<i64: 8, 32>}, {pipeline_mode = #tpu.pipeline_mode<synchronous>, transform_indices = @transform_5, window_bounds = array<i64: 1, 32>}, {pipeline_mode = #tpu.pipeline_mode<synchronous>, transform_indices = @transform_6, window_bounds = array<i64: 1, 32>}, {pipeline_mode = #tpu.pipeline_mode<synchronous>, transform_indices = @transform_7, window_bounds = array<i64: 1, 32>}, {pipeline_mode = #tpu.pipeline_mode<synchronous>, transform_indices = @transform_8, window_bounds = array<i64: 32, 64>}, {pipeline_mode = #tpu.pipeline_mode<synchronous>, transform_indices = @transform_9, window_bounds = array<i64: 1, 64>}, {pipeline_mode = #tpu.pipeline_mode<synchronous>, transform_indices = @transform_10, window_bounds = array<i64: 64, 32>}, {pipeline_mode = #tpu.pipeline_mode<synchronous>, transform_indices = @transform_11, window_bounds = array<i64: 1, 32>}, {pipeline_mode = #tpu.pipeline_mode<synchronous>, transform_indices = @transform_12, window_bounds = array<i64: 1, 32>}, {pipeline_mode = #tpu.pipeline_mode<synchronous>, transform_indices = @transform_13, window_bounds = array<i64: 1, 32>}, {transform_indices = @transform_14, window_bounds = array<i64: 1, 8, 32>}]} {
    %c0 = arith.constant 0 : index
    %c0_0 = arith.constant 0 : index
    %c0_1 = arith.constant 0 : index
    %0 = vector.load %arg2[%c0, %c0_0, %c0_1] : memref<1x8x32xf32, #tpu.memory_space<vmem>>, vector<1x8x32xf32>
    %1 = vector.shape_cast %0 : vector<1x8x32xf32> to vector<8x32xf32>
    %c0_2 = arith.constant 0 : index
    %c0_3 = arith.constant 0 : index
    %c0_4 = arith.constant 0 : index
    %2 = vector.load %arg4[%c0_2, %c0_3, %c0_4] : memref<1x32x24xf32, #tpu.memory_space<vmem>>, vector<1x32x24xf32>
    %3 = vector.shape_cast %2 : vector<1x32x24xf32> to vector<32x24xf32>
    %cst = arith.constant dense<0.000000e+00> : vector<8x24xf32>
    %4 = tpu.matmul %1, %3, %cst {dimension_numbers = #tpu.dot_dimension_numbers<[1], [0], [0], [1], [0, 0, 1, 1], [], []>} : vector<8x32xf32>, vector<32x24xf32>, vector<8x24xf32> -> vector<8x24xf32>
    %c0_5 = arith.constant 0 : index
    %c0_6 = arith.constant 0 : index
    %c0_7 = arith.constant 0 : index
    %5 = vector.load %arg5[%c0_5, %c0_6, %c0_7] : memref<1x1x24xf32, #tpu.memory_space<vmem>>, vector<1x1x24xf32>
    %6 = vector.shape_cast %5 : vector<1x1x24xf32> to vector<1x24xf32>
    %7 = vector.broadcast %6 : vector<1x24xf32> to vector<8x24xf32>
    %8 = arith.addf %4, %7 : vector<8x24xf32>
    %9 = vector.extract_strided_slice %8 {offsets = [0, 0], sizes = [8, 8], strides = [1, 1]} : vector<8x24xf32> to vector<8x8xf32>
    %cst_8 = arith.constant 0.353553385 : f32
    %10 = vector.broadcast %cst_8 : f32 to vector<8x8xf32>
    %11 = arith.mulf %9, %10 : vector<8x8xf32>
    %12 = vector.extract_strided_slice %8 {offsets = [0, 8], sizes = [8, 8], strides = [1, 1]} : vector<8x24xf32> to vector<8x8xf32>
    %13 = vector.extract_strided_slice %8 {offsets = [0, 16], sizes = [8, 8], strides = [1, 1]} : vector<8x24xf32> to vector<8x8xf32>
    %cst_9 = arith.constant dense<0.000000e+00> : vector<8x8xf32>
    %14 = tpu.matmul %11, %12, %cst_9 {dimension_numbers = #tpu.dot_dimension_numbers<[1], [1], [0], [0], [0, 0, 1, 0], [], []>} : vector<8x8xf32>, vector<8x8xf32>, vector<8x8xf32> -> vector<8x8xf32>
    %c0_10 = arith.constant 0 : index
    %c0_11 = arith.constant 0 : index
    %c0_12 = arith.constant 0 : index
    %15 = vector.load %arg3[%c0_10, %c0_11, %c0_12] : memref<1x8x8xf32, #tpu.memory_space<vmem>>, vector<1x8x8xf32>
    %16 = vector.shape_cast %15 : vector<1x8x8xf32> to vector<8x8xf32>
    %cst_13 = arith.constant 1.000000e+06 : f32
    %17 = vector.broadcast %cst_13 : f32 to vector<8x8xf32>
    %18 = arith.mulf %16, %17 : vector<8x8xf32>
    %19 = arith.subf %14, %18 : vector<8x8xf32>
    %cst_14 = arith.constant dense<0xFF800000> : vector<8xf32>
    %20 = vector.multi_reduction <maximumf>, %19, %cst_14 [1] : vector<8x8xf32> to vector<8xf32>
    %21 = vector.shape_cast %20 : vector<8xf32> to vector<8x1xf32>
    %22 = vector.broadcast %21 : vector<8x1xf32> to vector<8x8xf32>
    %23 = arith.subf %19, %22 : vector<8x8xf32>
    %24 = math.exp %23 : vector<8x8xf32>
    %cst_15 = arith.constant dense<0.000000e+00> : vector<8xf32>
    %25 = vector.multi_reduction <add>, %24, %cst_15 [1] : vector<8x8xf32> to vector<8xf32>
    %26 = vector.shape_cast %25 : vector<8xf32> to vector<8x1xf32>
    %cst_16 = arith.constant dense<0.000000e+00> : vector<8x8xf32>
    %27 = tpu.matmul %24, %13, %cst_16 {dimension_numbers = #tpu.dot_dimension_numbers<[1], [0], [0], [1], [0, 0, 1, 1], [], []>} : vector<8x8xf32>, vector<8x8xf32>, vector<8x8xf32> -> vector<8x8xf32>
    %28 = tpu.reciprocal %26 : vector<8x1xf32> -> vector<8x1xf32>
    %29 = vector.broadcast %28 : vector<8x1xf32> to vector<8x8xf32>
    %30 = arith.mulf %27, %29 : vector<8x8xf32>
    %c0_17 = arith.constant 0 : index
    %c0_18 = arith.constant 0 : index
    %31 = vector.load %arg6[%c0_17, %c0_18] : memref<8x32xf32, #tpu.memory_space<vmem>>, vector<8x32xf32>
    %cst_19 = arith.constant dense<0.000000e+00> : vector<8x32xf32>
    %32 = tpu.matmul %30, %31, %cst_19 {dimension_numbers = #tpu.dot_dimension_numbers<[1], [0], [0], [1], [0, 0, 1, 1], [], []>} : vector<8x8xf32>, vector<8x32xf32>, vector<8x32xf32> -> vector<8x32xf32>
    %c0_i32 = arith.constant 0 : i32
    %33 = arith.cmpi eq, %arg1, %c0_i32 : i32
    %34 = arith.extui %33 : i1 to i32
    %c0_i32_20 = arith.constant 0 : i32
    %35 = arith.cmpi ne, %34, %c0_i32_20 : i32
    scf.if %35 {
      %c0_25 = arith.constant 0 : index
      %c0_26 = arith.constant 0 : index
      %c0_27 = arith.constant 0 : index
      %42 = vector.load %arg16[%c0_25, %c0_26, %c0_27] : memref<1x8x32xf32, #tpu.memory_space<vmem>>, vector<1x8x32xf32>
      %43 = vector.shape_cast %42 : vector<1x8x32xf32> to vector<8x32xf32>
      %44 = vector.shape_cast %32 : vector<8x32xf32> to vector<1x8x32xf32>
      tpu.vector_store %arg16[%c0_25, %c0_26, %c0_27], %44 {strides = array<i32>} : memref<1x8x32xf32, #tpu.memory_space<vmem>>, vector<1x8x32xf32>,
    } else {
    }
    %c0_i32_21 = arith.constant 0 : i32
    %36 = arith.cmpi sgt, %arg1, %c0_i32_21 : i32
    %37 = arith.extui %36 : i1 to i32
    %c0_i32_22 = arith.constant 0 : i32
    %38 = arith.cmpi ne, %37, %c0_i32_22 : i32
    scf.if %38 {
      %c0_25 = arith.constant 0 : index
      %c0_26 = arith.constant 0 : index
      %c0_27 = arith.constant 0 : index
      %42 = vector.load %arg16[%c0_25, %c0_26, %c0_27] : memref<1x8x32xf32, #tpu.memory_space<vmem>>, vector<1x8x32xf32>
      %43 = vector.shape_cast %42 : vector<1x8x32xf32> to vector<8x32xf32>
      %44 = arith.addf %43, %32 : vector<8x32xf32>
      %c0_28 = arith.constant 0 : index
      %c0_29 = arith.constant 0 : index
      %c0_30 = arith.constant 0 : index
      %45 = vector.load %arg16[%c0_28, %c0_29, %c0_30] : memref<1x8x32xf32, #tpu.memory_space<vmem>>, vector<1x8x32xf32>
      %46 = vector.shape_cast %45 : vector<1x8x32xf32> to vector<8x32xf32>
      %47 = vector.shape_cast %44 : vector<8x32xf32> to vector<1x8x32xf32>
      tpu.vector_store %arg16[%c0_28, %c0_29, %c0_30], %47 {strides = array<i32>} : memref<1x8x32xf32, #tpu.memory_space<vmem>>, vector<1x8x32xf32>,
    } else {
    }
    %c3_i32 = arith.constant 3 : i32
    %39 = arith.cmpi eq, %arg1, %c3_i32 : i32
    %40 = arith.extui %39 : i1 to i32
    %cst_23 = arith.constant 9.99999997E-7 : f32
    %c0_i32_24 = arith.constant 0 : i32
    %41 = arith.cmpi ne, %40, %c0_i32_24 : i32
    scf.if %41 {
      %c0_25 = arith.constant 0 : index
      %c0_26 = arith.constant 0 : index
      %c0_27 = arith.constant 0 : index
      %42 = vector.load %arg16[%c0_25, %c0_26, %c0_27] : memref<1x8x32xf32, #tpu.memory_space<vmem>>, vector<1x8x32xf32>
      %43 = vector.shape_cast %42 : vector<1x8x32xf32> to vector<8x32xf32>
      %c0_28 = arith.constant 0 : index
      %c0_29 = arith.constant 0 : index
      %44 = vector.load %arg7[%c0_28, %c0_29] : memref<1x32xf32, #tpu.memory_space<vmem>>, vector<1x32xf32>
      %45 = vector.shape_cast %44 : vector<1x32xf32> to vector<32xf32>
      %46 = vector.shape_cast %45 : vector<32xf32> to vector<1x32xf32>
      %47 = vector.broadcast %46 : vector<1x32xf32> to vector<8x32xf32>
      %48 = arith.addf %43, %47 : vector<8x32xf32>
      %49 = arith.addf %1, %48 : vector<8x32xf32>
      %cst_30 = arith.constant dense<0.000000e+00> : vector<8xf32>
      %50 = vector.multi_reduction <add>, %49, %cst_30 [1] : vector<8x32xf32> to vector<8xf32>
      %51 = vector.shape_cast %50 : vector<8xf32> to vector<8x1xf32>
      %cst_31 = arith.constant 3.200000e+01 : f32
      %52 = vector.broadcast %cst_31 : f32 to vector<8x1xf32>
      %53 = arith.divf %51, %52 : vector<8x1xf32>
      %54 = vector.broadcast %53 : vector<8x1xf32> to vector<8x32xf32>
      %55 = arith.subf %49, %54 : vector<8x32xf32>
      %56 = arith.mulf %55, %55 : vector<8x32xf32>
      %cst_32 = arith.constant dense<0.000000e+00> : vector<8xf32>
      %57 = vector.multi_reduction <add>, %56, %cst_32 [1] : vector<8x32xf32> to vector<8xf32>
      %58 = vector.shape_cast %57 : vector<8xf32> to vector<8x1xf32>
      %cst_33 = arith.constant 3.200000e+01 : f32
      %59 = vector.broadcast %cst_33 : f32 to vector<8x1xf32>
      %60 = arith.divf %58, %59 : vector<8x1xf32>
      %61 = vector.broadcast %cst_23 : f32 to vector<8x1xf32>
      %62 = arith.addf %60, %61 : vector<8x1xf32>
      %63 = math.rsqrt %62 : vector<8x1xf32>
      %64 = vector.broadcast %63 : vector<8x1xf32> to vector<8x32xf32>
      %65 = arith.mulf %55, %64 : vector<8x32xf32>
      %c0_34 = arith.constant 0 : index
      %c0_35 = arith.constant 0 : index
      %66 = vector.load %arg8[%c0_34, %c0_35] : memref<1x32xf32, #tpu.memory_space<vmem>>, vector<1x32xf32>
      %67 = vector.shape_cast %66 : vector<1x32xf32> to vector<32xf32>
      %68 = vector.shape_cast %67 : vector<32xf32> to vector<1x32xf32>
      %69 = vector.broadcast %68 : vector<1x32xf32> to vector<8x32xf32>
      %70 = arith.mulf %65, %69 : vector<8x32xf32>
      %c0_36 = arith.constant 0 : index
      %c0_37 = arith.constant 0 : index
      %71 = vector.load %arg9[%c0_36, %c0_37] : memref<1x32xf32, #tpu.memory_space<vmem>>, vector<1x32xf32>
      %72 = vector.shape_cast %71 : vector<1x32xf32> to vector<32xf32>
      %73 = vector.shape_cast %72 : vector<32xf32> to vector<1x32xf32>
      %74 = vector.broadcast %73 : vector<1x32xf32> to vector<8x32xf32>
      %75 = arith.addf %70, %74 : vector<8x32xf32>
      %c0_38 = arith.constant 0 : index
      %c0_39 = arith.constant 0 : index
      %76 = vector.load %arg10[%c0_38, %c0_39] : memref<32x64xf32, #tpu.memory_space<vmem>>, vector<32x64xf32>
      %cst_40 = arith.constant dense<0.000000e+00> : vector<8x64xf32>
      %77 = tpu.matmul %75, %76, %cst_40 {dimension_numbers = #tpu.dot_dimension_numbers<[1], [0], [0], [1], [0, 0, 1, 1], [], []>} : vector<8x32xf32>, vector<32x64xf32>, vector<8x64xf32> -> vector<8x64xf32>
      %c0_41 = arith.constant 0 : index
      %c0_42 = arith.constant 0 : index
      %78 = vector.load %arg11[%c0_41, %c0_42] : memref<1x64xf32, #tpu.memory_space<vmem>>, vector<1x64xf32>
      %79 = vector.shape_cast %78 : vector<1x64xf32> to vector<64xf32>
      %80 = vector.shape_cast %79 : vector<64xf32> to vector<1x64xf32>
      %81 = vector.broadcast %80 : vector<1x64xf32> to vector<8x64xf32>
      %82 = arith.addf %77, %81 : vector<8x64xf32>
      %cst_43 = arith.constant 0.000000e+00 : f32
      %83 = vector.broadcast %cst_43 : f32 to vector<8x64xf32>
      %84 = arith.maximumf %82, %83 : vector<8x64xf32>
      %c0_44 = arith.constant 0 : index
      %c0_45 = arith.constant 0 : index
      %85 = vector.load %arg12[%c0_44, %c0_45] : memref<64x32xf32, #tpu.memory_space<vmem>>, vector<64x32xf32>
      %cst_46 = arith.constant dense<0.000000e+00> : vector<8x32xf32>
      %86 = tpu.matmul %84, %85, %cst_46 {dimension_numbers = #tpu.dot_dimension_numbers<[1], [0], [0], [1], [0, 0, 1, 1], [], []>} : vector<8x64xf32>, vector<64x32xf32>, vector<8x32xf32> -> vector<8x32xf32>
      %c0_47 = arith.constant 0 : index
      %c0_48 = arith.constant 0 : index
      %87 = vector.load %arg13[%c0_47, %c0_48] : memref<1x32xf32, #tpu.memory_space<vmem>>, vector<1x32xf32>
      %88 = vector.shape_cast %87 : vector<1x32xf32> to vector<32xf32>
      %89 = vector.shape_cast %88 : vector<32xf32> to vector<1x32xf32>
      %90 = vector.broadcast %89 : vector<1x32xf32> to vector<8x32xf32>
      %91 = arith.addf %86, %90 : vector<8x32xf32>
      %92 = arith.addf %75, %91 : vector<8x32xf32>
      %cst_49 = arith.constant dense<0.000000e+00> : vector<8xf32>
      %93 = vector.multi_reduction <add>, %92, %cst_49 [1] : vector<8x32xf32> to vector<8xf32>
      %94 = vector.shape_cast %93 : vector<8xf32> to vector<8x1xf32>
      %cst_50 = arith.constant 3.200000e+01 : f32
      %95 = vector.broadcast %cst_50 : f32 to vector<8x1xf32>
      %96 = arith.divf %94, %95 : vector<8x1xf32>
      %97 = vector.broadcast %96 : vector<8x1xf32> to vector<8x32xf32>
      %98 = arith.subf %92, %97 : vector<8x32xf32>
      %99 = arith.mulf %98, %98 : vector<8x32xf32>
      %cst_51 = arith.constant dense<0.000000e+00> : vector<8xf32>
      %100 = vector.multi_reduction <add>, %99, %cst_51 [1] : vector<8x32xf32> to vector<8xf32>
      %101 = vector.shape_cast %100 : vector<8xf32> to vector<8x1xf32>
      %cst_52 = arith.constant 3.200000e+01 : f32
      %102 = vector.broadcast %cst_52 : f32 to vector<8x1xf32>
      %103 = arith.divf %101, %102 : vector<8x1xf32>
      %104 = vector.broadcast %cst_23 : f32 to vector<8x1xf32>
      %105 = arith.addf %103, %104 : vector<8x1xf32>
      %106 = math.rsqrt %105 : vector<8x1xf32>
      %107 = vector.broadcast %106 : vector<8x1xf32> to vector<8x32xf32>
      %108 = arith.mulf %98, %107 : vector<8x32xf32>
      %c0_53 = arith.constant 0 : index
      %c0_54 = arith.constant 0 : index
      %109 = vector.load %arg14[%c0_53, %c0_54] : memref<1x32xf32, #tpu.memory_space<vmem>>, vector<1x32xf32>
      %110 = vector.shape_cast %109 : vector<1x32xf32> to vector<32xf32>
      %111 = vector.shape_cast %110 : vector<32xf32> to vector<1x32xf32>
      %112 = vector.broadcast %111 : vector<1x32xf32> to vector<8x32xf32>
      %113 = arith.mulf %108, %112 : vector<8x32xf32>
      %c0_55 = arith.constant 0 : index
      %c0_56 = arith.constant 0 : index
      %114 = vector.load %arg15[%c0_55, %c0_56] : memref<1x32xf32, #tpu.memory_space<vmem>>, vector<1x32xf32>
      %115 = vector.shape_cast %114 : vector<1x32xf32> to vector<32xf32>
      %116 = vector.shape_cast %115 : vector<32xf32> to vector<1x32xf32>
      %117 = vector.broadcast %116 : vector<1x32xf32> to vector<8x32xf32>
      %118 = arith.addf %113, %117 : vector<8x32xf32>
      %c0_57 = arith.constant 0 : index
      %c0_58 = arith.constant 0 : index
      %c0_59 = arith.constant 0 : index
      %119 = vector.load %arg16[%c0_57, %c0_58, %c0_59] : memref<1x8x32xf32, #tpu.memory_space<vmem>>, vector<1x8x32xf32>
      %120 = vector.shape_cast %119 : vector<1x8x32xf32> to vector<8x32xf32>
      %121 = vector.shape_cast %118 : vector<8x32xf32> to vector<1x8x32xf32>
      tpu.vector_store %arg16[%c0_57, %c0_58, %c0_59], %121 {strides = array<i32>} : memref<1x8x32xf32, #tpu.memory_space<vmem>>, vector<1x8x32xf32>,
    } else {
    }
    return
  }
  func.func @transform_0(%arg0: i32, %arg1: i32) -> (i32, i32, i32) {
    %c0_i32 = arith.constant 0 : i32
    %c0_i32_0 = arith.constant 0 : i32
    %c0_i32_1 = arith.constant 0 : i32
    return %arg0, %c0_i32, %c0_i32_0 : i32, i32, i32
  }
  func.func @transform_1(%arg0: i32, %arg1: i32) -> (i32, i32, i32) {
    %c0_i32 = arith.constant 0 : i32
    %c0_i32_0 = arith.constant 0 : i32
    %c0_i32_1 = arith.constant 0 : i32
    return %arg0, %c0_i32, %c0_i32_0 : i32, i32, i32
  }
  func.func @transform_2(%arg0: i32, %arg1: i32) -> (i32, i32, i32) {
    %c0_i32 = arith.constant 0 : i32
    %c0_i32_0 = arith.constant 0 : i32
    %c0_i32_1 = arith.constant 0 : i32
    return %arg1, %c0_i32, %c0_i32_0 : i32, i32, i32
  }
  func.func @transform_3(%arg0: i32, %arg1: i32) -> (i32, i32, i32) {
    %c0_i32 = arith.constant 0 : i32
    %c0_i32_0 = arith.constant 0 : i32
    %c0_i32_1 = arith.constant 0 : i32
    return %arg1, %c0_i32, %c0_i32_0 : i32, i32, i32
  }
  func.func @transform_4(%arg0: i32, %arg1: i32) -> (i32, i32) {
    %c0_i32 = arith.constant 0 : i32
    %c0_i32_0 = arith.constant 0 : i32
    return %arg1, %c0_i32 : i32, i32
  }
  func.func @transform_5(%arg0: i32, %arg1: i32) -> (i32, i32) {
    %c0_i32 = arith.constant 0 : i32
    %c0_i32_0 = arith.constant 0 : i32
    %c0_i32_1 = arith.constant 0 : i32
    return %c0_i32, %c0_i32_0 : i32, i32
  }
  func.func @transform_6(%arg0: i32, %arg1: i32) -> (i32, i32) {
    %c0_i32 = arith.constant 0 : i32
    %c0_i32_0 = arith.constant 0 : i32
    %c0_i32_1 = arith.constant 0 : i32
    return %c0_i32, %c0_i32_0 : i32, i32
  }
  func.func @transform_7(%arg0: i32, %arg1: i32) -> (i32, i32) {
    %c0_i32 = arith.constant 0 : i32
    %c0_i32_0 = arith.constant 0 : i32
    %c0_i32_1 = arith.constant 0 : i32
    return %c0_i32, %c0_i32_0 : i32, i32
  }
  func.func @transform_8(%arg0: i32, %arg1: i32) -> (i32, i32) {
    %c0_i32 = arith.constant 0 : i32
    %c0_i32_0 = arith.constant 0 : i32
    %c0_i32_1 = arith.constant 0 : i32
    return %c0_i32, %c0_i32_0 : i32, i32
  }
  func.func @transform_9(%arg0: i32, %arg1: i32) -> (i32, i32) {
    %c0_i32 = arith.constant 0 : i32
    %c0_i32_0 = arith.constant 0 : i32
    %c0_i32_1 = arith.constant 0 : i32
    return %c0_i32, %c0_i32_0 : i32, i32
  }
  func.func @transform_10(%arg0: i32, %arg1: i32) -> (i32, i32) {
    %c0_i32 = arith.constant 0 : i32
    %c0_i32_0 = arith.constant 0 : i32
    %c0_i32_1 = arith.constant 0 : i32
    return %c0_i32, %c0_i32_0 : i32, i32
  }
  func.func @transform_11(%arg0: i32, %arg1: i32) -> (i32, i32) {
    %c0_i32 = arith.constant 0 : i32
    %c0_i32_0 = arith.constant 0 : i32
    %c0_i32_1 = arith.constant 0 : i32
    return %c0_i32, %c0_i32_0 : i32, i32
  }
  func.func @transform_12(%arg0: i32, %arg1: i32) -> (i32, i32) {
    %c0_i32 = arith.constant 0 : i32
    %c0_i32_0 = arith.constant 0 : i32
    %c0_i32_1 = arith.constant 0 : i32
    return %c0_i32, %c0_i32_0 : i32, i32
  }
  func.func @transform_13(%arg0: i32, %arg1: i32) -> (i32, i32) {
    %c0_i32 = arith.constant 0 : i32
    %c0_i32_0 = arith.constant 0 : i32
    %c0_i32_1 = arith.constant 0 : i32
    return %c0_i32, %c0_i32_0 : i32, i32
  }
  func.func @transform_14(%arg0: i32, %arg1: i32) -> (i32, i32, i32) {
    %c0_i32 = arith.constant 0 : i32
    %c0_i32_0 = arith.constant 0 : i32
    %c0_i32_1 = arith.constant 0 : i32
    return %arg0, %c0_i32, %c0_i32_0 : i32, i32, i32
  }
}

module attributes {stable_mosaic.version = 11 : i64} {
  func.func @encoder_block_kernel(%arg0: i32, %arg1: i32, %arg2: memref<1x8x32xf32, #tpu.memory_space<vmem>>, %arg3: memref<1x8x8xf32, #tpu.memory_space<vmem>>, %arg4: memref<1x32x24xf32, #tpu.memory_space<vmem>>, %arg5: memref<1x1x24xf32, #tpu.memory_space<vmem>>, %arg6: memref<8x32xf32, #tpu.memory_space<vmem>>, %arg7: memref<1x32xf32, #tpu.memory_space<vmem>>, %arg8: memref<1x32xf32, #tpu.memory_space<vmem>>, %arg9: memref<1x32xf32, #tpu.memory_space<vmem>>, %arg10: memref<32x64xf32, #tpu.memory_space<vmem>>, %arg11: memref<1x64xf32, #tpu.memory_space<vmem>>, %arg12: memref<64x32xf32, #tpu.memory_space<vmem>>, %arg13: memref<1x32xf32, #tpu.memory_space<vmem>>, %arg14: memref<1x32xf32, #tpu.memory_space<vmem>>, %arg15: memref<1x32xf32, #tpu.memory_space<vmem>>, %arg16: memref<1x8x32xf32, #tpu.memory_space<vmem>>) attributes {dimension_semantics = [#tpu.dimension_semantics<parallel>, #tpu.dimension_semantics<arbitrary>], iteration_bounds = array<i64: 2, 4>, scalar_prefetch = 0 : i64, scratch_operands = 0 : i64, tpu.core_type = #tpu.core_type<tc>, window_params = [{transform_indices = @transform_0, window_bounds = array<i64: 1, 8, 32>}, {transform_indices = @transform_1, window_bounds = array<i64: 1, 8, 8>}, {transform_indices = @transform_2, window_bounds = array<i64: 1, 32, 24>}, {transform_indices = @transform_3, window_bounds = array<i64: 1, 1, 24>}, {transform_indices = @transform_4, window_bounds = array<i64: 8, 32>}, {pipeline_mode = #tpu.pipeline_mode<synchronous>, transform_indices = @transform_5, window_bounds = array<i64: 1, 32>}, {pipeline_mode = #tpu.pipeline_mode<synchronous>, transform_indices = @transform_6, window_bounds = array<i64: 1, 32>}, {pipeline_mode = #tpu.pipeline_mode<synchronous>, transform_indices = @transform_7, window_bounds = array<i64: 1, 32>}, {pipeline_mode = #tpu.pipeline_mode<synchronous>, transform_indices = @transform_8, window_bounds = array<i64: 32, 64>}, {pipeline_mode = #tpu.pipeline_mode<synchronous>, transform_indices = @transform_9, window_bounds = array<i64: 1, 64>}, {pipeline_mode = #tpu.pipeline_mode<synchronous>, transform_indices = @transform_10, window_bounds = array<i64: 64, 32>}, {pipeline_mode = #tpu.pipeline_mode<synchronous>, transform_indices = @transform_11, window_bounds = array<i64: 1, 32>}, {pipeline_mode = #tpu.pipeline_mode<synchronous>, transform_indices = @transform_12, window_bounds = array<i64: 1, 32>}, {pipeline_mode = #tpu.pipeline_mode<synchronous>, transform_indices = @transform_13, window_bounds = array<i64: 1, 32>}, {transform_indices = @transform_14, window_bounds = array<i64: 1, 8, 32>}]} {
    %c0 = arith.constant 0 : index
    %c0_0 = arith.constant 0 : index
    %c0_1 = arith.constant 0 : index
    %0 = vector.load %arg2[%c0, %c0_0, %c0_1] : memref<1x8x32xf32, #tpu.memory_space<vmem>>, vector<1x8x32xf32>
    %1 = vector.shape_cast %0 : vector<1x8x32xf32> to vector<8x32xf32>
    %c0_2 = arith.constant 0 : index
    %c0_3 = arith.constant 0 : index
    %c0_4 = arith.constant 0 : index
    %2 = vector.load %arg4[%c0_2, %c0_3, %c0_4] : memref<1x32x24xf32, #tpu.memory_space<vmem>>, vector<1x32x24xf32>
    %3 = vector.shape_cast %2 : vector<1x32x24xf32> to vector<32x24xf32>
    %cst = arith.constant dense<0.000000e+00> : vector<8x24xf32>
    %4 = tpu.matmul %1, %3, %cst {dimension_numbers = #tpu.dot_dimension_numbers<[1], [0], [0], [1], [0, 0, 1, 1], [], []>} : vector<8x32xf32>, vector<32x24xf32>, vector<8x24xf32> -> vector<8x24xf32>
    %c0_5 = arith.constant 0 : index
    %c0_6 = arith.constant 0 : index
    %c0_7 = arith.constant 0 : index
    %5 = vector.load %arg5[%c0_5, %c0_6, %c0_7] : memref<1x1x24xf32, #tpu.memory_space<vmem>>, vector<1x1x24xf32>
    %6 = vector.shape_cast %5 : vector<1x1x24xf32> to vector<1x24xf32>
    %7 = vector.broadcast %6 : vector<1x24xf32> to vector<8x24xf32>
    %8 = arith.addf %4, %7 : vector<8x24xf32>
    %9 = vector.extract_strided_slice %8 {offsets = [0, 0], sizes = [8, 8], strides = [1, 1]} : vector<8x24xf32> to vector<8x8xf32>
    %cst_8 = arith.constant 0.353553385 : f32
    %10 = vector.broadcast %cst_8 : f32 to vector<8x8xf32>
    %11 = arith.mulf %9, %10 : vector<8x8xf32>
    %12 = vector.extract_strided_slice %8 {offsets = [0, 8], sizes = [8, 8], strides = [1, 1]} : vector<8x24xf32> to vector<8x8xf32>
    %13 = vector.extract_strided_slice %8 {offsets = [0, 16], sizes = [8, 8], strides = [1, 1]} : vector<8x24xf32> to vector<8x8xf32>
    %cst_9 = arith.constant dense<0.000000e+00> : vector<8x8xf32>
    %14 = tpu.matmul %11, %12, %cst_9 {dimension_numbers = #tpu.dot_dimension_numbers<[1], [1], [0], [0], [0, 0, 1, 0], [], []>} : vector<8x8xf32>, vector<8x8xf32>, vector<8x8xf32> -> vector<8x8xf32>
    %c0_10 = arith.constant 0 : index
    %c0_11 = arith.constant 0 : index
    %c0_12 = arith.constant 0 : index
    %15 = vector.load %arg3[%c0_10, %c0_11, %c0_12] : memref<1x8x8xf32, #tpu.memory_space<vmem>>, vector<1x8x8xf32>
    %16 = vector.shape_cast %15 : vector<1x8x8xf32> to vector<8x8xf32>
    %cst_13 = arith.constant 1.000000e+06 : f32
    %17 = vector.broadcast %cst_13 : f32 to vector<8x8xf32>
    %18 = arith.mulf %16, %17 : vector<8x8xf32>
    %19 = arith.subf %14, %18 : vector<8x8xf32>
    %cst_14 = arith.constant dense<0xFF800000> : vector<8xf32>
    %20 = vector.multi_reduction <maximumf>, %19, %cst_14 [1] : vector<8x8xf32> to vector<8xf32>
    %21 = vector.shape_cast %20 : vector<8xf32> to vector<8x1xf32>
    %22 = vector.broadcast %21 : vector<8x1xf32> to vector<8x8xf32>
    %23 = arith.subf %19, %22 : vector<8x8xf32>
    %24 = math.exp %23 : vector<8x8xf32>
    %cst_15 = arith.constant dense<0.000000e+00> : vector<8xf32>
    %25 = vector.multi_reduction <add>, %24, %cst_15 [1] : vector<8x8xf32> to vector<8xf32>
    %26 = vector.shape_cast %25 : vector<8xf32> to vector<8x1xf32>
    %cst_16 = arith.constant dense<0.000000e+00> : vector<8x8xf32>
    %27 = tpu.matmul %24, %13, %cst_16 {dimension_numbers = #tpu.dot_dimension_numbers<[1], [0], [0], [1], [0, 0, 1, 1], [], []>} : vector<8x8xf32>, vector<8x8xf32>, vector<8x8xf32> -> vector<8x8xf32>
    %28 = tpu.reciprocal %26 : vector<8x1xf32> -> vector<8x1xf32>
    %29 = vector.broadcast %28 : vector<8x1xf32> to vector<8x8xf32>
    %30 = arith.mulf %27, %29 : vector<8x8xf32>
    %c0_17 = arith.constant 0 : index
    %c0_18 = arith.constant 0 : index
    %31 = vector.load %arg6[%c0_17, %c0_18] : memref<8x32xf32, #tpu.memory_space<vmem>>, vector<8x32xf32>
    %cst_19 = arith.constant dense<0.000000e+00> : vector<8x32xf32>
    %32 = tpu.matmul %30, %31, %cst_19 {dimension_numbers = #tpu.dot_dimension_numbers<[1], [0], [0], [1], [0, 0, 1, 1], [], []>} : vector<8x8xf32>, vector<8x32xf32>, vector<8x32xf32> -> vector<8x32xf32>
    %c0_i32 = arith.constant 0 : i32
    %33 = arith.cmpi eq, %arg1, %c0_i32 : i32
    %34 = arith.extui %33 : i1 to i32
    %c0_i32_20 = arith.constant 0 : i32
    %35 = arith.cmpi ne, %34, %c0_i32_20 : i32
    scf.if %35 {
      %c0_25 = arith.constant 0 : index
      %c0_26 = arith.constant 0 : index
      %c0_27 = arith.constant 0 : index
      %42 = vector.load %arg16[%c0_25, %c0_26, %c0_27] : memref<1x8x32xf32, #tpu.memory_space<vmem>>, vector<1x8x32xf32>
      %43 = vector.shape_cast %42 : vector<1x8x32xf32> to vector<8x32xf32>
      %44 = vector.shape_cast %32 : vector<8x32xf32> to vector<1x8x32xf32>
      tpu.vector_store %arg16[%c0_25, %c0_26, %c0_27], %44 {strides = array<i32>} : memref<1x8x32xf32, #tpu.memory_space<vmem>>, vector<1x8x32xf32>,
    } else {
    }
    %c0_i32_21 = arith.constant 0 : i32
    %36 = arith.cmpi sgt, %arg1, %c0_i32_21 : i32
    %37 = arith.extui %36 : i1 to i32
    %c0_i32_22 = arith.constant 0 : i32
    %38 = arith.cmpi ne, %37, %c0_i32_22 : i32
    scf.if %38 {
      %c0_25 = arith.constant 0 : index
      %c0_26 = arith.constant 0 : index
      %c0_27 = arith.constant 0 : index
      %42 = vector.load %arg16[%c0_25, %c0_26, %c0_27] : memref<1x8x32xf32, #tpu.memory_space<vmem>>, vector<1x8x32xf32>
      %43 = vector.shape_cast %42 : vector<1x8x32xf32> to vector<8x32xf32>
      %44 = arith.addf %43, %32 : vector<8x32xf32>
      %c0_28 = arith.constant 0 : index
      %c0_29 = arith.constant 0 : index
      %c0_30 = arith.constant 0 : index
      %45 = vector.load %arg16[%c0_28, %c0_29, %c0_30] : memref<1x8x32xf32, #tpu.memory_space<vmem>>, vector<1x8x32xf32>
      %46 = vector.shape_cast %45 : vector<1x8x32xf32> to vector<8x32xf32>
      %47 = vector.shape_cast %44 : vector<8x32xf32> to vector<1x8x32xf32>
      tpu.vector_store %arg16[%c0_28, %c0_29, %c0_30], %47 {strides = array<i32>} : memref<1x8x32xf32, #tpu.memory_space<vmem>>, vector<1x8x32xf32>,
    } else {
    }
    %c3_i32 = arith.constant 3 : i32
    %39 = arith.cmpi eq, %arg1, %c3_i32 : i32
    %40 = arith.extui %39 : i1 to i32
    %cst_23 = arith.constant 9.99999997E-7 : f32
    %c0_i32_24 = arith.constant 0 : i32
    %41 = arith.cmpi ne, %40, %c0_i32_24 : i32
    scf.if %41 {
      %c0_25 = arith.constant 0 : index
      %c0_26 = arith.constant 0 : index
      %c0_27 = arith.constant 0 : index
      %42 = vector.load %arg16[%c0_25, %c0_26, %c0_27] : memref<1x8x32xf32, #tpu.memory_space<vmem>>, vector<1x8x32xf32>
      %43 = vector.shape_cast %42 : vector<1x8x32xf32> to vector<8x32xf32>
      %c0_28 = arith.constant 0 : index
      %c0_29 = arith.constant 0 : index
      %44 = vector.load %arg7[%c0_28, %c0_29] : memref<1x32xf32, #tpu.memory_space<vmem>>, vector<1x32xf32>
      %45 = vector.shape_cast %44 : vector<1x32xf32> to vector<32xf32>
      %46 = vector.shape_cast %45 : vector<32xf32> to vector<1x32xf32>
      %47 = vector.broadcast %46 : vector<1x32xf32> to vector<8x32xf32>
      %48 = arith.addf %43, %47 : vector<8x32xf32>
      %49 = arith.addf %1, %48 : vector<8x32xf32>
      %cst_30 = arith.constant dense<0.000000e+00> : vector<8xf32>
      %50 = vector.multi_reduction <add>, %49, %cst_30 [1] : vector<8x32xf32> to vector<8xf32>
      %51 = vector.shape_cast %50 : vector<8xf32> to vector<8x1xf32>
      %cst_31 = arith.constant 3.200000e+01 : f32
      %52 = vector.broadcast %cst_31 : f32 to vector<8x1xf32>
      %53 = arith.divf %51, %52 : vector<8x1xf32>
      %54 = vector.broadcast %53 : vector<8x1xf32> to vector<8x32xf32>
      %55 = arith.subf %49, %54 : vector<8x32xf32>
      %56 = arith.mulf %55, %55 : vector<8x32xf32>
      %cst_32 = arith.constant dense<0.000000e+00> : vector<8xf32>
      %57 = vector.multi_reduction <add>, %56, %cst_32 [1] : vector<8x32xf32> to vector<8xf32>
      %58 = vector.shape_cast %57 : vector<8xf32> to vector<8x1xf32>
      %cst_33 = arith.constant 3.200000e+01 : f32
      %59 = vector.broadcast %cst_33 : f32 to vector<8x1xf32>
      %60 = arith.divf %58, %59 : vector<8x1xf32>
      %61 = vector.broadcast %cst_23 : f32 to vector<8x1xf32>
      %62 = arith.addf %60, %61 : vector<8x1xf32>
      %63 = math.rsqrt %62 : vector<8x1xf32>
      %64 = vector.broadcast %63 : vector<8x1xf32> to vector<8x32xf32>
      %65 = arith.mulf %55, %64 : vector<8x32xf32>
      %c0_34 = arith.constant 0 : index
      %c0_35 = arith.constant 0 : index
      %66 = vector.load %arg8[%c0_34, %c0_35] : memref<1x32xf32, #tpu.memory_space<vmem>>, vector<1x32xf32>
      %67 = vector.shape_cast %66 : vector<1x32xf32> to vector<32xf32>
      %68 = vector.shape_cast %67 : vector<32xf32> to vector<1x32xf32>
      %69 = vector.broadcast %68 : vector<1x32xf32> to vector<8x32xf32>
      %70 = arith.mulf %65, %69 : vector<8x32xf32>
      %c0_36 = arith.constant 0 : index
      %c0_37 = arith.constant 0 : index
      %71 = vector.load %arg9[%c0_36, %c0_37] : memref<1x32xf32, #tpu.memory_space<vmem>>, vector<1x32xf32>
      %72 = vector.shape_cast %71 : vector<1x32xf32> to vector<32xf32>
      %73 = vector.shape_cast %72 : vector<32xf32> to vector<1x32xf32>
      %74 = vector.broadcast %73 : vector<1x32xf32> to vector<8x32xf32>
      %75 = arith.addf %70, %74 : vector<8x32xf32>
      %c0_38 = arith.constant 0 : index
      %c0_39 = arith.constant 0 : index
      %76 = vector.load %arg10[%c0_38, %c0_39] : memref<32x64xf32, #tpu.memory_space<vmem>>, vector<32x64xf32>
      %cst_40 = arith.constant dense<0.000000e+00> : vector<8x64xf32>
      %77 = tpu.matmul %75, %76, %cst_40 {dimension_numbers = #tpu.dot_dimension_numbers<[1], [0], [0], [1], [0, 0, 1, 1], [], []>} : vector<8x32xf32>, vector<32x64xf32>, vector<8x64xf32> -> vector<8x64xf32>
      %c0_41 = arith.constant 0 : index
      %c0_42 = arith.constant 0 : index
      %78 = vector.load %arg11[%c0_41, %c0_42] : memref<1x64xf32, #tpu.memory_space<vmem>>, vector<1x64xf32>
      %79 = vector.shape_cast %78 : vector<1x64xf32> to vector<64xf32>
      %80 = vector.shape_cast %79 : vector<64xf32> to vector<1x64xf32>
      %81 = vector.broadcast %80 : vector<1x64xf32> to vector<8x64xf32>
      %82 = arith.addf %77, %81 : vector<8x64xf32>
      %cst_43 = arith.constant 0.000000e+00 : f32
      %83 = vector.broadcast %cst_43 : f32 to vector<8x64xf32>
      %84 = arith.maximumf %82, %83 : vector<8x64xf32>
      %c0_44 = arith.constant 0 : index
      %c0_45 = arith.constant 0 : index
      %85 = vector.load %arg12[%c0_44, %c0_45] : memref<64x32xf32, #tpu.memory_space<vmem>>, vector<64x32xf32>
      %cst_46 = arith.constant dense<0.000000e+00> : vector<8x32xf32>
      %86 = tpu.matmul %84, %85, %cst_46 {dimension_numbers = #tpu.dot_dimension_numbers<[1], [0], [0], [1], [0, 0, 1, 1], [], []>} : vector<8x64xf32>, vector<64x32xf32>, vector<8x32xf32> -> vector<8x32xf32>
      %c0_47 = arith.constant 0 : index
      %c0_48 = arith.constant 0 : index
      %87 = vector.load %arg13[%c0_47, %c0_48] : memref<1x32xf32, #tpu.memory_space<vmem>>, vector<1x32xf32>
      %88 = vector.shape_cast %87 : vector<1x32xf32> to vector<32xf32>
      %89 = vector.shape_cast %88 : vector<32xf32> to vector<1x32xf32>
      %90 = vector.broadcast %89 : vector<1x32xf32> to vector<8x32xf32>
      %91 = arith.addf %86, %90 : vector<8x32xf32>
      %92 = arith.addf %75, %91 : vector<8x32xf32>
      %cst_49 = arith.constant dense<0.000000e+00> : vector<8xf32>
      %93 = vector.multi_reduction <add>, %92, %cst_49 [1] : vector<8x32xf32> to vector<8xf32>
      %94 = vector.shape_cast %93 : vector<8xf32> to vector<8x1xf32>
      %cst_50 = arith.constant 3.200000e+01 : f32
      %95 = vector.broadcast %cst_50 : f32 to vector<8x1xf32>
      %96 = arith.divf %94, %95 : vector<8x1xf32>
      %97 = vector.broadcast %96 : vector<8x1xf32> to vector<8x32xf32>
      %98 = arith.subf %92, %97 : vector<8x32xf32>
      %99 = arith.mulf %98, %98 : vector<8x32xf32>
      %cst_51 = arith.constant dense<0.000000e+00> : vector<8xf32>
      %100 = vector.multi_reduction <add>, %99, %cst_51 [1] : vector<8x32xf32> to vector<8xf32>
      %101 = vector.shape_cast %100 : vector<8xf32> to vector<8x1xf32>
      %cst_52 = arith.constant 3.200000e+01 : f32
      %102 = vector.broadcast %cst_52 : f32 to vector<8x1xf32>
      %103 = arith.divf %101, %102 : vector<8x1xf32>
      %104 = vector.broadcast %cst_23 : f32 to vector<8x1xf32>
      %105 = arith.addf %103, %104 : vector<8x1xf32>
      %106 = math.rsqrt %105 : vector<8x1xf32>
      %107 = vector.broadcast %106 : vector<8x1xf32> to vector<8x32xf32>
      %108 = arith.mulf %98, %107 : vector<8x32xf32>
      %c0_53 = arith.constant 0 : index
      %c0_54 = arith.constant 0 : index
      %109 = vector.load %arg14[%c0_53, %c0_54] : memref<1x32xf32, #tpu.memory_space<vmem>>, vector<1x32xf32>
      %110 = vector.shape_cast %109 : vector<1x32xf32> to vector<32xf32>
      %111 = vector.shape_cast %110 : vector<32xf32> to vector<1x32xf32>
      %112 = vector.broadcast %111 : vector<1x32xf32> to vector<8x32xf32>
      %113 = arith.mulf %108, %112 : vector<8x32xf32>
      %c0_55 = arith.constant 0 : index
      %c0_56 = arith.constant 0 : index
      %114 = vector.load %arg15[%c0_55, %c0_56] : memref<1x32xf32, #tpu.memory_space<vmem>>, vector<1x32xf32>
      %115 = vector.shape_cast %114 : vector<1x32xf32> to vector<32xf32>
      %116 = vector.shape_cast %115 : vector<32xf32> to vector<1x32xf32>
      %117 = vector.broadcast %116 : vector<1x32xf32> to vector<8x32xf32>
      %118 = arith.addf %113, %117 : vector<8x32xf32>
      %c0_57 = arith.constant 0 : index
      %c0_58 = arith.constant 0 : index
      %c0_59 = arith.constant 0 : index
      %119 = vector.load %arg16[%c0_57, %c0_58, %c0_59] : memref<1x8x32xf32, #tpu.memory_space<vmem>>, vector<1x8x32xf32>
      %120 = vector.shape_cast %119 : vector<1x8x32xf32> to vector<8x32xf32>
      %121 = vector.shape_cast %118 : vector<8x32xf32> to vector<1x8x32xf32>
      tpu.vector_store %arg16[%c0_57, %c0_58, %c0_59], %121 {strides = array<i32>} : memref<1x8x32xf32, #tpu.memory_space<vmem>>, vector<1x8x32xf32>,
    } else {
    }
    return
  }
  func.func @transform_0(%arg0: i32, %arg1: i32) -> (i32, i32, i32) {
    %c0_i32 = arith.constant 0 : i32
    %c0_i32_0 = arith.constant 0 : i32
    %c0_i32_1 = arith.constant 0 : i32
    return %arg0, %c0_i32, %c0_i32_0 : i32, i32, i32
  }
  func.func @transform_1(%arg0: i32, %arg1: i32) -> (i32, i32, i32) {
    %c0_i32 = arith.constant 0 : i32
    %c0_i32_0 = arith.constant 0 : i32
    %c0_i32_1 = arith.constant 0 : i32
    return %arg0, %c0_i32, %c0_i32_0 : i32, i32, i32
  }
  func.func @transform_2(%arg0: i32, %arg1: i32) -> (i32, i32, i32) {
    %c0_i32 = arith.constant 0 : i32
    %c0_i32_0 = arith.constant 0 : i32
    %c0_i32_1 = arith.constant 0 : i32
    return %arg1, %c0_i32, %c0_i32_0 : i32, i32, i32
  }
  func.func @transform_3(%arg0: i32, %arg1: i32) -> (i32, i32, i32) {
    %c0_i32 = arith.constant 0 : i32
    %c0_i32_0 = arith.constant 0 : i32
    %c0_i32_1 = arith.constant 0 : i32
    return %arg1, %c0_i32, %c0_i32_0 : i32, i32, i32
  }
  func.func @transform_4(%arg0: i32, %arg1: i32) -> (i32, i32) {
    %c0_i32 = arith.constant 0 : i32
    %c0_i32_0 = arith.constant 0 : i32
    return %arg1, %c0_i32 : i32, i32
  }
  func.func @transform_5(%arg0: i32, %arg1: i32) -> (i32, i32) {
    %c0_i32 = arith.constant 0 : i32
    %c0_i32_0 = arith.constant 0 : i32
    %c0_i32_1 = arith.constant 0 : i32
    return %c0_i32, %c0_i32_0 : i32, i32
  }
  func.func @transform_6(%arg0: i32, %arg1: i32) -> (i32, i32) {
    %c0_i32 = arith.constant 0 : i32
    %c0_i32_0 = arith.constant 0 : i32
    %c0_i32_1 = arith.constant 0 : i32
    return %c0_i32, %c0_i32_0 : i32, i32
  }
  func.func @transform_7(%arg0: i32, %arg1: i32) -> (i32, i32) {
    %c0_i32 = arith.constant 0 : i32
    %c0_i32_0 = arith.constant 0 : i32
    %c0_i32_1 = arith.constant 0 : i32
    return %c0_i32, %c0_i32_0 : i32, i32
  }
  func.func @transform_8(%arg0: i32, %arg1: i32) -> (i32, i32) {
    %c0_i32 = arith.constant 0 : i32
    %c0_i32_0 = arith.constant 0 : i32
    %c0_i32_1 = arith.constant 0 : i32
    return %c0_i32, %c0_i32_0 : i32, i32
  }
  func.func @transform_9(%arg0: i32, %arg1: i32) -> (i32, i32) {
    %c0_i32 = arith.constant 0 : i32
    %c0_i32_0 = arith.constant 0 : i32
    %c0_i32_1 = arith.constant 0 : i32
    return %c0_i32, %c0_i32_0 : i32, i32
  }
  func.func @transform_10(%arg0: i32, %arg1: i32) -> (i32, i32) {
    %c0_i32 = arith.constant 0 : i32
    %c0_i32_0 = arith.constant 0 : i32
    %c0_i32_1 = arith.constant 0 : i32
    return %c0_i32, %c0_i32_0 : i32, i32
  }
  func.func @transform_11(%arg0: i32, %arg1: i32) -> (i32, i32) {
    %c0_i32 = arith.constant 0 : i32
    %c0_i32_0 = arith.constant 0 : i32
    %c0_i32_1 = arith.constant 0 : i32
    return %c0_i32, %c0_i32_0 : i32, i32
  }
  func.func @transform_12(%arg0: i32, %arg1: i32) -> (i32, i32) {
    %c0_i32 = arith.constant 0 : i32
    %c0_i32_0 = arith.constant 0 : i32
    %c0_i32_1 = arith.constant 0 : i32
    return %c0_i32, %c0_i32_0 : i32, i32
  }
  func.func @transform_13(%arg0: i32, %arg1: i32) -> (i32, i32) {
    %c0_i32 = arith.constant 0 : i32
    %c0_i32_0 = arith.constant 0 : i32
    %c0_i32_1 = arith.constant 0 : i32
    return %c0_i32, %c0_i32_0 : i32, i32
  }
  func.func @transform_14(%arg0: i32, %arg1: i32) -> (i32, i32, i32) {
    %c0_i32 = arith.constant 0 : i32
    %c0_i32_0 = arith.constant 0 : i32
    %c0_i32_1 = arith.constant 0 : i32
    return %arg0, %c0_i32, %c0_i32_0 : i32, i32, i32
  }
}

</mosaic_0001>

<bundles_post_ra>
// kernel: tpu_custom_call.1
= control target key start
LH: loop header
LB: loop body
LE: loop exit
PB: predicated region body
PF: predicated region fallthrough
CT: control target
= control target key end

     0   :  { %s3346_s0 = inlined_call_operand.hbm [shape: f32[2,8,32], index: 0, kind: input, shape index: {}]   ;;  %s3347_s1 = inlined_call_operand.hbm [shape: f32[2,8,8], index: 1, kind: input, shape index: {}]   ;;  %s3348_s2 = inlined_call_operand.hbm [shape: f32[4,32,24], index: 2, kind: input, shape index: {}]   ;;  %s3349_s3 = inlined_call_operand.hbm [shape: f32[4,1,24], index: 3, kind: input, shape index: {}]   ;;  %s3350_s4 = inlined_call_operand.hbm [shape: f32[32,32], index: 4, kind: input, shape index: {}]   ;;  %s3351_s5 = inlined_call_operand.hbm [shape: f32[1,32], index: 5, kind: input, shape index: {}]   ;;  %s3352_s6 = inlined_call_operand.hbm [shape: f32[1,32], index: 6, kind: input, shape index: {}]   ;;  %s3353_s7 = inlined_call_operand.hbm [shape: f32[1,32], index: 7, kind: input, shape index: {}]   ;;  %s3354_s8 = inlined_call_operand.hbm [shape: f32[32,64], index: 8, kind: input, shape index: {}]   ;;  %s3355_s9 = inlined_call_operand.hbm [shape: f32[1,64], index: 9, kind: input, shape index: {}]   ;;  %s3356_s10 = inlined_call_operand.hbm [shape: f32[64,32], index: 10, kind: input, shape index: {}]   ;;  %s3357_s11 = inlined_call_operand.hbm [shape: f32[1,32], index: 11, kind: input, shape index: {}]   ;;  %s3358_s12 = inlined_call_operand.hbm [shape: f32[1,32], index: 12, kind: input, shape index: {}]   ;;  %s3359_s13 = inlined_call_operand.hbm [shape: f32[1,32], index: 13, kind: input, shape index: {}]   ;;  %s3360_s14 = inlined_call_operand.hbm [shape: f32[2,8,32], index: 14, kind: output, shape index: {}]  }
   0x1   :  { %3409 = sst [smem:[#allocation54_spill]] %s3346_s0 }
   0x2   :  { %3410 = sst [smem:[#allocation55_spill]] %s3347_s1 }
   0x3   :  { %3411 = sst [smem:[#allocation56_spill]] %s3348_s2 }
   0x4   :  { %3412 = sst [smem:[#allocation57_spill]] %s3349_s3 }
   0x5   :  { %3413 = sst [smem:[#allocation58_spill]] %s3350_s4 }
   0x6   :  { %3414 = sst [smem:[#allocation59_spill]] %s3351_s5 }
   0x7   :  { %3415 = sst [smem:[#allocation60_spill]] %s3352_s6 }
   0x8   :  { %3416 = sst [smem:[#allocation61_spill]] %s3353_s7 }
   0x9   :  { %3417 = sst [smem:[#allocation62_spill]] %s3354_s8 }
   0xa   :  { %3418 = sst [smem:[#allocation63_spill]] %s3355_s9 }
   0xb   :  { %3419 = sst [smem:[#allocation64_spill]] %s3356_s10 }
   0xc   :  { %3420 = sst [smem:[#allocation65_spill]] %s3357_s11 }
   0xd   :  { %3421 = sst [smem:[#allocation66_spill]] %s3358_s12 }
   0xe   :  { %3422 = sst [smem:[#allocation67_spill]] %s3359_s13 }
   0xf   :  { %3423 = sst [smem:[#allocation68_spill]] %s3360_s14 }
  0x10   :  { %19 = vsyncpa [#allocation3], 0 }
  0x11   :  { %21 = vsyncpa [#allocation3 + $0x1], 0 }
  0x12   :  { %22 = vsyncpa [#allocation6], 0 }
  0x13   :  { %24 = vsyncpa [#allocation6 + $0x1], 0 }
  0x14   :  { %25 = vsyncpa [#allocation9], 0 }
  0x15   :  { %27 = vsyncpa [#allocation9 + $0x1], 0 }
  0x16   :  { %28 = vsyncpa [#allocation12], 0 }
  0x17   :  { %29 = vsyncpa [#allocation15], 0 }
  0x18   :  { %30 = vsyncpa [#allocation18], 0 }
  0x19   :  { %31 = vsyncpa [#allocation21], 0 }
  0x1a   :  { %32 = vsyncpa [#allocation24], 0 }
  0x1b   :  { %33 = vsyncpa [#allocation4], 0 }
  0x1c   :  { %35 = vsyncpa [#allocation4 + $0x1], 0  ;;  %s2664_s29 = smov 0   ;;  %s2666_s30 = smov 0  }
  0x1d   :  { %s2668_s15 = smov 0   ;;  %s2670_s16 = smov 0  }
  0x1e   :  { %s2672_s17 = smov 0   ;;  %s2674_s18 = smov 0  }
  0x1f   :  { %s2676_s19 = smov 0   ;;  %s2678_s20 = smov 0  }
  0x20   :  { %s2680_s21 = smov 0   ;;  %s2682_s22 = smov 0  }
  0x21   :  { %s2684_s23 = smov 0  }
  0x22 LB: > { %3424 = sst [smem:[#allocation36_spill]] %s2526_s30  ;;  %s2720_s24 = sadd.s32 4294967295, %s2562_s23   ;;  %s2562_s23 = sphi %s2684_s23, %s41_s23   ;;  %s2558_s22 = sphi %s2682_s22, %s3528_s22   ;;  %s2554_s21 = sphi %s2680_s21, %s3527_s21   ;;  %s2550_s20 = sphi %s2678_s20, %s3526_s20   ;;  %s2546_s19 = sphi %s2676_s19, %s3525_s19   ;;  %s2542_s18 = sphi %s2674_s18, %s3524_s18   ;;  %s2538_s17 = sphi %s2672_s17, %s3523_s17   ;;  %s2534_s16 = sphi %s2670_s16, %s3519_s16   ;;  %s2530_s15 = sphi %s2668_s15, %s3518_s15   ;;  %s2526_s30 = sphi %s2666_s30, %s3517_s30   ;;  %s2522_s29 = sphi %s2664_s29, %s3516_s29  }
  0x23   : > { %3425 = sst [smem:[#allocation37_spill]] %s2530_s15  ;;  %p1611_p0 = scmp.ge.s32.totalorder %s2562_s23, 1 }
  0x24   : > { %3426 = sst [smem:[#allocation38_spill]] %s2534_s16  ;;  %p3368_p1 = scmp.eq.s32.totalorder %s2720_s24, 0 }
  0x25   : > { %3427 = sst [smem:[#allocation39_spill]] %s2538_s17  ;;  %p403_p2 = scmp.lt.s32.totalorder %s2562_s23, 9 }
  0x26   : > { %3428 = sst [smem:[#allocation40_spill]] %s2546_s19  ;;  %s2564_s26 = smov [#allocation11]  }
  0x27   : > { %3429 = sst [smem:[#allocation41_spill]] %s2550_s20  ;;  %p2725_p3 = pnand %p1611_p0, %p403_p2 }
  0x28   : > { %3430 = sst [smem:[#allocation42_spill]] %s2562_s23  ;;  %s416_s27 = sshll.u32 %s2564_s26, 4  ;;  %s417_s27 = int_to_ptr.vmem [resolvable:$true] %s416_s27 }
  0x29   : > { %3431 = sst [smem:[#allocation43_spill]] %s2720_s24  ;;  %p1823_p4 = pneg %p2725_p3 }
  0x2a   : > { %s3432_s25 = scalar_select %p2725_p3, 1, 0 }
  0x2b   : > { %s2565_s28 = smov [#allocation14]   ;;  %p2733_p5 = pnand %p1823_p4, %p3368_p1 }
  0x2c   : > { %3433 = sst [smem:[#allocation44_spill]] %s3432_s25  ;;  %s438_s14 = sshll.u32 %s2565_s28, 4  ;;  %s2737_s14 = int_to_ptr.vmem [resolvable:$true] %s438_s14 }
  0x2d   : > { %s3434_s20 = scalar_select %p2733_p5, 1, 0 }
  0x2e   : > { %s2566_s19 = smov [#allocation17]   ;;  %s3435_s5 = sld [smem:[#allocation59_spill]] }
  0x2f   : > { %s462_s4 = sshll.u32 %s2566_s19, 4  ;;  %p2749_p7 = pneg %p2733_p5  ;;  %s2739_s4 = int_to_ptr.vmem [resolvable:$true] %s462_s4 }
  0x31   : > { %s3436_s28 = scalar_select %p2749_p7, 1, 0 }
  0x34   : > { %s2006_s26 = scalar_lea.hbm %s3435_s5, 16 }
  0x35   : > { %p2007_p6 = scmp.ne.s32.totalorder %s3435_s5, %s2006_s26  ;;  %p2013_p10 = scmp.lt.u32.totalorder %s2006_s26, %s3435_s5 }
  0x37   : > { %p2009_p8 = pnand %p2749_p7, %p2007_p6 }
  0x39   : > { %p2010_p9 = pneg %p2009_p8 }
  0x3b   : > { %p2015_p11 = pnand %p2013_p10, %p2010_p9 }
  0x3d   : > { %2018 = shalt.err (!%p2015_p11)
}
  0x3e   : > { %s2019_s0 = scalar_lea.vmem %s417_s27, 16  ;;  %s2026_s2 = scalar_lea.vmem %s417_s27, 32 }
  0x3f   : > { %p2020_p12 = scmp.ne.s32.totalorder %s417_s27, %s2019_s0  ;;  %p2027_p2 = scmp.lt.s32.totalorder %s417_s27, %s417_s27 }
  0x40   : > { %p2028_p4 = scmp.lt.s32.totalorder %s2026_s2, %s2019_s0 }
  0x41   : > { %p2022_p13 = pnand %p2020_p12, %p2749_p7 }
  0x42   : > { %p2029_p1 = por %p2028_p4, %p2027_p2 }
  0x43   : > { %p2023_p0 = pneg %p2022_p13 }
  0x45   : > { %p2030_p3 = pnand %p2029_p1, %p2023_p0 }
  0x47   : > { %2033 = shalt.err (!%p2030_p3)
}
  0x48   : > { %1826 = dma.hbm_to_vmem [thread:$0]  (!%p2733_p5), %s3435_s5, 16, %s417_s27, [#allocation12]  }
  0x49   : > { %s3437_s7 = sld [smem:[#allocation61_spill]] }
  0x4f   : > { %s2034_s19 = scalar_lea.hbm %s3437_s7, 16 }
  0x50   : > { %p2035_p6 = scmp.ne.s32.totalorder %s3437_s7, %s2034_s19  ;;  %p2041_p1 = scmp.lt.u32.totalorder %s2034_s19, %s3437_s7 }
  0x52   : > { %p2037_p8 = pnand %p2035_p6, %p2749_p7 }
  0x54   : > { %p2038_p9 = pneg %p2037_p8 }
  0x56   : > { %p2043_p3 = pnand %p2041_p1, %p2038_p9 }
  0x58   : > { %2046 = shalt.err (!%p2043_p3)
}
  0x59   : > { %s2047_s27 = scalar_lea.vmem %s2737_s14, 16  ;;  %s2054_s8 = scalar_lea.vmem %s2737_s14, 32 }
  0x5a   : > { %p2048_p10 = scmp.ne.s32.totalorder %s2737_s14, %s2047_s27  ;;  %p2055_p13 = scmp.lt.s32.totalorder %s2737_s14, %s2737_s14 }
  0x5b   : > { %p2056_p0 = scmp.lt.s32.totalorder %s2054_s8, %s2047_s27 }
  0x5c   : > { %p2050_p11 = pnand %p2048_p10, %p2749_p7 }
  0x5d   : > { %p2057_p2 = por %p2056_p0, %p2055_p13 }
  0x5e   : > { %p2051_p12 = pneg %p2050_p11 }
  0x60   : > { %p2058_p4 = pnand %p2057_p2, %p2051_p12 }
  0x62   : > { %2061 = shalt.err (!%p2058_p4)
}
  0x63   : > { %1832 = dma.hbm_to_vmem [thread:$0]  (!%p2733_p5), %s3437_s7, 16, %s2737_s14, [#allocation15]  }
  0x64   : > { %s3438_s9 = sld [smem:[#allocation63_spill]] }
  0x6a   : > { %s2062_s26 = scalar_lea.hbm %s3438_s9, 16 }
  0x6b   : > { %p2063_p6 = scmp.ne.s32.totalorder %s3438_s9, %s2062_s26  ;;  %p2069_p1 = scmp.lt.u32.totalorder %s2062_s26, %s3438_s9 }
  0x6d   : > { %p2065_p8 = pnand %p2063_p6, %p2749_p7 }
  0x6f   : > { %p2066_p9 = pneg %p2065_p8 }
  0x71   : > { %p2071_p3 = pnand %p2069_p1, %p2066_p9 }
  0x73   : > { %2074 = shalt.err (!%p2071_p3)
}
  0x74   : > { %s2075_s14 = scalar_lea.vmem %s2739_s4, 16  ;;  %s2082_s8 = scalar_lea.vmem %s2739_s4, 32 }
  0x75   : > { %p2076_p10 = scmp.ne.s32.totalorder %s2739_s4, %s2075_s14  ;;  %p2083_p13 = scmp.lt.s32.totalorder %s2739_s4, %s2739_s4 }
  0x76   : > { %p2084_p0 = scmp.lt.s32.totalorder %s2082_s8, %s2075_s14 }
  0x77   : > { %p2078_p11 = pnand %p2076_p10, %p2749_p7 }
  0x78   : > { %p2085_p2 = por %p2084_p0, %p2083_p13 }
  0x79   : > { %p2079_p12 = pneg %p2078_p11 }
  0x7b   : > { %p2086_p4 = pnand %p2085_p2, %p2079_p12 }
  0x7d   : > { %2089 = shalt.err (!%p2086_p4)
}
  0x7e   : > { %1838 = dma.hbm_to_vmem [thread:$0]  (!%p2733_p5), %s3438_s9, 16, %s2739_s4, [#allocation18]  }
  0x7f   : > { %s2567_s25 = smov [#allocation20]   ;;  %s3439_s11 = sld [smem:[#allocation65_spill]] }
  0x80   : > { %s486_s12 = sshll.u32 %s2567_s25, 4  ;;  %s487_s12 = int_to_ptr.vmem [resolvable:$true] %s486_s12 }
  0x85   : > { %s2090_s0 = scalar_lea.hbm %s3439_s11, 16 }
  0x86   : > { %p2091_p6 = scmp.ne.s32.totalorder %s3439_s11, %s2090_s0  ;;  %p2097_p1 = scmp.lt.u32.totalorder %s2090_s0, %s3439_s11 }
  0x88   : > { %p2093_p8 = pnand %p2091_p6, %p2749_p7 }
  0x8a   : > { %p2094_p9 = pneg %p2093_p8 }
  0x8c   : > { %p2099_p3 = pnand %p2097_p1, %p2094_p9 }
  0x8e   : > { %2102 = shalt.err (!%p2099_p3)
}
  0x8f   : > { %s2103_s4 = scalar_lea.vmem %s487_s12, 16  ;;  %s2110_s10 = scalar_lea.vmem %s487_s12, 32 }
  0x90   : > { %p2104_p10 = scmp.ne.s32.totalorder %s487_s12, %s2103_s4  ;;  %p2111_p13 = scmp.lt.s32.totalorder %s487_s12, %s487_s12 }
  0x91   : > { %p2112_p0 = scmp.lt.s32.totalorder %s2110_s10, %s2103_s4 }
  0x92   : > { %p2106_p11 = pnand %p2104_p10, %p2749_p7 }
  0x93   : > { %p2113_p2 = por %p2112_p0, %p2111_p13 }
  0x94   : > { %p2107_p12 = pneg %p2106_p11 }
  0x96   : > { %p2114_p4 = pnand %p2113_p2, %p2107_p12 }
  0x98   : > { %2117 = shalt.err (!%p2114_p4)
}
  0x99   : > { %1844 = dma.hbm_to_vmem [thread:$0]  (!%p2733_p5), %s3439_s11, 16, %s487_s12, [#allocation21]  }
  0x9a   : > { %s1610_s26 = sadd.s32 4294967294, %s2562_s23   ;;  %p67_p6 = scmp.ne.s32.totalorder %s2542_s18, %s2538_s17 }
  0x9b   : > { %p3375_p8 = scmp.eq.s32.totalorder %s2562_s23, 0  ;;  %p73_p9 = scmp.ne.s32.totalorder %s2538_s17, %s2534_s16 }
  0x9c   : > { %p390_p1 = scmp.eq.s32.totalorder %s2720_s24, 7  ;;  %p396_p3 = scmp.eq.s32.totalorder %s1610_s26, 7 }
  0x9d   : > { %p69_p10 = por %p3375_p8, %p67_p6  ;;  %p3440_p11 = scmp.eq.s32.totalorder %s2720_s24, 0 }
  0x9e   : > { %p2848_p13 = por %p390_p1, %p67_p6  ;;  %p2852_p0 = por %p396_p3, %p73_p9 }
  0x9f   : > { %p2844_p12 = por %p3440_p11, %p73_p9  ;;  %p3374_p2 = scmp.lt.s32.totalorder %s2562_s23, 8 }
  0xa0   : > { %s3443_s12 = scalar_select %p2848_p13, 1, 0 }
  0xa1   : > { %s3441_s2 = scalar_select %p2844_p12, 1, 0 }
  0xa2   : > { %3444 = sst [smem:[#allocation46_spill]] %s3443_s12  ;;  %s3372_s14 = sand.u32 1, %s2542_s18  }
  0xa3   : > { %3442 = sst [smem:[#allocation45_spill]] %s3441_s2  ;;  %s2860_s8 = sshll.u32 %s3372_s14, 3 }
  0xa4   : > { %s3445_s27 = scalar_select %p2852_p0, 1, 0 }
  0xa5   : > { %s3373_s4 = sshll.u32 %s2558_s22, 7  ;;  %p2865_p4 = pnand %p3374_p2, %p69_p10 }
  0xa6   : > { %3446 = sst [smem:[#allocation47_spill]] %s3445_s27  ;;  %s3380_s13 = sand.u32 1, %s2562_s23  }
  0xa7   : > { %s3447_s10 = scalar_select %p2865_p4, 1, 0 }
  0xa8   : > { %s3448_s1 = sld [smem:[#allocation55_spill]]  ;;  %s541_s14 = scalar_lea.vmem [#allocation5], %s2860_s8 }
  0xa9   : > { %s548_s19 = sshll.u32 %s541_s14, 4  ;;  %s2882_s5 = scalar_lea.sflag [#allocation6], %s3380_s13  ;;  %s2878_s19 = int_to_ptr.vmem [resolvable:$true] %s548_s19 }
  0xaa   : > { %p3387_p9 = pneg %p2865_p4 }
  0xae   : > { %s2875_s0 = scalar_lea.hbm %s3448_s1, %s3373_s4  ;;  %s2123_s4 = scalar_lea.hbm %s3448_s1, 256 }
  0xaf   : > { %s2118_s7 = scalar_lea.hbm %s2875_s0, 128  ;;  %p2124_p10 = scmp.lt.u32.totalorder %s2875_s0, %s3448_s1 }
  0xb0   : > { %p2119_p6 = scmp.ne.s32.totalorder %s2875_s0, %s2118_s7  ;;  %p2125_p11 = scmp.lt.u32.totalorder %s2123_s4, %s2118_s7 }
  0xb1   : > { %p2127_p8 = scmp.lt.u32.totalorder %s2118_s7, %s2875_s0 }
  0xb2   : > { %p2121_p1 = pnand %p3387_p9, %p2119_p6  ;;  %p2126_p2 = por %p2125_p11, %p2124_p10 }
  0xb4   : > { %p2122_p3 = pneg %p2121_p1  ;;  %p2128_p0 = por %p2127_p8, %p2126_p2 }
  0xb6   : > { %p2129_p13 = pnand %p2128_p0, %p2122_p3 }
  0xb8   : > { %2132 = shalt.err (!%p2129_p13)
}
  0xb9   : > { %s2133_s14 = scalar_lea.vmem %s2878_s19, 128  ;;  %s2568_s25 = smov [#allocation5]  }
  0xba   : > { %p2134_p6 = scmp.ne.s32.totalorder %s2878_s19, %s2133_s14  ;;  %s2138_s26 = sshll.u32 %s2568_s25, 4  ;;  %s2139_s26 = int_to_ptr.vmem [resolvable:$false] %s2138_s26 }
  0xbb   : > { %s2140_s9 = scalar_lea.vmem %s2139_s26, 256  ;;  %p2141_p5 = scmp.lt.s32.totalorder %s2878_s19, %s2139_s26 }
  0xbc   : > { %p2136_p1 = pnand %p2134_p6, %p3387_p9  ;;  %p2142_p10 = scmp.lt.s32.totalorder %s2140_s9, %s2133_s14 }
  0xbe   : > { %p2137_p12 = pneg %p2136_p1  ;;  %p2143_p11 = por %p2142_p10, %p2141_p5 }
  0xc0   : > { %p2144_p8 = pnand %p2143_p11, %p2137_p12 }
  0xc2   : > { %2147 = shalt.err (!%p2144_p8)
}
  0xc3   : > { %1857 = dma.hbm_to_vmem [thread:$0]  (!%p2865_p4), %s2875_s0, 128, %s2878_s19, %s2882_s5  }
  0xc4   : > { %s50_s7 = sadd.s32 1, %s2554_s21  ;;  %s112_s11 = sadd.s32 1, %s2530_s15 }
  0xc5   : > { %p51_p5 = scmp.ge.s32.totalorder %s50_s7, 4  ;;  %p119_p12 = scmp.ne.s32.totalorder %s2530_s15, %s2526_s30 }
  0xc6   : > { %p125_p13 = scmp.ne.s32.totalorder %s2526_s30, %s2522_s29  ;;  %s2917_s4 = sand.u32 1, %s2530_s15  }
  0xc7   : > { %s3530_s7 = smov (%p51_p5, %s50_s7), 0  ;;  %s3450_s14 = sadd.s32 1, %s2558_s22 }
  0xc8   : > { %3449 = sst [smem:[#allocation48_spill]] %s3530_s7  ;;  %s3532_s14 = smov (!%p51_p5, %s3450_s14), %s2558_s22 }
  0xc9   : > { %s109_s19 = ssub.s32 %s2554_s21, %s3530_s7  ;;  %p3451_p0 = scmp.eq.s32.totalorder %s2562_s23, 0 }
  0xca   : > { %p55_p3 = scmp.ge.s32.totalorder %s3532_s14, 2  ;;  %p110_p6 = scmp.eq.s32.totalorder %s109_s19, 0 }
  0xcb   : > { %p121_p2 = por %p119_p12, %p3451_p0  ;;  %p3452_p1 = scmp.eq.s32.totalorder %s2720_s24, 0 }
  0xcc   : > { %s1626_s0 = sshll.u32 %s2917_s4, 5  ;;  %s3534_s14 = smov (%p55_p3, %s3532_s14), 0 }
  0xcd   : > { %p2930_p10 = por %p125_p13, %p3452_p1  ;;  %3455 = sst [smem:[#allocation50_spill]] %s3534_s14 }
  0xce   : > { %s2938_s25 = scalar_select %p110_p6, %s2530_s15, %s112_s11  }
  0xcf   : > { %s3453_s29 = scalar_select %p2930_p10, 1, 0 }
  0xd0   : > { %3456 = sst [smem:[#allocation51_spill]] %s2938_s25  ;;  %s57_s26 = ssub.s32 %s2558_s22, %s3534_s14 }
  0xd1   : > { %3454 = sst [smem:[#allocation49_spill]] %s3453_s29  ;;  %p58_p11 = scmp.eq.s32.totalorder %s57_s26, 0 }
  0xd2   : > { %s559_s9 = scalar_lea.vmem [#allocation7], %s1626_s0  ;;  %p3457_p8 = scmp.lt.s32.totalorder %s2562_s23, 8 }
  0xd3   : > { %s566_s13 = sshll.u32 %s559_s9, 4  ;;  %s3459_s1 = sadd.s32 1, %s2542_s18  ;;  %s2942_s13 = int_to_ptr.vmem [resolvable:$true] %s566_s13 }
  0xd4   : > { %p2946_p5 = pnand %p3457_p8, %p121_p2  ;;  %s1629_s27 = sshll.u32 %s2554_s21, 4 }
  0xd5   : > { %s2953_s7 = scalar_select %p58_p11, %s2542_s18, %s3459_s1  }
  0xd6   : > { %s3458_s19 = scalar_select %p2946_p5, 1, 0 }
  0xd7   : > { %3460 = sst [smem:[#allocation52_spill]] %s2953_s7  ;;  %s3461_s3 = sld [smem:[#allocation57_spill]] }
  0xd8   : > { %s579_s0 = scalar_lea.vmem [#allocation8], %s2917_s4  ;;  %s3462_s9 = sand.u32 1, %s2562_s23  }
  0xd9   : > { %s586_s26 = sshll.u32 %s579_s0, 4  ;;  %s2966_s14 = scalar_lea.sflag [#allocation9], %s3462_s9  ;;  %s2962_s26 = int_to_ptr.vmem [resolvable:$true] %s586_s26 }
  0xda   : > { %3463 = sst [smem:[#allocation53_spill]] %s2966_s14  ;;  %p2972_p13 = pneg %p2946_p5 }
  0xdc   : > { %s3464_s1 = scalar_select %p2972_p13, 1, 0 }
  0xdd   : > { %s2959_s11 = scalar_lea.hbm %s3461_s3, %s1629_s27  ;;  %s2153_s27 = scalar_lea.hbm %s3461_s3, 64 }
  0xde   : > { %s2148_s25 = scalar_lea.hbm %s2959_s11, 16  ;;  %p2154_p3 = scmp.lt.u32.totalorder %s2959_s11, %s3461_s3 }
  0xdf   : > { %p2149_p12 = scmp.ne.s32.totalorder %s2959_s11, %s2148_s25  ;;  %p2155_p6 = scmp.lt.u32.totalorder %s2153_s27, %s2148_s25 }
  0xe0   : > { %p2157_p11 = scmp.lt.u32.totalorder %s2148_s25, %s2959_s11 }
  0xe1   : > { %p2151_p0 = pnand %p2972_p13, %p2149_p12  ;;  %p2156_p1 = por %p2155_p6, %p2154_p3 }
  0xe3   : > { %p2152_p2 = pneg %p2151_p0  ;;  %p2158_p8 = por %p2157_p11, %p2156_p1 }
  0xe5   : > { %p2159_p9 = pnand %p2158_p8, %p2152_p2 }
  0xe7   : > { %2162 = shalt.err (!%p2159_p9)
}
  0xe8   : > { %s2163_s9 = scalar_lea.vmem %s2962_s26, 16  ;;  %s2569_s16 = smov [#allocation8]  }
  0xe9   : > { %p2164_p12 = scmp.ne.s32.totalorder %s2962_s26, %s2163_s9  ;;  %s2168_s12 = sshll.u32 %s2569_s16, 4  ;;  %s2169_s12 = int_to_ptr.vmem [resolvable:$false] %s2168_s12 }
  0xea   : > { %s2170_s7 = scalar_lea.vmem %s2169_s12, 32  ;;  %p2171_p4 = scmp.lt.s32.totalorder %s2962_s26, %s2169_s12 }
  0xeb   : > { %p2166_p0 = pnand %p2164_p12, %p2972_p13  ;;  %p2172_p7 = scmp.lt.s32.totalorder %s2170_s7, %s2163_s9 }
  0xed   : > { %p2167_p10 = pneg %p2166_p0  ;;  %p2173_p3 = por %p2172_p7, %p2171_p4 }
  0xef   : > { %p2174_p6 = pnand %p2173_p3, %p2167_p10 }
  0xf1   : > { %2177 = shalt.err (!%p2174_p6)
}
  0xf2   : > { %1863 = dma.hbm_to_vmem [thread:$0]  (!%p2946_p5), %s2959_s11, 16, %s2962_s26, %s2966_s14  }
  0xf3   : > { %s2570_s25 = smov [#allocation13]   ;;  %s2571_s0 = smov [#allocation16]  }
  0xf4   : > { %s427_s27 = sshll.u32 %s2570_s25, 4  ;;  %s448_s3 = sshll.u32 %s2571_s0, 4  ;;  %s428_s27 = int_to_ptr.vmem [resolvable:$true] %s427_s27  ;;  %s449_s3 = int_to_ptr.vmem [resolvable:$true] %s448_s3 }
  0xf5   : > { %s3465_s6 = sld [smem:[#allocation60_spill]]  ;;  %p3466_p4 = scmp.ne.s32.totalorder %s3436_s28, 0 }
  0xfb   : > { %s2178_s12 = scalar_lea.hbm %s3465_s6, 16 }
  0xfc   : > { %p2179_p7 = scmp.ne.s32.totalorder %s3465_s6, %s2178_s12  ;;  %p2185_p2 = scmp.lt.u32.totalorder %s2178_s12, %s3465_s6 }
  0xfe   : > { %p2181_p9 = pnand %p2179_p7, %p3466_p4 }
 0x100   : > { %p2182_p10 = pneg %p2181_p9 }
 0x102   : > { %p2187_p1 = pnand %p2185_p2, %p2182_p10 }
 0x104   : > { %2190 = shalt.err (!%p2187_p1)
}
 0x105   : > { %s2191_s11 = scalar_lea.vmem %s428_s27, 16  ;;  %s2198_s15 = scalar_lea.vmem %s428_s27, 32 }
 0x106   : > { %p2192_p11 = scmp.ne.s32.totalorder %s428_s27, %s2191_s11  ;;  %p2199_p0 = scmp.lt.s32.totalorder %s428_s27, %s428_s27 }
 0x107   : > { %p2200_p3 = scmp.lt.s32.totalorder %s2198_s15, %s2191_s11 }
 0x108   : > { %p2194_p8 = pnand %p2192_p11, %p3466_p4 }
 0x109   : > { %p2201_p6 = por %p2200_p3, %p2199_p0 }
 0x10a   : > { %p2195_p12 = pneg %p2194_p8 }
 0x10c   : > { %p2202_p5 = pnand %p2201_p6, %p2195_p12 }
 0x10e   : > { %2205 = shalt.err (!%p2202_p5)
}
 0x10f   : > { %p3467_p7 = scmp.ne.s32.totalorder %s3434_s20, 0  ;;  %s3468_s0 = sld [smem:[#allocation62_spill]] }
 0x111   : > { %1829 = dma.hbm_to_vmem [thread:$0]  (!%p3467_p7), %s3465_s6, 16, %s428_s27, [#allocation12]  }
 0x115   : > { %s2206_s16 = scalar_lea.hbm %s3468_s0, 512 }
 0x116   : > { %p2207_p9 = scmp.ne.s32.totalorder %s3468_s0, %s2206_s16  ;;  %p2213_p5 = scmp.lt.u32.totalorder %s2206_s16, %s3468_s0 }
 0x118   : > { %p2209_p10 = pnand %p2207_p9, %p3466_p4 }
 0x11a   : > { %p2210_p2 = pneg %p2209_p10 }
 0x11c   : > { %p2215_p1 = pnand %p2213_p5, %p2210_p2 }
 0x11e   : > { %2218 = shalt.err (!%p2215_p1)
}
 0x11f   : > { %s2219_s15 = scalar_lea.vmem %s449_s3, 512  ;;  %p2227_p0 = scmp.lt.s32.totalorder %s449_s3, %s449_s3 }
 0x120   : > { %p2220_p11 = scmp.ne.s32.totalorder %s449_s3, %s2219_s15  ;;  %p2228_p3 = scmp.lt.s32.totalorder %s2219_s15, %s2219_s15 }
 0x122   : > { %p2222_p8 = pnand %p2220_p11, %p3466_p4  ;;  %p2229_p6 = por %p2228_p3, %p2227_p0 }
 0x124   : > { %p2223_p12 = pneg %p2222_p8 }
 0x126   : > { %p2230_p13 = pnand %p2229_p6, %p2223_p12 }
 0x128   : > { %2233 = shalt.err (!%p2230_p13)
}
 0x129   : > { %s2572_s27 = smov 128   ;;  %s2573_s26 = smov 8  }
 0x12a   : > { %1835 = dma.hbm_to_vmem [thread:$0]  (!%p3467_p7), %s3468_s0, 512, %s449_s3, [#allocation15], %s2572_s27, %s2572_s27, %s2573_s26  }
 0x12b   : > { %s2574_s29 = smov [#allocation19]   ;;  %s2575_s12 = smov [#allocation22]  }
 0x12c   : > { %s472_s16 = sshll.u32 %s2574_s29, 4  ;;  %s497_s9 = sshll.u32 %s2575_s12, 4  ;;  %s473_s16 = int_to_ptr.vmem [resolvable:$true] %s472_s16  ;;  %s498_s9 = int_to_ptr.vmem [resolvable:$true] %s497_s9 }
 0x12d   : > { %s3469_s15 = sld [smem:[#allocation64_spill]] }
 0x133   : > { %s3470_s6 = smov %s3469_s15  ;;  %s2234_s30 = scalar_lea.hbm %s3469_s15, 1024 }
 0x134   : > { %p2235_p13 = scmp.ne.s32.totalorder %s3470_s6, %s2234_s30  ;;  %p2241_p2 = scmp.lt.u32.totalorder %s2234_s30, %s3470_s6 }
 0x136   : > { %p2237_p9 = pnand %p2235_p13, %p3466_p4 }
 0x138   : > { %p2238_p10 = pneg %p2237_p9 }
 0x13a   : > { %p2243_p5 = pnand %p2241_p2, %p2238_p10 }
 0x13c   : > { %2246 = shalt.err (!%p2243_p5)
}
 0x13d   : > { %s2247_s3 = scalar_lea.vmem %s473_s16, 1024  ;;  %p2255_p12 = scmp.lt.s32.totalorder %s473_s16, %s473_s16 }
 0x13e   : > { %p2248_p1 = scmp.ne.s32.totalorder %s473_s16, %s2247_s3  ;;  %p2256_p0 = scmp.lt.s32.totalorder %s2247_s3, %s2247_s3 }
 0x140   : > { %p2250_p11 = pnand %p2248_p1, %p3466_p4  ;;  %p2257_p3 = por %p2256_p0, %p2255_p12 }
 0x142   : > { %p2251_p8 = pneg %p2250_p11 }
 0x144   : > { %p2258_p6 = pnand %p2257_p3, %p2251_p8 }
 0x146   : > { %2261 = shalt.err (!%p2258_p6)
}
 0x147   : > { %1841 = dma.hbm_to_vmem [thread:$0]  (!%p3467_p7), %s3470_s6, 1024, %s473_s16, [#allocation18], %s2572_s27, %s2572_s27, %s2573_s26  }
 0x148   : > { %s3471_s14 = sld [smem:[#allocation66_spill]] }
 0x14e   : > { %s2262_s25 = scalar_lea.hbm %s3471_s14, 16 }
 0x14f   : > { %p2263_p13 = scmp.ne.s32.totalorder %s3471_s14, %s2262_s25  ;;  %p2269_p2 = scmp.lt.u32.totalorder %s2262_s25, %s3471_s14 }
 0x151   : > { %p2265_p9 = pnand %p2263_p13, %p3466_p4 }
 0x153   : > { %p2266_p10 = pneg %p2265_p9 }
 0x155   : > { %p2271_p5 = pnand %p2269_p2, %p2266_p10 }
 0x157   : > { %2274 = shalt.err (!%p2271_p5)
}
 0x158   : > { %s2275_s11 = scalar_lea.vmem %s498_s9, 16  ;;  %s2282_s16 = scalar_lea.vmem %s498_s9, 32 }
 0x159   : > { %p2276_p1 = scmp.ne.s32.totalorder %s498_s9, %s2275_s11  ;;  %p2283_p12 = scmp.lt.s32.totalorder %s498_s9, %s498_s9 }
 0x15a   : > { %p2284_p0 = scmp.lt.s32.totalorder %s2282_s16, %s2275_s11 }
 0x15b   : > { %p2278_p11 = pnand %p2276_p1, %p3466_p4 }
 0x15c   : > { %p2285_p3 = por %p2284_p0, %p2283_p12 }
 0x15d   : > { %p2279_p8 = pneg %p2278_p11 }
 0x15f   : > { %p2286_p6 = pnand %p2285_p3, %p2279_p8 }
 0x161   : > { %2289 = shalt.err (!%p2286_p6)
}
 0x162   : > { %1847 = dma.hbm_to_vmem [thread:$0]  (!%p3467_p7), %s3471_s14, 16, %s498_s9, [#allocation21]  }
 0x163   : > { %s2576_s17 = smov [#allocation23]   ;;  %s3472_s25 = sld [smem:[#allocation67_spill]] }
 0x164   : > { %s508_s30 = sshll.u32 %s2576_s17, 4  ;;  %s509_s30 = int_to_ptr.vmem [resolvable:$true] %s508_s30 }
 0x169   : > { %s2290_s23 = scalar_lea.hbm %s3472_s25, 16 }
 0x16a   : > { %p2291_p13 = scmp.ne.s32.totalorder %s3472_s25, %s2290_s23  ;;  %p2297_p2 = scmp.lt.u32.totalorder %s2290_s23, %s3472_s25 }
 0x16c   : > { %p2293_p9 = pnand %p2291_p13, %p3466_p4 }
 0x16e   : > { %p2294_p10 = pneg %p2293_p9 }
 0x170   : > { %p2299_p5 = pnand %p2297_p2, %p2294_p10 }
 0x172   : > { %2302 = shalt.err (!%p2299_p5)
}
 0x173   : > { %s2303_s9 = scalar_lea.vmem %s509_s30, 16  ;;  %s2310_s16 = scalar_lea.vmem %s509_s30, 32 }
 0x174   : > { %p2304_p1 = scmp.ne.s32.totalorder %s509_s30, %s2303_s9  ;;  %p2311_p12 = scmp.lt.s32.totalorder %s509_s30, %s509_s30 }
 0x175   : > { %p2312_p0 = scmp.lt.s32.totalorder %s2310_s16, %s2303_s9 }
 0x176   : > { %p2306_p11 = pnand %p2304_p1, %p3466_p4 }
 0x177   : > { %p2313_p3 = por %p2312_p0, %p2311_p12 }
 0x178   : > { %p2307_p8 = pneg %p2306_p11 }
 0x17a   : > { %p2314_p6 = pnand %p2313_p3, %p2307_p8 }
 0x17c   : > { %2317 = shalt.err (!%p2314_p6)
}
 0x17d   : > { %1850 = dma.hbm_to_vmem [thread:$0]  (!%p3467_p7), %s3472_s25, 16, %s509_s30, [#allocation24]  }
 0x17e   : > { %s3473_s28 = sshll.u32 %s2558_s22, 7  ;;  %s3474_s2 = sld [smem:[#allocation54_spill]] }
 0x17f   : > { %s523_s20 = scalar_lea.vmem [#allocation2], %s2860_s8  ;;  %s1669_s12 = sshll.u32 %s2554_s21, 9 }
 0x180   : > { %s530_s29 = sshll.u32 %s523_s20, 4  ;;  %s3475_s7 = sand.u32 1, %s2542_s18   ;;  %s3100_s29 = int_to_ptr.vmem [resolvable:$true] %s530_s29 }
 0x181   : > { %s520_s11 = scalar_lea.sflag [#allocation3], %s3475_s7  ;;  %p3476_p7 = scmp.ne.s32.totalorder %s3447_s10, 0 }
 0x183   : > { %p3477_p13 = pneg %p3476_p7 }
 0x184   : > { %s3097_s23 = scalar_lea.hbm %s3474_s2, %s3473_s28  ;;  %s2323_s15 = scalar_lea.hbm %s3474_s2, 256 }
 0x185   : > { %s2318_s9 = scalar_lea.hbm %s3097_s23, 128  ;;  %p2324_p2 = scmp.lt.u32.totalorder %s3097_s23, %s3474_s2 }
 0x186   : > { %p2319_p4 = scmp.ne.s32.totalorder %s3097_s23, %s2318_s9  ;;  %p2325_p5 = scmp.lt.u32.totalorder %s2323_s15, %s2318_s9 }
 0x187   : > { %p2327_p11 = scmp.lt.u32.totalorder %s2318_s9, %s3097_s23 }
 0x188   : > { %p2321_p9 = pnand %p2319_p4, %p3477_p13  ;;  %p2326_p1 = por %p2325_p5, %p2324_p2 }
 0x18a   : > { %p2322_p10 = pneg %p2321_p9  ;;  %p2328_p8 = por %p2327_p11, %p2326_p1 }
 0x18c   : > { %p2329_p12 = pnand %p2328_p8, %p2322_p10 }
 0x18e   : > { %2332 = shalt.err (!%p2329_p12)
}
 0x18f   : > { %s2333_s8 = scalar_lea.vmem %s3100_s29, 128  ;;  %p3478_p3 = pmov %p3477_p13 }
 0x190   : > { %p2334_p0 = scmp.ne.s32.totalorder %s3100_s29, %s2333_s8  ;;  %s2577_s17 = smov [#allocation2]  }
 0x191   : > { %s2338_s24 = sshll.u32 %s2577_s17, 4  ;;  %s2339_s24 = int_to_ptr.vmem [resolvable:$false] %s2338_s24 }
 0x192   : > { %p2336_p6 = pnand %p2334_p0, %p3478_p3  ;;  %s2340_s20 = scalar_lea.vmem %s2339_s24, 256 }
 0x193   : > { %p2341_p13 = scmp.lt.s32.totalorder %s3100_s29, %s2339_s24  ;;  %p2342_p9 = scmp.lt.s32.totalorder %s2340_s20, %s2333_s8 }
 0x194   : > { %p2337_p4 = pneg %p2336_p6 }
 0x195   : > { %p2343_p2 = por %p2342_p9, %p2341_p13 }
 0x197   : > { %p2344_p5 = pnand %p2343_p2, %p2337_p4 }
 0x199   : > { %2347 = shalt.err (!%p2344_p5)
}
 0x19a   : > { %1854 = dma.hbm_to_vmem [thread:$0]  (!%p3476_p7), %s3097_s23, 128, %s3100_s29, %s520_s11  }
 0x19b   : > { %s3479_s30 = sld [smem:[#allocation56_spill]]  ;;  %s1630_s15 = sshll.u32 %s2917_s4, 3 }
 0x19c   : > { %p3481_p1 = scmp.ne.s32.totalorder %s3464_s1, 0 }
 0x1a1   : > { %s3480_s3 = smov %s3479_s30  ;;  %s3133_s16 = scalar_lea.hbm %s3479_s30, %s1669_s12 }
 0x1a2   : > { %s2348_s28 = scalar_lea.hbm %s3133_s16, 512  ;;  %s2353_s23 = scalar_lea.hbm %s3480_s3, 2048 }
 0x1a3   : > { %p2349_p10 = scmp.ne.s32.totalorder %s3133_s16, %s2348_s28  ;;  %p2354_p7 = scmp.lt.u32.totalorder %s3133_s16, %s3480_s3 }
 0x1a4   : > { %p2355_p12 = scmp.lt.u32.totalorder %s2353_s23, %s2348_s28  ;;  %p2357_p3 = scmp.lt.u32.totalorder %s2348_s28, %s3133_s16 }
 0x1a5   : > { %p2351_p11 = pnand %p2349_p10, %p3481_p1 }
 0x1a6   : > { %p2356_p0 = por %p2355_p12, %p2354_p7 }
 0x1a7   : > { %p2352_p8 = pneg %p2351_p11 }
 0x1a8   : > { %p2358_p6 = por %p2357_p3, %p2356_p0 }
 0x1aa   : > { %p2359_p4 = pnand %p2358_p6, %p2352_p8 }
 0x1ac   : > { %2362 = shalt.err (!%p2359_p4)
}
 0x1ad   : > { %s2363_s12 = scalar_lea.vmem %s2942_s13, 512  ;;  %s2578_s17 = smov [#allocation7]  }
 0x1ae   : > { %p2364_p13 = scmp.ne.s32.totalorder %s2942_s13, %s2363_s12  ;;  %s2368_s24 = sshll.u32 %s2578_s17, 4  ;;  %s2369_s24 = int_to_ptr.vmem [resolvable:$false] %s2368_s24 }
 0x1af   : > { %s2370_s20 = scalar_lea.vmem %s2369_s24, 1024  ;;  %p2371_p5 = scmp.lt.s32.totalorder %s2942_s13, %s2369_s24 }
 0x1b0   : > { %p2366_p9 = pnand %p2364_p13, %p3481_p1  ;;  %p2372_p10 = scmp.lt.s32.totalorder %s2370_s20, %s2363_s12 }
 0x1b2   : > { %p2367_p2 = pneg %p2366_p9  ;;  %p2373_p11 = por %p2372_p10, %p2371_p5 }
 0x1b4   : > { %p2374_p7 = pnand %p2373_p11, %p2367_p2 }
 0x1b6   : > { %2377 = shalt.err (!%p2374_p7)
}
 0x1b7   : > { %p3482_p8 = scmp.ne.s32.totalorder %s3458_s19, 0  ;;  %s1631_s7 = sshll.u32 %s2554_s21, 7 }
 0x1b8   : > { %s3483_s28 = sld [smem:[#allocation58_spill]]  ;;  %s597_s8 = scalar_lea.vmem [#allocation10], %s1630_s15 }
 0x1b9   : > { %1860 = dma.hbm_to_vmem [thread:$0]  (!%p3482_p8), %s3133_s16, 512, %s2942_s13, %s2882_s5, %s2572_s27, %s2572_s27, %s2573_s26  }
 0x1ba   : > { %s604_s23 = sshll.u32 %s597_s8, 4  ;;  %s605_s23 = int_to_ptr.vmem [resolvable:$true] %s604_s23 }
 0x1be   : > { %s3165_s10 = scalar_lea.hbm %s3483_s28, %s1631_s7  ;;  %s2383_s27 = scalar_lea.hbm %s3483_s28, 512 }
 0x1bf   : > { %s2378_s29 = scalar_lea.hbm %s3165_s10, 128  ;;  %p2384_p6 = scmp.lt.u32.totalorder %s3165_s10, %s3483_s28 }
 0x1c0   : > { %p2379_p12 = scmp.ne.s32.totalorder %s3165_s10, %s2378_s29  ;;  %p2385_p4 = scmp.lt.u32.totalorder %s2383_s27, %s2378_s29 }
 0x1c1   : > { %p2387_p9 = scmp.lt.u32.totalorder %s2378_s29, %s3165_s10 }
 0x1c2   : > { %p2381_p0 = pnand %p2379_p12, %p3481_p1  ;;  %p2386_p13 = por %p2385_p4, %p2384_p6 }
 0x1c4   : > { %p2382_p3 = pneg %p2381_p0  ;;  %p2388_p2 = por %p2387_p9, %p2386_p13 }
 0x1c6   : > { %p2389_p5 = pnand %p2388_p2, %p2382_p3 }
 0x1c8   : > { %2392 = shalt.err (!%p2389_p5)
}
 0x1c9   : > { %s2393_s4 = scalar_lea.vmem %s605_s23, 128  ;;  %s2579_s15 = smov [#allocation10]  }
 0x1ca   : > { %p2394_p10 = scmp.ne.s32.totalorder %s605_s23, %s2393_s4  ;;  %s2398_s11 = sshll.u32 %s2579_s15, 4  ;;  %s2399_s11 = int_to_ptr.vmem [resolvable:$false] %s2398_s11 }
 0x1cb   : > { %s2400_s12 = scalar_lea.vmem %s2399_s11, 256  ;;  %p2401_p12 = scmp.lt.s32.totalorder %s605_s23, %s2399_s11 }
 0x1cc   : > { %p2396_p11 = pnand %p2394_p10, %p3481_p1  ;;  %p2402_p0 = scmp.lt.s32.totalorder %s2400_s12, %s2393_s4 }
 0x1ce   : > { %p2397_p7 = pneg %p2396_p11  ;;  %p2403_p8 = por %p2402_p0, %p2401_p12 }
 0x1d0   : > { %p2404_p4 = pnand %p2403_p8, %p2397_p7 }
 0x1d2   : > { %2407 = shalt.err (!%p2404_p4)
}
 0x1d3   : > { %p3484_p6 = scmp.ne.s32.totalorder %s3458_s19, 0  ;;  %s3485_s17 = sld [smem:[#allocation53_spill]] }
 0x1d4   : > { %s3486_s24 = sld [smem:[#allocation44_spill]] }
 0x1d9   : > { %1866 = dma.hbm_to_vmem [thread:$0]  (!%p3484_p6), %s3165_s10, 128, %s605_s23, %s3485_s17  }
 0x1da   : > { %p3487_p3 = scmp.ne.s32.totalorder %s3486_s24, 0 }
 0x1db   : > { %s3488_s1 = sld [smem:[#allocation39_spill]] (!%p3487_p3)  ;;  %s3489_s20 = sld [smem:[#allocation45_spill]] (!%p3487_p3) }
 0x1dc   : > { %613 = sbr.rel (%p3487_p3) target bundleno = 2776 (0xad8), region = 76 }
 0x1e1   : > { %s3190_s7 = sand.u32 (!%p3487_p3), 1, %s3488_s1   ;;  %p3490_p1 = scmp.ne.s32.totalorder (!%p3487_p3), %s3489_s20, 0 }
 0x1e2   : > { %s3193_s9 = sshll.u32 (!%p3487_p3), %s3190_s7, 3  ;;  %s616_s30 = scalar_lea.sflag (!%p3487_p3), [#allocation3], %s3190_s7 }
 0x1e3   : > { %s619_s8 = scalar_lea.vmem [#allocation2], %s3193_s9 }
 0x1e4   : > { %2481 = dma.done.wait (%p3490_p1), %s616_s30, 128  }
 0x1e5   : > { %2483 = vsyncadd (%p3490_p1), %s616_s30, 4294967168  ;;  %s3491_s19 = sld [smem:[#allocation43_spill]]  ;;  %s628_s29 = scalar_lea.vmem [#allocation5], %s3193_s9 }
 0x1eb   : > { %s624_s10 = sand.u32 1, %s3491_s19  }
 0x1ec   : > { %s625_s23 = scalar_lea.sflag [#allocation6], %s624_s10 }
 0x1ed   : > { %2485 = dma.done.wait (%p3490_p1), %s625_s23, 128  }
 0x1ee   : > { %2487 = vsyncadd (%p3490_p1), %s625_s23, 4294967168  ;;  %s3492_s5 = sld [smem:[#allocation36_spill]] }
 0x1ef   : > { %s3493_s13 = sld [smem:[#allocation49_spill]] }
 0x1f4   : > { %s3208_s27 = sand.u32 1, %s3492_s5  }
 0x1f5   : > { %s1635_s26 = sshll.u32 %s3208_s27, 5  ;;  %p3494_p8 = scmp.ne.s32.totalorder %s3493_s13, 0 }
 0x1f6   : > { %s637_s16 = scalar_lea.vmem [#allocation7], %s1635_s26 }
 0x1f7   : > { %2489 = dma.done.wait (%p3494_p8), %s625_s23, 512  }
 0x1f8   : > { %2491 = vsyncadd (%p3494_p8), %s625_s23, 4294966784  ;;  %s643_s4 = scalar_lea.sflag [#allocation9], %s624_s10  ;;  %s645_s15 = scalar_lea.vmem [#allocation8], %s3208_s27 }
 0x1f9   : > { %2493 = dma.done.wait (%p3494_p8), %s643_s4, 144  }
 0x1fa   : > { %2495 = vsyncadd (%p3494_p8), %s643_s4, 4294967152  ;;  %s1636_s11 = sshll.u32 %s3208_s27, 3  ;;  %p3495_p13 = scmp.eq.s32.totalorder %s3491_s19, 0 }
 0x1fb   : > { %s3221_s12 = scalar_lea.vmem [#allocation10], %s1636_s11 }
 0x1fc   : > { %2497 = dma.done.wait (%p3495_p13), [#allocation12], 32   ;;  %p3496_p9 = pmov %p3495_p13 }
 0x1fe   : > { %2499 = vsyncadd (%p3496_p9), [#allocation12], 4294967264  ;;  %p3497_p2 = pmov %p3496_p9 }
 0x200   : > { %2501 = dma.done.wait (%p3497_p2), [#allocation15], 528   ;;  %p3498_p5 = pmov %p3497_p2 }
 0x201   : > { %p3499_p10 = pmov %p3497_p2 }
 0x202   : > { %2503 = vsyncadd (%p3498_p5), [#allocation15], 4294966768 }
 0x203   : > { %2505 = dma.done.wait (%p3499_p10), [#allocation18], 1040   ;;  %p3500_p11 = pmov %p3497_p2 }
 0x204   : > { %p3501_p7 = pmov %p3497_p2 }
 0x205   : > { %2507 = vsyncadd (%p3500_p11), [#allocation18], 4294966256 }
 0x206   : > { %2509 = dma.done.wait (%p3501_p7), [#allocation21], 32   ;;  %p3502_p12 = pmov %p3497_p2 }
 0x207   : > { %p3503_p0 = pmov %p3497_p2 }
 0x208   : > { %2511 = vsyncadd (%p3502_p12), [#allocation21], 4294967264 }
 0x209   : > { %2513 = dma.done.wait (%p3503_p0), [#allocation24], 16   ;;  %p3504_p4 = pmov %p3503_p0 }
 0x20a   : > { %v2580_v0 = vmov 0.0|0.0   ;;  %vm2581_vm0 = vmmov 0   ;;  %v2582_v1 = vmov 0.0   ;;  %v755_v2 = vld [vmem:[%s637_s16] sm:$0xff]  ;;  %v756_v3 = vld [vmem:[%s637_s16 + $0x8] sm:$0xff]  ;;  %v757_v4 = vld [vmem:[%s637_s16 + $0x10] sm:$0xff] }
 0x20b   : > { %2515 = vsyncadd (%p3504_p4), [#allocation24], 4294967280  ;;  %1751 = vmatprep.subr.bf16.mxu0 %v2580_v0  ;;  %1703 = vmatprep.mubr.msk.f32.mxu0 %vm2581_vm0, %v2582_v1  ;;  %v1752_v5 = vpack.c.bf16 %v756_v3, %v755_v2  ;;  %v758_v6 = vld [vmem:[%s637_s16 + $0x18] sm:$0xff]  ;;  %v3247_v8 = vld [vmem:[%s619_s8] sm:$0xff]  ;;  %vm766_vm1 = vcmask 261120   ;;  %s2583_s17 = smov 112  }
 0x20c   : > { %1706 = vmatprep.subr.mxu1 %v2582_v1  ;;  %1708 = vmatprep.mubr.msk.f32.mxu1 %vm2581_vm0, %v2582_v1  ;;  %v1755_v7 = vpack.c.bf16 %v758_v6, %v757_v4  ;;  %v1647_v9 = vld [vmem:[%s645_s15] ss:$0 sm:$0xff]  ;;  %s2584_s24 = smov 120   ;;  %vm844_vm2 = vcmask 64512   ;;  %v920_v16 = vld [vmem:[%s628_s29] sm:$0xff]  ;;  %v1010_v27 = vld [vmem:[%s3221_s12] sm:$0xff] }
 0x20d   : > { %1753 = vmatpush3.bf16.msra.mxu0 %v1752_v5  ;;  %v921_v17 = vmul.f32 1000000.0, %v920_v16  ;;  %s3265_s1 = scalar_lea.vmem [#allocation25], %s3193_s9  ;;  %s3505_s20 = sld [smem:[#allocation40_spill]] }
 0x20e   : > { %1754 = vmatprep.subr.bf16.mxu0 %v2580_v0 }
 0x211   : > { %1756 = vmatpush3.bf16.msra.mxu0 %v1755_v7 }
 0x212   : > { %1716 = vmatprep.subr.mxu0 %v2582_v1 }
 0x213   : > { %p1653_p6 = scmp.ne.s32.totalorder %s3505_s20, 0 }
 0x214   : > { %1704 = vmatmul.mubr.msk.f32.vlgmr.msra.gmra.mrb[0].mxu0 %vm766_vm1, %v3247_v8 }
 0x215   : > { %1718 = vmatprep.mubr.msk.f32.mxu0 %vm2581_vm0, %v2582_v1  ;;  %1717 = vmatpush3.msra.mxu0 %v1010_v27 }
 0x2e7   : > { %v836_v10 = vpop.f32.mrb[0].mxu0 }
 0x2e8   : > { %v837_v11 = vadd.f32 %v1647_v9, %v836_v10  ;;  %v1705_v12 = vpop.f32.mrb[1].mxu0 }
 0x2ea   : > { %932 = vrot.lane.b32.xlu1 %v837_v11, %s2583_s17  ;;  %842 = vrot.lane.b32.xlu0 %v837_v11, %s2584_s24  ;;  %v840_v14 = vmul.f32 0.35355338, %v837_v11 }
 0x35c   : > { %v843_v13 = vpop.permute.xlu0 %842  ;;  %v933_v15 = vpop.permute.xlu1 %932 }
 0x35d   : > { %1707 = vmatpush3.xpose.msk.msra.mxu1 %vm844_vm2, %v843_v13 }
 0x35e   : > { %1711 = vmatprep.subr.mxu1 %v2582_v1 }
 0x360   : > { %1709 = vmatmul.mubr.msk.f32.vlgmr.msra.gmra.mrb[0].mxu1 %vm844_vm2, %v840_v14 }
 0x361   : > { %1712 = vmatpush3.msra.mxu1 %v933_v15  ;;  %1713 = vmatprep.mubr.msk.f32.mxu1 %vm2581_vm0, %v2582_v1 }
 0x433   : > { %v916_v18 = vpop.f32.mrb[0].mxu1 }
 0x434   : > { %v922_v19 = vsub.f32 %v916_v18, %v921_v17  ;;  %v1710_v20 = vpop.f32.mrb[1].mxu1 }
 0x436   : > { %v923_v21 = vsel %vm844_vm2, %v922_v19, -inf }
 0x437   : > { %924 = vmax.xlane.f32.xlu0 %v923_v21 }
 0x4c4   : > { %v925_v22 = vpop.xlane.xlu0 %924 }
 0x4c5   : > { %v926_v23 = vsub.f32 %v922_v19, %v925_v22 }
 0x4c7   : > { %v927_v24 = vmul.f32 1.442695, %v926_v23 }
 0x4c9   : > { %1998 = vpow2.f32 %v927_v24 }
 0x4d3   : > { %v1999_v25 = vpop.eup %1998 }
 0x4d4   : > { %1714 = vmatmul.mubr.msk.f32.vlgmr.msra.gmra.mrb[2].mxu1 %vm844_vm2, %v1999_v25  ;;  %v929_v26 = vsel %vm844_vm2, %v1999_v25, 0.0 }
 0x4d5   : > { %930 = vadd.xlane.f32.xlu1 %v929_v26 }
 0x562   : > { %v931_v28 = vpop.xlane.xlu1 %930 }
 0x563   : > { %2000 = vrcp.f32 %v931_v28 }
 0x56d   : > { %v2001_v29 = vpop.eup %2000 }
 0x5a7   : > { %v1004_v30 = vpop.f32.mrb[2].mxu1 }
 0x5a8   : > { %v1009_v31 = vmul.f32 %v2001_v29, %v1004_v30  ;;  %v1715_v32 = vpop.f32.mrb[3].mxu1 }
 0x5aa   : > { %1719 = vmatmul.mubr.msk.f32.vlgmr.msra.gmra.mrb[2].mxu0 %vm844_vm2, %v1009_v31 }
 0x678   : > { %1087 = sbr.rel (%p1653_p6) target bundleno = 1663 (0x67f), region = 136 }
 0x67d   : > { %v1080_v33 = vpop.f32.mrb[2].mxu0 }
 0x67e   : > { %v1720_v34 = vpop.f32.mrb[3].mxu0  ;;  %1088 = vst.msk [vmem:[%s3265_s1] sm:$0xff] (!%p1653_p6), %vm766_vm1, %v1080_v33 }
 0x67f PF: > { %s3506_s30 = sld [smem:[#allocation40_spill]] }
 0x685   : > { %p1654_p3 = scmp.le.s32.totalorder %s3506_s30, 0 }
 0x686   : > { %v1093_v35 = vld [vmem:[%s3265_s1] sm:$0xff] (!%p1654_p3) }
 0x687   : > { %1092 = sbr.rel (%p1654_p3) target bundleno = 1678 (0x68e), region = 140  ;;  %v1094_v36 = vadd.f32 (!%p1654_p3), %v1093_v35, %v1080_v33 }
 0x689   : > { %1095 = vst.msk [vmem:[%s3265_s1] sm:$0xff] (!%p1654_p3), %vm766_vm1, %v1094_v36 }
 0x68e PF: > { %s3507_s8 = sld [smem:[#allocation40_spill]] }
 0x694   : > { %p1655_p1 = scmp.ne.s32.totalorder %s3507_s8, 3 }
 0x695   : > { %v1100_v37 = vld [vmem:[%s3265_s1] sm:$0xff] (!%p1655_p1)  ;;  %v1656_v38 = vld [vmem:[#allocation11] ss:$0 sm:$0xff] (!%p1655_p1)  ;;  %v1140_v47 = vld [vmem:[#allocation16] sm:$0xff] (!%p1655_p1)  ;;  %v2585_v50 = vmov (!%p1655_p1), 0.0|0.0   ;;  %vm2586_vm3 = vmmov (!%p1655_p1), 0  }
 0x696   : > { %1099 = sbr.rel (%p1655_p1) target bundleno = 2749 (0xabd), region = 144  ;;  %v1108_v39 = vadd.f32 (!%p1655_p1), %v1656_v38, %v1100_v37  ;;  %v1141_v48 = vld [vmem:[#allocation16 + $0x8] sm:$0xff] (!%p1655_p1)  ;;  %v1142_v49 = vld [vmem:[#allocation16 + $0x10] sm:$0xff] (!%p1655_p1)  ;;  %1757 = vmatprep.subr.bf16.mxu0 (!%p1655_p1), %v2585_v50  ;;  %v1143_v52 = vld [vmem:[#allocation16 + $0x18] sm:$0xff] (!%p1655_p1)  ;;  %v2587_v53 = vmov (!%p1655_p1), 0.0   ;;  %1763 = vmatprep.subr.bf16.mxu1 (!%p1655_p1), %v2585_v50  ;;  %vm1240_vm4 = vcmask (!%p1655_p1), 523264  }
 0x697   : > { %v1758_v51 = vpack.c.bf16 (!%p1655_p1), %v1141_v48, %v1140_v47  ;;  %1729 = vmatprep.mubr.msk.f32.mxu0 (!%p1655_p1), %vm2586_vm3, %v2587_v53  ;;  %1748 = vmatprep.mubr.msk.f32.mxu1 (!%p1655_p1), %vm2586_vm3, %v2587_v53  ;;  %v1761_v54 = vpack.c.bf16 (!%p1655_p1), %v1143_v52, %v1142_v49  ;;  %v1225_v55 = vld [vmem:[#allocation19] sm:$0xff] (!%p1655_p1)  ;;  %v1226_v56 = vld [vmem:[#allocation19 + $0x8] sm:$0xff] (!%p1655_p1)  ;;  %v1227_v57 = vld [vmem:[#allocation19 + $0x10] sm:$0xff] (!%p1655_p1) }
 0x698   : > { %v1109_v40 = vadd.f32 (!%p1655_p1), %v1108_v39, %v3247_v8  ;;  %v1764_v58 = vpack.c.bf16 (!%p1655_p1), %v1226_v56, %v1225_v55  ;;  %v1228_v59 = vld [vmem:[#allocation19 + $0x18] sm:$0xff] (!%p1655_p1)  ;;  %v1229_v61 = vld [vmem:[#allocation19 + $0x20] sm:$0xff] (!%p1655_p1)  ;;  %v1230_v62 = vld [vmem:[#allocation19 + $0x28] sm:$0xff] (!%p1655_p1) }
 0x699   : > { %1759 = vmatpush3.bf16.msra.mxu0 (!%p1655_p1), %v1758_v51  ;;  %v1767_v60 = vpack.c.bf16 (!%p1655_p1), %v1228_v59, %v1227_v57  ;;  %v1770_v63 = vpack.c.bf16 (!%p1655_p1), %v1230_v62, %v1229_v61  ;;  %v1657_v4 = vld [vmem:[#allocation13] ss:$0 sm:$0xff] (!%p1655_p1)  ;;  %v1658_v6 = vld [vmem:[#allocation14] ss:$0 sm:$0xff] (!%p1655_p1)  ;;  %v1231_v9 = vld [vmem:[#allocation19 + $0x30] sm:$0xff] (!%p1655_p1) }
 0x69a   : > { %v1110_v41 = vsel (!%p1655_p1), %vm766_vm1, %v1109_v40, 0.0  ;;  %1760 = vmatprep.subr.bf16.mxu0 (!%p1655_p1), %v2585_v50  ;;  %1765 = vmatpush3.bf16.msra.mxu1 (!%p1655_p1), %v1764_v58  ;;  %v1232_v10 = vld [vmem:[#allocation19 + $0x38] sm:$0xff] (!%p1655_p1)  ;;  %v1661_v17 = vld [vmem:[#allocation20] ss:$0 sm:$0xff] (!%p1655_p1)  ;;  %v1663_v32 = vld [vmem:[#allocation22] ss:$0 sm:$0xff] (!%p1655_p1) }
 0x69b   : > { %1111 = vadd.xlane.f32.xlu0 (!%p1655_p1), %v1110_v41  ;;  %1766 = vmatprep.subr.bf16.mxu1 (!%p1655_p1), %v2585_v50  ;;  %v1773_v11 = vpack.c.bf16 (!%p1655_p1), %v1232_v10, %v1231_v9  ;;  %v1659_v12 = vld [vmem:[#allocation17] ss:$0 sm:$0xff] (!%p1655_p1)  ;;  %v1664_v34 = vld [vmem:[#allocation23] ss:$0 sm:$0xff] (!%p1655_p1) }
 0x69d   : > { %1762 = vmatpush3.bf16.msra.mxu0 %v1761_v54 }
 0x69e   : > { %1768 = vmatpush3.bf16.msra.mxu1 %v1767_v60 }
 0x69f   : > { %1769 = vmatprep.subr.bf16.mxu1 %v2585_v50 }
 0x6a2   : > { %1771 = vmatpush3.bf16.msra.mxu1 %v1770_v63 }
 0x6a3   : > { %1772 = vmatprep.subr.bf16.mxu1 %v2585_v50 }
 0x6a6   : > { %1774 = vmatpush3.bf16.msra.mxu1 %v1773_v11 }
 0x728   : > { %v1112_v42 = vpop.xlane.xlu0 %1111 }
 0x729   : > { %v1114_v43 = vmul.f32 0.03125, %v1112_v42 }
 0x72b   : > { %v1115_v44 = vsub.f32 %v1109_v40, %v1114_v43 }
 0x72d   : > { %v1116_v45 = vmul.f32 %v1115_v44, %v1115_v44 }
 0x72f   : > { %v1117_v46 = vsel %vm766_vm1, %v1116_v45, 0.0 }
 0x730   : > { %1118 = vadd.xlane.f32.xlu0 %v1117_v46 }
 0x7bd   : > { %v1119_v0 = vpop.xlane.xlu0 %1118 }
 0x7be   : > { %v1120_v1 = vmul.f32 0.03125, %v1119_v0 }
 0x7c0   : > { %v1121_v2 = vadd.f32 1e-06, %v1120_v1 }
 0x7c2   : > { %2002 = vrsqrt.f32 %v1121_v2 }
 0x7cc   : > { %v2003_v3 = vpop.eup %2002 }
 0x7cd   : > { %v1123_v5 = vmul.f32 %v2003_v3, %v1115_v44 }
 0x7cf   : > { %v1131_v7 = vmul.f32 %v1657_v4, %v1123_v5 }
 0x7d1   : > { %v1139_v8 = vadd.f32 %v1658_v6, %v1131_v7 }
 0x7d3   : > { %1730 = vmatmul.mubr.msk.f32.vlgmr.msra.gmra.mrb[0].mxu0 %vm766_vm1, %v1139_v8 }
 0x8a6   : > { %v1220_v13 = vpop.f32.mrb[0].mxu0 }
 0x8a7   : > { %v1221_v14 = vadd.f32 %v1659_v12, %v1220_v13  ;;  %v1731_v15 = vpop.f32.mrb[1].mxu0 }
 0x8a9   : > { %v1224_v16 = vmax.f32 %v1221_v14, 0.0 }
 0x8ab   : > { %1749 = vmatmul.mubr.msk.f32.vlgmr.msra.gmra.mrb[0].mxu1 %vm1240_vm4, %v1224_v16 }
 0x97e   : > { %v1310_v18 = vpop.f32.mrb[0].mxu1 }
 0x97f   : > { %v1311_v19 = vadd.f32 %v1661_v17, %v1310_v18  ;;  %v1750_v20 = vpop.f32.mrb[1].mxu1 }
 0x981   : > { %v1314_v21 = vadd.f32 %v1311_v19, %v1139_v8 }
 0x983   : > { %v1315_v22 = vsel %vm766_vm1, %v1314_v21, 0.0 }
 0x984   : > { %1316 = vadd.xlane.f32.xlu1 %v1315_v22 }
 0xa11   : > { %v1317_v23 = vpop.xlane.xlu1 %1316 }
 0xa12   : > { %v1318_v24 = vmul.f32 0.03125, %v1317_v23 }
 0xa14   : > { %v1319_v25 = vsub.f32 %v1314_v21, %v1318_v24 }
 0xa16   : > { %v1320_v26 = vmul.f32 %v1319_v25, %v1319_v25 }
 0xa18   : > { %v1321_v27 = vsel %vm766_vm1, %v1320_v26, 0.0 }
 0xa19   : > { %1322 = vadd.xlane.f32.xlu1 %v1321_v27 }
 0xaa6   : > { %v1323_v28 = vpop.xlane.xlu1 %1322 }
 0xaa7   : > { %v1324_v29 = vmul.f32 0.03125, %v1323_v28 }
 0xaa9   : > { %v1325_v30 = vadd.f32 1e-06, %v1324_v29 }
 0xaab   : > { %2004 = vrsqrt.f32 %v1325_v30 }
 0xab5   : > { %v2005_v31 = vpop.eup %2004 }
 0xab6   : > { %v1327_v33 = vmul.f32 %v2005_v31, %v1319_v25 }
 0xab8   : > { %v1335_v35 = vmul.f32 %v1663_v32, %v1327_v33 }
 0xaba   : > { %v1343_v36 = vadd.f32 %v1664_v34, %v1335_v35 }
 0xabc   : > { %1344 = vst.msk [vmem:[%s3265_s1] sm:$0xff] %vm766_vm1, %v1343_v36 }
 0xabd PF: > { %s3508_s9 = sld [smem:[#allocation41_spill]]  ;;  %s3509_s19 = sld [smem:[#allocation46_spill]] }
 0xabe   : > { %s3510_s5 = sld [smem:[#allocation68_spill]]  ;;  %s1359_s27 = sshll.u32 %s3265_s1, 4  ;;  %s1360_s27 = int_to_ptr.vmem [resolvable:$true] %s1359_s27 }
 0xabf   : > { %s1346_s26 = scalar_lea.sflag [#allocation4], %s3190_s7  ;;  %s2408_s16 = scalar_lea.vmem %s1360_s27, 128 }
 0xac0   : > { %p2409_p8 = scmp.ne.s32.totalorder %s1360_s27, %s2408_s16  ;;  %s2588_s4 = smov [#allocation25]  }
 0xac1   : > { %s2412_s15 = sshll.u32 %s2588_s4, 4  ;;  %s2413_s15 = int_to_ptr.vmem [resolvable:$false] %s2412_s15 }
 0xac2   : > { %s2414_s11 = scalar_lea.vmem %s2413_s15, 256  ;;  %p2415_p5 = scmp.lt.s32.totalorder %s1360_s27, %s2413_s15 }
 0xac3   : > { %s1666_s10 = sshll.u32 %s3508_s9, 7  ;;  %p3511_p13 = scmp.ne.s32.totalorder %s3509_s19, 0 }
 0xac4   : > { %s3288_s13 = scalar_lea.hbm %s3510_s5, %s1666_s10  ;;  %p2416_p10 = scmp.lt.s32.totalorder %s2414_s11, %s2408_s16 }
 0xac5   : > { %p2410_p9 = pnand %p2409_p8, %p3511_p13 }
 0xac6   : > { %p2417_p11 = por %p2416_p10, %p2415_p5 }
 0xac7   : > { %p2411_p2 = pneg %p2410_p9 }
 0xac9   : > { %p2418_p7 = pnand %p2417_p11, %p2411_p2 }
 0xacb   : > { %2421 = shalt.err (!%p2418_p7)
}
 0xacc   : > { %s2422_s7 = scalar_lea.hbm %s3288_s13, 128  ;;  %s2426_s24 = scalar_lea.hbm %s3510_s5, 256 }
 0xacd   : > { %p2423_p12 = scmp.ne.s32.totalorder %s3288_s13, %s2422_s7  ;;  %p2427_p6 = scmp.lt.u32.totalorder %s3288_s13, %s3510_s5 }
 0xace   : > { %p2428_p3 = scmp.lt.u32.totalorder %s2426_s24, %s2422_s7  ;;  %p2430_p8 = scmp.lt.u32.totalorder %s2422_s7, %s3288_s13 }
 0xacf   : > { %p2424_p0 = pnand %p2423_p12, %p3511_p13 }
 0xad0   : > { %p2429_p1 = por %p2428_p3, %p2427_p6 }
 0xad1   : > { %p2425_p4 = pneg %p2424_p0 }
 0xad2   : > { %p2431_p9 = por %p2430_p8, %p2429_p1 }
 0xad4   : > { %p2432_p2 = pnand %p2431_p9, %p2425_p4 }
 0xad6   : > { %2435 = shalt.err (!%p2432_p2)
}
 0xad7   : > { %1821 = dma.vmem_to_hbm [thread:$0]  (%p3511_p13), %s1360_s27, 128, %s3288_s13, %s1346_s26  }
 0xad8 PF: > { %s3512_s30 = sld [smem:[#allocation42_spill]]  ;;  %s3513_s8 = sld [smem:[#allocation38_spill]] }
 0xad9   : > { %s3514_s9 = sld [smem:[#allocation47_spill]] }
 0xade   : > { %p1890_p5 = scmp.ge.s32.totalorder %s3512_s30, 2  ;;  %s1371_s10 = sand.u32 1, %s3513_s8  }
 0xadf   : > { %p3515_p10 = scmp.ne.s32.totalorder %s3514_s9, 0  ;;  %s1372_s23 = scalar_lea.sflag [#allocation4], %s1371_s10 }
 0xae1   : > { %p1868_p11 = pnand %p1890_p5, %p3515_p10 }
 0xae3   : > { %2517 = dma.done.wait (!%p1868_p11), %s1372_s23, 128  }
 0xae4   : > { %2519 = vsyncadd (!%p1868_p11), %s1372_s23, 4294967168  ;;  %s41_s23 = sadd.s32 1, %s3512_s30   ;;  %s3516_s29 = sld [smem:[#allocation36_spill]] }
 0xae5   : > { %p38_p7 = scmp.ge.s32.totalorder %s41_s23, 10   ;;  %s3517_s30 = sld [smem:[#allocation37_spill]] }
 0xae6   : > { %s3518_s15 = sld [smem:[#allocation51_spill]]  ;;  %s3519_s16 = sld [smem:[#allocation39_spill]] }
 0xae7   : > { %s3520_s19 = sld [smem:[#allocation52_spill]]  ;;  %s3521_s13 = sld [smem:[#allocation48_spill]] }
 0xae8   : > { %s3522_s27 = sld [smem:[#allocation50_spill]]  ;;  %s3523_s17 = smov %s2542_s18 }
 0xae9   : > { %s3526_s20 = smov %s2558_s22  ;;  %40 = sbr.rel (!%p38_p7) target bundleno = 34 (0x22), region = 217 }
 0xaed   : > { %s3524_s18 = smov %s3520_s19  ;;  %s3525_s19 = smov %s2554_s21 }
 0xaee   : > { %s3527_s21 = smov %s3521_s13  ;;  %s3528_s22 = smov %s3522_s27 }
 0xaf0   :  { %1377 = vsyncpa [#allocation3], 1 }
 0xaf1   :  { %1379 = vsyncpa [#allocation3 + $0x1], 1 }
 0xaf2   :  { %1380 = vsyncpa [#allocation6], 1 }
 0xaf3   :  { %1382 = vsyncpa [#allocation6 + $0x1], 1 }
 0xaf4   :  { %1383 = vsyncpa [#allocation9], 1 }
 0xaf5   :  { %1385 = vsyncpa [#allocation9 + $0x1], 1 }
 0xaf6   :  { %1386 = vsyncpa [#allocation12], 1 }
 0xaf7   :  { %1387 = vsyncpa [#allocation15], 1 }
 0xaf8   :  { %1388 = vsyncpa [#allocation18], 1 }
 0xaf9   :  { %1389 = vsyncpa [#allocation21], 1 }
 0xafa   :  { %1390 = vsyncpa [#allocation24], 1 }
 0xafb   :  { %1391 = vsyncpa [#allocation4], 1 }
 0xafc   :  { %1393 = vsyncpa [#allocation4 + $0x1], 1 }

// kernel: tpu_custom_call.1
= control target key start
LH: loop header
LB: loop body
LE: loop exit
PB: predicated region body
PF: predicated region fallthrough
CT: control target
= control target key end

     0   :  { %s3346_s0 = inlined_call_operand.hbm [shape: f32[2,8,32], index: 0, kind: input, shape index: {}]   ;;  %s3347_s1 = inlined_call_operand.hbm [shape: f32[2,8,8], index: 1, kind: input, shape index: {}]   ;;  %s3348_s2 = inlined_call_operand.hbm [shape: f32[4,32,24], index: 2, kind: input, shape index: {}]   ;;  %s3349_s3 = inlined_call_operand.hbm [shape: f32[4,1,24], index: 3, kind: input, shape index: {}]   ;;  %s3350_s4 = inlined_call_operand.hbm [shape: f32[32,32], index: 4, kind: input, shape index: {}]   ;;  %s3351_s5 = inlined_call_operand.hbm [shape: f32[1,32], index: 5, kind: input, shape index: {}]   ;;  %s3352_s6 = inlined_call_operand.hbm [shape: f32[1,32], index: 6, kind: input, shape index: {}]   ;;  %s3353_s7 = inlined_call_operand.hbm [shape: f32[1,32], index: 7, kind: input, shape index: {}]   ;;  %s3354_s8 = inlined_call_operand.hbm [shape: f32[32,64], index: 8, kind: input, shape index: {}]   ;;  %s3355_s9 = inlined_call_operand.hbm [shape: f32[1,64], index: 9, kind: input, shape index: {}]   ;;  %s3356_s10 = inlined_call_operand.hbm [shape: f32[64,32], index: 10, kind: input, shape index: {}]   ;;  %s3357_s11 = inlined_call_operand.hbm [shape: f32[1,32], index: 11, kind: input, shape index: {}]   ;;  %s3358_s12 = inlined_call_operand.hbm [shape: f32[1,32], index: 12, kind: input, shape index: {}]   ;;  %s3359_s13 = inlined_call_operand.hbm [shape: f32[1,32], index: 13, kind: input, shape index: {}]   ;;  %s3360_s14 = inlined_call_operand.hbm [shape: f32[2,8,32], index: 14, kind: output, shape index: {}]  }
   0x1   :  { %3409 = sst [smem:[#allocation54_spill]] %s3346_s0 }
   0x2   :  { %3410 = sst [smem:[#allocation55_spill]] %s3347_s1 }
   0x3   :  { %3411 = sst [smem:[#allocation56_spill]] %s3348_s2 }
   0x4   :  { %3412 = sst [smem:[#allocation57_spill]] %s3349_s3 }
   0x5   :  { %3413 = sst [smem:[#allocation58_spill]] %s3350_s4 }
   0x6   :  { %3414 = sst [smem:[#allocation59_spill]] %s3351_s5 }
   0x7   :  { %3415 = sst [smem:[#allocation60_spill]] %s3352_s6 }
   0x8   :  { %3416 = sst [smem:[#allocation61_spill]] %s3353_s7 }
   0x9   :  { %3417 = sst [smem:[#allocation62_spill]] %s3354_s8 }
   0xa   :  { %3418 = sst [smem:[#allocation63_spill]] %s3355_s9 }
   0xb   :  { %3419 = sst [smem:[#allocation64_spill]] %s3356_s10 }
   0xc   :  { %3420 = sst [smem:[#allocation65_spill]] %s3357_s11 }
   0xd   :  { %3421 = sst [smem:[#allocation66_spill]] %s3358_s12 }
   0xe   :  { %3422 = sst [smem:[#allocation67_spill]] %s3359_s13 }
   0xf   :  { %3423 = sst [smem:[#allocation68_spill]] %s3360_s14 }
  0x10   :  { %19 = vsyncpa [#allocation3], 0 }
  0x11   :  { %21 = vsyncpa [#allocation3 + $0x1], 0 }
  0x12   :  { %22 = vsyncpa [#allocation6], 0 }
  0x13   :  { %24 = vsyncpa [#allocation6 + $0x1], 0 }
  0x14   :  { %25 = vsyncpa [#allocation9], 0 }
  0x15   :  { %27 = vsyncpa [#allocation9 + $0x1], 0 }
  0x16   :  { %28 = vsyncpa [#allocation12], 0 }
  0x17   :  { %29 = vsyncpa [#allocation15], 0 }
  0x18   :  { %30 = vsyncpa [#allocation18], 0 }
  0x19   :  { %31 = vsyncpa [#allocation21], 0 }
  0x1a   :  { %32 = vsyncpa [#allocation24], 0 }
  0x1b   :  { %33 = vsyncpa [#allocation4], 0 }
  0x1c   :  { %35 = vsyncpa [#allocation4 + $0x1], 0  ;;  %s2664_s29 = smov 0   ;;  %s2666_s30 = smov 0  }
  0x1d   :  { %s2668_s15 = smov 0   ;;  %s2670_s16 = smov 0  }
  0x1e   :  { %s2672_s17 = smov 0   ;;  %s2674_s18 = smov 0  }
  0x1f   :  { %s2676_s19 = smov 0   ;;  %s2678_s20 = smov 0  }
  0x20   :  { %s2680_s21 = smov 0   ;;  %s2682_s22 = smov 0  }
  0x21   :  { %s2684_s23 = smov 0  }
  0x22 LB: > { %3424 = sst [smem:[#allocation36_spill]] %s2526_s30  ;;  %s2720_s24 = sadd.s32 4294967295, %s2562_s23   ;;  %s2562_s23 = sphi %s2684_s23, %s41_s23   ;;  %s2558_s22 = sphi %s2682_s22, %s3528_s22   ;;  %s2554_s21 = sphi %s2680_s21, %s3527_s21   ;;  %s2550_s20 = sphi %s2678_s20, %s3526_s20   ;;  %s2546_s19 = sphi %s2676_s19, %s3525_s19   ;;  %s2542_s18 = sphi %s2674_s18, %s3524_s18   ;;  %s2538_s17 = sphi %s2672_s17, %s3523_s17   ;;  %s2534_s16 = sphi %s2670_s16, %s3519_s16   ;;  %s2530_s15 = sphi %s2668_s15, %s3518_s15   ;;  %s2526_s30 = sphi %s2666_s30, %s3517_s30   ;;  %s2522_s29 = sphi %s2664_s29, %s3516_s29  }
  0x23   : > { %3425 = sst [smem:[#allocation37_spill]] %s2530_s15  ;;  %p1611_p0 = scmp.ge.s32.totalorder %s2562_s23, 1 }
  0x24   : > { %3426 = sst [smem:[#allocation38_spill]] %s2534_s16  ;;  %p3368_p1 = scmp.eq.s32.totalorder %s2720_s24, 0 }
  0x25   : > { %3427 = sst [smem:[#allocation39_spill]] %s2538_s17  ;;  %p403_p2 = scmp.lt.s32.totalorder %s2562_s23, 9 }
  0x26   : > { %3428 = sst [smem:[#allocation40_spill]] %s2546_s19  ;;  %s2564_s26 = smov [#allocation11]  }
  0x27   : > { %3429 = sst [smem:[#allocation41_spill]] %s2550_s20  ;;  %p2725_p3 = pnand %p1611_p0, %p403_p2 }
  0x28   : > { %3430 = sst [smem:[#allocation42_spill]] %s2562_s23  ;;  %s416_s27 = sshll.u32 %s2564_s26, 4  ;;  %s417_s27 = int_to_ptr.vmem [resolvable:$true] %s416_s27 }
  0x29   : > { %3431 = sst [smem:[#allocation43_spill]] %s2720_s24  ;;  %p1823_p4 = pneg %p2725_p3 }
  0x2a   : > { %s3432_s25 = scalar_select %p2725_p3, 1, 0 }
  0x2b   : > { %s2565_s28 = smov [#allocation14]   ;;  %p2733_p5 = pnand %p1823_p4, %p3368_p1 }
  0x2c   : > { %3433 = sst [smem:[#allocation44_spill]] %s3432_s25  ;;  %s438_s14 = sshll.u32 %s2565_s28, 4  ;;  %s2737_s14 = int_to_ptr.vmem [resolvable:$true] %s438_s14 }
  0x2d   : > { %s3434_s20 = scalar_select %p2733_p5, 1, 0 }
  0x2e   : > { %s2566_s19 = smov [#allocation17]   ;;  %s3435_s5 = sld [smem:[#allocation59_spill]] }
  0x2f   : > { %s462_s4 = sshll.u32 %s2566_s19, 4  ;;  %p2749_p7 = pneg %p2733_p5  ;;  %s2739_s4 = int_to_ptr.vmem [resolvable:$true] %s462_s4 }
  0x31   : > { %s3436_s28 = scalar_select %p2749_p7, 1, 0 }
  0x34   : > { %s2006_s26 = scalar_lea.hbm %s3435_s5, 16 }
  0x35   : > { %p2007_p6 = scmp.ne.s32.totalorder %s3435_s5, %s2006_s26  ;;  %p2013_p10 = scmp.lt.u32.totalorder %s2006_s26, %s3435_s5 }
  0x37   : > { %p2009_p8 = pnand %p2749_p7, %p2007_p6 }
  0x39   : > { %p2010_p9 = pneg %p2009_p8 }
  0x3b   : > { %p2015_p11 = pnand %p2013_p10, %p2010_p9 }
  0x3d   : > { %2018 = shalt.err (!%p2015_p11)
}
  0x3e   : > { %s2019_s0 = scalar_lea.vmem %s417_s27, 16  ;;  %s2026_s2 = scalar_lea.vmem %s417_s27, 32 }
  0x3f   : > { %p2020_p12 = scmp.ne.s32.totalorder %s417_s27, %s2019_s0  ;;  %p2027_p2 = scmp.lt.s32.totalorder %s417_s27, %s417_s27 }
  0x40   : > { %p2028_p4 = scmp.lt.s32.totalorder %s2026_s2, %s2019_s0 }
  0x41   : > { %p2022_p13 = pnand %p2020_p12, %p2749_p7 }
  0x42   : > { %p2029_p1 = por %p2028_p4, %p2027_p2 }
  0x43   : > { %p2023_p0 = pneg %p2022_p13 }
  0x45   : > { %p2030_p3 = pnand %p2029_p1, %p2023_p0 }
  0x47   : > { %2033 = shalt.err (!%p2030_p3)
}
  0x48   : > { %1826 = dma.hbm_to_vmem [thread:$0]  (!%p2733_p5), %s3435_s5, 16, %s417_s27, [#allocation12]  }
  0x49   : > { %s3437_s7 = sld [smem:[#allocation61_spill]] }
  0x4f   : > { %s2034_s19 = scalar_lea.hbm %s3437_s7, 16 }
  0x50   : > { %p2035_p6 = scmp.ne.s32.totalorder %s3437_s7, %s2034_s19  ;;  %p2041_p1 = scmp.lt.u32.totalorder %s2034_s19, %s3437_s7 }
  0x52   : > { %p2037_p8 = pnand %p2035_p6, %p2749_p7 }
  0x54   : > { %p2038_p9 = pneg %p2037_p8 }
  0x56   : > { %p2043_p3 = pnand %p2041_p1, %p2038_p9 }
  0x58   : > { %2046 = shalt.err (!%p2043_p3)
}
  0x59   : > { %s2047_s27 = scalar_lea.vmem %s2737_s14, 16  ;;  %s2054_s8 = scalar_lea.vmem %s2737_s14, 32 }
  0x5a   : > { %p2048_p10 = scmp.ne.s32.totalorder %s2737_s14, %s2047_s27  ;;  %p2055_p13 = scmp.lt.s32.totalorder %s2737_s14, %s2737_s14 }
  0x5b   : > { %p2056_p0 = scmp.lt.s32.totalorder %s2054_s8, %s2047_s27 }
  0x5c   : > { %p2050_p11 = pnand %p2048_p10, %p2749_p7 }
  0x5d   : > { %p2057_p2 = por %p2056_p0, %p2055_p13 }
  0x5e   : > { %p2051_p12 = pneg %p2050_p11 }
  0x60   : > { %p2058_p4 = pnand %p2057_p2, %p2051_p12 }
  0x62   : > { %2061 = shalt.err (!%p2058_p4)
}
  0x63   : > { %1832 = dma.hbm_to_vmem [thread:$0]  (!%p2733_p5), %s3437_s7, 16, %s2737_s14, [#allocation15]  }
  0x64   : > { %s3438_s9 = sld [smem:[#allocation63_spill]] }
  0x6a   : > { %s2062_s26 = scalar_lea.hbm %s3438_s9, 16 }
  0x6b   : > { %p2063_p6 = scmp.ne.s32.totalorder %s3438_s9, %s2062_s26  ;;  %p2069_p1 = scmp.lt.u32.totalorder %s2062_s26, %s3438_s9 }
  0x6d   : > { %p2065_p8 = pnand %p2063_p6, %p2749_p7 }
  0x6f   : > { %p2066_p9 = pneg %p2065_p8 }
  0x71   : > { %p2071_p3 = pnand %p2069_p1, %p2066_p9 }
  0x73   : > { %2074 = shalt.err (!%p2071_p3)
}
  0x74   : > { %s2075_s14 = scalar_lea.vmem %s2739_s4, 16  ;;  %s2082_s8 = scalar_lea.vmem %s2739_s4, 32 }
  0x75   : > { %p2076_p10 = scmp.ne.s32.totalorder %s2739_s4, %s2075_s14  ;;  %p2083_p13 = scmp.lt.s32.totalorder %s2739_s4, %s2739_s4 }
  0x76   : > { %p2084_p0 = scmp.lt.s32.totalorder %s2082_s8, %s2075_s14 }
  0x77   : > { %p2078_p11 = pnand %p2076_p10, %p2749_p7 }
  0x78   : > { %p2085_p2 = por %p2084_p0, %p2083_p13 }
  0x79   : > { %p2079_p12 = pneg %p2078_p11 }
  0x7b   : > { %p2086_p4 = pnand %p2085_p2, %p2079_p12 }
  0x7d   : > { %2089 = shalt.err (!%p2086_p4)
}
  0x7e   : > { %1838 = dma.hbm_to_vmem [thread:$0]  (!%p2733_p5), %s3438_s9, 16, %s2739_s4, [#allocation18]  }
  0x7f   : > { %s2567_s25 = smov [#allocation20]   ;;  %s3439_s11 = sld [smem:[#allocation65_spill]] }
  0x80   : > { %s486_s12 = sshll.u32 %s2567_s25, 4  ;;  %s487_s12 = int_to_ptr.vmem [resolvable:$true] %s486_s12 }
  0x85   : > { %s2090_s0 = scalar_lea.hbm %s3439_s11, 16 }
  0x86   : > { %p2091_p6 = scmp.ne.s32.totalorder %s3439_s11, %s2090_s0  ;;  %p2097_p1 = scmp.lt.u32.totalorder %s2090_s0, %s3439_s11 }
  0x88   : > { %p2093_p8 = pnand %p2091_p6, %p2749_p7 }
  0x8a   : > { %p2094_p9 = pneg %p2093_p8 }
  0x8c   : > { %p2099_p3 = pnand %p2097_p1, %p2094_p9 }
  0x8e   : > { %2102 = shalt.err (!%p2099_p3)
}
  0x8f   : > { %s2103_s4 = scalar_lea.vmem %s487_s12, 16  ;;  %s2110_s10 = scalar_lea.vmem %s487_s12, 32 }
  0x90   : > { %p2104_p10 = scmp.ne.s32.totalorder %s487_s12, %s2103_s4  ;;  %p2111_p13 = scmp.lt.s32.totalorder %s487_s12, %s487_s12 }
  0x91   : > { %p2112_p0 = scmp.lt.s32.totalorder %s2110_s10, %s2103_s4 }
  0x92   : > { %p2106_p11 = pnand %p2104_p10, %p2749_p7 }
  0x93   : > { %p2113_p2 = por %p2112_p0, %p2111_p13 }
  0x94   : > { %p2107_p12 = pneg %p2106_p11 }
  0x96   : > { %p2114_p4 = pnand %p2113_p2, %p2107_p12 }
  0x98   : > { %2117 = shalt.err (!%p2114_p4)
}
  0x99   : > { %1844 = dma.hbm_to_vmem [thread:$0]  (!%p2733_p5), %s3439_s11, 16, %s487_s12, [#allocation21]  }
  0x9a   : > { %s1610_s26 = sadd.s32 4294967294, %s2562_s23   ;;  %p67_p6 = scmp.ne.s32.totalorder %s2542_s18, %s2538_s17 }
  0x9b   : > { %p3375_p8 = scmp.eq.s32.totalorder %s2562_s23, 0  ;;  %p73_p9 = scmp.ne.s32.totalorder %s2538_s17, %s2534_s16 }
  0x9c   : > { %p390_p1 = scmp.eq.s32.totalorder %s2720_s24, 7  ;;  %p396_p3 = scmp.eq.s32.totalorder %s1610_s26, 7 }
  0x9d   : > { %p69_p10 = por %p3375_p8, %p67_p6  ;;  %p3440_p11 = scmp.eq.s32.totalorder %s2720_s24, 0 }
  0x9e   : > { %p2848_p13 = por %p390_p1, %p67_p6  ;;  %p2852_p0 = por %p396_p3, %p73_p9 }
  0x9f   : > { %p2844_p12 = por %p3440_p11, %p73_p9  ;;  %p3374_p2 = scmp.lt.s32.totalorder %s2562_s23, 8 }
  0xa0   : > { %s3443_s12 = scalar_select %p2848_p13, 1, 0 }
  0xa1   : > { %s3441_s2 = scalar_select %p2844_p12, 1, 0 }
  0xa2   : > { %3444 = sst [smem:[#allocation46_spill]] %s3443_s12  ;;  %s3372_s14 = sand.u32 1, %s2542_s18  }
  0xa3   : > { %3442 = sst [smem:[#allocation45_spill]] %s3441_s2  ;;  %s2860_s8 = sshll.u32 %s3372_s14, 3 }
  0xa4   : > { %s3445_s27 = scalar_select %p2852_p0, 1, 0 }
  0xa5   : > { %s3373_s4 = sshll.u32 %s2558_s22, 7  ;;  %p2865_p4 = pnand %p3374_p2, %p69_p10 }
  0xa6   : > { %3446 = sst [smem:[#allocation47_spill]] %s3445_s27  ;;  %s3380_s13 = sand.u32 1, %s2562_s23  }
  0xa7   : > { %s3447_s10 = scalar_select %p2865_p4, 1, 0 }
  0xa8   : > { %s3448_s1 = sld [smem:[#allocation55_spill]]  ;;  %s541_s14 = scalar_lea.vmem [#allocation5], %s2860_s8 }
  0xa9   : > { %s548_s19 = sshll.u32 %s541_s14, 4  ;;  %s2882_s5 = scalar_lea.sflag [#allocation6], %s3380_s13  ;;  %s2878_s19 = int_to_ptr.vmem [resolvable:$true] %s548_s19 }
  0xaa   : > { %p3387_p9 = pneg %p2865_p4 }
  0xae   : > { %s2875_s0 = scalar_lea.hbm %s3448_s1, %s3373_s4  ;;  %s2123_s4 = scalar_lea.hbm %s3448_s1, 256 }
  0xaf   : > { %s2118_s7 = scalar_lea.hbm %s2875_s0, 128  ;;  %p2124_p10 = scmp.lt.u32.totalorder %s2875_s0, %s3448_s1 }
  0xb0   : > { %p2119_p6 = scmp.ne.s32.totalorder %s2875_s0, %s2118_s7  ;;  %p2125_p11 = scmp.lt.u32.totalorder %s2123_s4, %s2118_s7 }
  0xb1   : > { %p2127_p8 = scmp.lt.u32.totalorder %s2118_s7, %s2875_s0 }
  0xb2   : > { %p2121_p1 = pnand %p3387_p9, %p2119_p6  ;;  %p2126_p2 = por %p2125_p11, %p2124_p10 }
  0xb4   : > { %p2122_p3 = pneg %p2121_p1  ;;  %p2128_p0 = por %p2127_p8, %p2126_p2 }
  0xb6   : > { %p2129_p13 = pnand %p2128_p0, %p2122_p3 }
  0xb8   : > { %2132 = shalt.err (!%p2129_p13)
}
  0xb9   : > { %s2133_s14 = scalar_lea.vmem %s2878_s19, 128  ;;  %s2568_s25 = smov [#allocation5]  }
  0xba   : > { %p2134_p6 = scmp.ne.s32.totalorder %s2878_s19, %s2133_s14  ;;  %s2138_s26 = sshll.u32 %s2568_s25, 4  ;;  %s2139_s26 = int_to_ptr.vmem [resolvable:$false] %s2138_s26 }
  0xbb   : > { %s2140_s9 = scalar_lea.vmem %s2139_s26, 256  ;;  %p2141_p5 = scmp.lt.s32.totalorder %s2878_s19, %s2139_s26 }
  0xbc   : > { %p2136_p1 = pnand %p2134_p6, %p3387_p9  ;;  %p2142_p10 = scmp.lt.s32.totalorder %s2140_s9, %s2133_s14 }
  0xbe   : > { %p2137_p12 = pneg %p2136_p1  ;;  %p2143_p11 = por %p2142_p10, %p2141_p5 }
  0xc0   : > { %p2144_p8 = pnand %p2143_p11, %p2137_p12 }
  0xc2   : > { %2147 = shalt.err (!%p2144_p8)
}
  0xc3   : > { %1857 = dma.hbm_to_vmem [thread:$0]  (!%p2865_p4), %s2875_s0, 128, %s2878_s19, %s2882_s5  }
  0xc4   : > { %s50_s7 = sadd.s32 1, %s2554_s21  ;;  %s112_s11 = sadd.s32 1, %s2530_s15 }
  0xc5   : > { %p51_p5 = scmp.ge.s32.totalorder %s50_s7, 4  ;;  %p119_p12 = scmp.ne.s32.totalorder %s2530_s15, %s2526_s30 }
  0xc6   : > { %p125_p13 = scmp.ne.s32.totalorder %s2526_s30, %s2522_s29  ;;  %s2917_s4 = sand.u32 1, %s2530_s15  }
  0xc7   : > { %s3530_s7 = smov (%p51_p5, %s50_s7), 0  ;;  %s3450_s14 = sadd.s32 1, %s2558_s22 }
  0xc8   : > { %3449 = sst [smem:[#allocation48_spill]] %s3530_s7  ;;  %s3532_s14 = smov (!%p51_p5, %s3450_s14), %s2558_s22 }
  0xc9   : > { %s109_s19 = ssub.s32 %s2554_s21, %s3530_s7  ;;  %p3451_p0 = scmp.eq.s32.totalorder %s2562_s23, 0 }
  0xca   : > { %p55_p3 = scmp.ge.s32.totalorder %s3532_s14, 2  ;;  %p110_p6 = scmp.eq.s32.totalorder %s109_s19, 0 }
  0xcb   : > { %p121_p2 = por %p119_p12, %p3451_p0  ;;  %p3452_p1 = scmp.eq.s32.totalorder %s2720_s24, 0 }
  0xcc   : > { %s1626_s0 = sshll.u32 %s2917_s4, 5  ;;  %s3534_s14 = smov (%p55_p3, %s3532_s14), 0 }
  0xcd   : > { %p2930_p10 = por %p125_p13, %p3452_p1  ;;  %3455 = sst [smem:[#allocation50_spill]] %s3534_s14 }
  0xce   : > { %s2938_s25 = scalar_select %p110_p6, %s2530_s15, %s112_s11  }
  0xcf   : > { %s3453_s29 = scalar_select %p2930_p10, 1, 0 }
  0xd0   : > { %3456 = sst [smem:[#allocation51_spill]] %s2938_s25  ;;  %s57_s26 = ssub.s32 %s2558_s22, %s3534_s14 }
  0xd1   : > { %3454 = sst [smem:[#allocation49_spill]] %s3453_s29  ;;  %p58_p11 = scmp.eq.s32.totalorder %s57_s26, 0 }
  0xd2   : > { %s559_s9 = scalar_lea.vmem [#allocation7], %s1626_s0  ;;  %p3457_p8 = scmp.lt.s32.totalorder %s2562_s23, 8 }
  0xd3   : > { %s566_s13 = sshll.u32 %s559_s9, 4  ;;  %s3459_s1 = sadd.s32 1, %s2542_s18  ;;  %s2942_s13 = int_to_ptr.vmem [resolvable:$true] %s566_s13 }
  0xd4   : > { %p2946_p5 = pnand %p3457_p8, %p121_p2  ;;  %s1629_s27 = sshll.u32 %s2554_s21, 4 }
  0xd5   : > { %s2953_s7 = scalar_select %p58_p11, %s2542_s18, %s3459_s1  }
  0xd6   : > { %s3458_s19 = scalar_select %p2946_p5, 1, 0 }
  0xd7   : > { %3460 = sst [smem:[#allocation52_spill]] %s2953_s7  ;;  %s3461_s3 = sld [smem:[#allocation57_spill]] }
  0xd8   : > { %s579_s0 = scalar_lea.vmem [#allocation8], %s2917_s4  ;;  %s3462_s9 = sand.u32 1, %s2562_s23  }
  0xd9   : > { %s586_s26 = sshll.u32 %s579_s0, 4  ;;  %s2966_s14 = scalar_lea.sflag [#allocation9], %s3462_s9  ;;  %s2962_s26 = int_to_ptr.vmem [resolvable:$true] %s586_s26 }
  0xda   : > { %3463 = sst [smem:[#allocation53_spill]] %s2966_s14  ;;  %p2972_p13 = pneg %p2946_p5 }
  0xdc   : > { %s3464_s1 = scalar_select %p2972_p13, 1, 0 }
  0xdd   : > { %s2959_s11 = scalar_lea.hbm %s3461_s3, %s1629_s27  ;;  %s2153_s27 = scalar_lea.hbm %s3461_s3, 64 }
  0xde   : > { %s2148_s25 = scalar_lea.hbm %s2959_s11, 16  ;;  %p2154_p3 = scmp.lt.u32.totalorder %s2959_s11, %s3461_s3 }
  0xdf   : > { %p2149_p12 = scmp.ne.s32.totalorder %s2959_s11, %s2148_s25  ;;  %p2155_p6 = scmp.lt.u32.totalorder %s2153_s27, %s2148_s25 }
  0xe0   : > { %p2157_p11 = scmp.lt.u32.totalorder %s2148_s25, %s2959_s11 }
  0xe1   : > { %p2151_p0 = pnand %p2972_p13, %p2149_p12  ;;  %p2156_p1 = por %p2155_p6, %p2154_p3 }
  0xe3   : > { %p2152_p2 = pneg %p2151_p0  ;;  %p2158_p8 = por %p2157_p11, %p2156_p1 }
  0xe5   : > { %p2159_p9 = pnand %p2158_p8, %p2152_p2 }
  0xe7   : > { %2162 = shalt.err (!%p2159_p9)
}
  0xe8   : > { %s2163_s9 = scalar_lea.vmem %s2962_s26, 16  ;;  %s2569_s16 = smov [#allocation8]  }
  0xe9   : > { %p2164_p12 = scmp.ne.s32.totalorder %s2962_s26, %s2163_s9  ;;  %s2168_s12 = sshll.u32 %s2569_s16, 4  ;;  %s2169_s12 = int_to_ptr.vmem [resolvable:$false] %s2168_s12 }
  0xea   : > { %s2170_s7 = scalar_lea.vmem %s2169_s12, 32  ;;  %p2171_p4 = scmp.lt.s32.totalorder %s2962_s26, %s2169_s12 }
  0xeb   : > { %p2166_p0 = pnand %p2164_p12, %p2972_p13  ;;  %p2172_p7 = scmp.lt.s32.totalorder %s2170_s7, %s2163_s9 }
  0xed   : > { %p2167_p10 = pneg %p2166_p0  ;;  %p2173_p3 = por %p2172_p7, %p2171_p4 }
  0xef   : > { %p2174_p6 = pnand %p2173_p3, %p2167_p10 }
  0xf1   : > { %2177 = shalt.err (!%p2174_p6)
}
  0xf2   : > { %1863 = dma.hbm_to_vmem [thread:$0]  (!%p2946_p5), %s2959_s11, 16, %s2962_s26, %s2966_s14  }
  0xf3   : > { %s2570_s25 = smov [#allocation13]   ;;  %s2571_s0 = smov [#allocation16]  }
  0xf4   : > { %s427_s27 = sshll.u32 %s2570_s25, 4  ;;  %s448_s3 = sshll.u32 %s2571_s0, 4  ;;  %s428_s27 = int_to_ptr.vmem [resolvable:$true] %s427_s27  ;;  %s449_s3 = int_to_ptr.vmem [resolvable:$true] %s448_s3 }
  0xf5   : > { %s3465_s6 = sld [smem:[#allocation60_spill]]  ;;  %p3466_p4 = scmp.ne.s32.totalorder %s3436_s28, 0 }
  0xfb   : > { %s2178_s12 = scalar_lea.hbm %s3465_s6, 16 }
  0xfc   : > { %p2179_p7 = scmp.ne.s32.totalorder %s3465_s6, %s2178_s12  ;;  %p2185_p2 = scmp.lt.u32.totalorder %s2178_s12, %s3465_s6 }
  0xfe   : > { %p2181_p9 = pnand %p2179_p7, %p3466_p4 }
 0x100   : > { %p2182_p10 = pneg %p2181_p9 }
 0x102   : > { %p2187_p1 = pnand %p2185_p2, %p2182_p10 }
 0x104   : > { %2190 = shalt.err (!%p2187_p1)
}
 0x105   : > { %s2191_s11 = scalar_lea.vmem %s428_s27, 16  ;;  %s2198_s15 = scalar_lea.vmem %s428_s27, 32 }
 0x106   : > { %p2192_p11 = scmp.ne.s32.totalorder %s428_s27, %s2191_s11  ;;  %p2199_p0 = scmp.lt.s32.totalorder %s428_s27, %s428_s27 }
 0x107   : > { %p2200_p3 = scmp.lt.s32.totalorder %s2198_s15, %s2191_s11 }
 0x108   : > { %p2194_p8 = pnand %p2192_p11, %p3466_p4 }
 0x109   : > { %p2201_p6 = por %p2200_p3, %p2199_p0 }
 0x10a   : > { %p2195_p12 = pneg %p2194_p8 }
 0x10c   : > { %p2202_p5 = pnand %p2201_p6, %p2195_p12 }
 0x10e   : > { %2205 = shalt.err (!%p2202_p5)
}
 0x10f   : > { %p3467_p7 = scmp.ne.s32.totalorder %s3434_s20, 0  ;;  %s3468_s0 = sld [smem:[#allocation62_spill]] }
 0x111   : > { %1829 = dma.hbm_to_vmem [thread:$0]  (!%p3467_p7), %s3465_s6, 16, %s428_s27, [#allocation12]  }
 0x115   : > { %s2206_s16 = scalar_lea.hbm %s3468_s0, 512 }
 0x116   : > { %p2207_p9 = scmp.ne.s32.totalorder %s3468_s0, %s2206_s16  ;;  %p2213_p5 = scmp.lt.u32.totalorder %s2206_s16, %s3468_s0 }
 0x118   : > { %p2209_p10 = pnand %p2207_p9, %p3466_p4 }
 0x11a   : > { %p2210_p2 = pneg %p2209_p10 }
 0x11c   : > { %p2215_p1 = pnand %p2213_p5, %p2210_p2 }
 0x11e   : > { %2218 = shalt.err (!%p2215_p1)
}
 0x11f   : > { %s2219_s15 = scalar_lea.vmem %s449_s3, 512  ;;  %p2227_p0 = scmp.lt.s32.totalorder %s449_s3, %s449_s3 }
 0x120   : > { %p2220_p11 = scmp.ne.s32.totalorder %s449_s3, %s2219_s15  ;;  %p2228_p3 = scmp.lt.s32.totalorder %s2219_s15, %s2219_s15 }
 0x122   : > { %p2222_p8 = pnand %p2220_p11, %p3466_p4  ;;  %p2229_p6 = por %p2228_p3, %p2227_p0 }
 0x124   : > { %p2223_p12 = pneg %p2222_p8 }
 0x126   : > { %p2230_p13 = pnand %p2229_p6, %p2223_p12 }
 0x128   : > { %2233 = shalt.err (!%p2230_p13)
}
 0x129   : > { %s2572_s27 = smov 128   ;;  %s2573_s26 = smov 8  }
 0x12a   : > { %1835 = dma.hbm_to_vmem [thread:$0]  (!%p3467_p7), %s3468_s0, 512, %s449_s3, [#allocation15], %s2572_s27, %s2572_s27, %s2573_s26  }
 0x12b   : > { %s2574_s29 = smov [#allocation19]   ;;  %s2575_s12 = smov [#allocation22]  }
 0x12c   : > { %s472_s16 = sshll.u32 %s2574_s29, 4  ;;  %s497_s9 = sshll.u32 %s2575_s12, 4  ;;  %s473_s16 = int_to_ptr.vmem [resolvable:$true] %s472_s16  ;;  %s498_s9 = int_to_ptr.vmem [resolvable:$true] %s497_s9 }
 0x12d   : > { %s3469_s15 = sld [smem:[#allocation64_spill]] }
 0x133   : > { %s3470_s6 = smov %s3469_s15  ;;  %s2234_s30 = scalar_lea.hbm %s3469_s15, 1024 }
 0x134   : > { %p2235_p13 = scmp.ne.s32.totalorder %s3470_s6, %s2234_s30  ;;  %p2241_p2 = scmp.lt.u32.totalorder %s2234_s30, %s3470_s6 }
 0x136   : > { %p2237_p9 = pnand %p2235_p13, %p3466_p4 }
 0x138   : > { %p2238_p10 = pneg %p2237_p9 }
 0x13a   : > { %p2243_p5 = pnand %p2241_p2, %p2238_p10 }
 0x13c   : > { %2246 = shalt.err (!%p2243_p5)
}
 0x13d   : > { %s2247_s3 = scalar_lea.vmem %s473_s16, 1024  ;;  %p2255_p12 = scmp.lt.s32.totalorder %s473_s16, %s473_s16 }
 0x13e   : > { %p2248_p1 = scmp.ne.s32.totalorder %s473_s16, %s2247_s3  ;;  %p2256_p0 = scmp.lt.s32.totalorder %s2247_s3, %s2247_s3 }
 0x140   : > { %p2250_p11 = pnand %p2248_p1, %p3466_p4  ;;  %p2257_p3 = por %p2256_p0, %p2255_p12 }
 0x142   : > { %p2251_p8 = pneg %p2250_p11 }
 0x144   : > { %p2258_p6 = pnand %p2257_p3, %p2251_p8 }
 0x146   : > { %2261 = shalt.err (!%p2258_p6)
}
 0x147   : > { %1841 = dma.hbm_to_vmem [thread:$0]  (!%p3467_p7), %s3470_s6, 1024, %s473_s16, [#allocation18], %s2572_s27, %s2572_s27, %s2573_s26  }
 0x148   : > { %s3471_s14 = sld [smem:[#allocation66_spill]] }
 0x14e   : > { %s2262_s25 = scalar_lea.hbm %s3471_s14, 16 }
 0x14f   : > { %p2263_p13 = scmp.ne.s32.totalorder %s3471_s14, %s2262_s25  ;;  %p2269_p2 = scmp.lt.u32.totalorder %s2262_s25, %s3471_s14 }
 0x151   : > { %p2265_p9 = pnand %p2263_p13, %p3466_p4 }
 0x153   : > { %p2266_p10 = pneg %p2265_p9 }
 0x155   : > { %p2271_p5 = pnand %p2269_p2, %p2266_p10 }
 0x157   : > { %2274 = shalt.err (!%p2271_p5)
}
 0x158   : > { %s2275_s11 = scalar_lea.vmem %s498_s9, 16  ;;  %s2282_s16 = scalar_lea.vmem %s498_s9, 32 }
 0x159   : > { %p2276_p1 = scmp.ne.s32.totalorder %s498_s9, %s2275_s11  ;;  %p2283_p12 = scmp.lt.s32.totalorder %s498_s9, %s498_s9 }
 0x15a   : > { %p2284_p0 = scmp.lt.s32.totalorder %s2282_s16, %s2275_s11 }
 0x15b   : > { %p2278_p11 = pnand %p2276_p1, %p3466_p4 }
 0x15c   : > { %p2285_p3 = por %p2284_p0, %p2283_p12 }
 0x15d   : > { %p2279_p8 = pneg %p2278_p11 }
 0x15f   : > { %p2286_p6 = pnand %p2285_p3, %p2279_p8 }
 0x161   : > { %2289 = shalt.err (!%p2286_p6)
}
 0x162   : > { %1847 = dma.hbm_to_vmem [thread:$0]  (!%p3467_p7), %s3471_s14, 16, %s498_s9, [#allocation21]  }
 0x163   : > { %s2576_s17 = smov [#allocation23]   ;;  %s3472_s25 = sld [smem:[#allocation67_spill]] }
 0x164   : > { %s508_s30 = sshll.u32 %s2576_s17, 4  ;;  %s509_s30 = int_to_ptr.vmem [resolvable:$true] %s508_s30 }
 0x169   : > { %s2290_s23 = scalar_lea.hbm %s3472_s25, 16 }
 0x16a   : > { %p2291_p13 = scmp.ne.s32.totalorder %s3472_s25, %s2290_s23  ;;  %p2297_p2 = scmp.lt.u32.totalorder %s2290_s23, %s3472_s25 }
 0x16c   : > { %p2293_p9 = pnand %p2291_p13, %p3466_p4 }
 0x16e   : > { %p2294_p10 = pneg %p2293_p9 }
 0x170   : > { %p2299_p5 = pnand %p2297_p2, %p2294_p10 }
 0x172   : > { %2302 = shalt.err (!%p2299_p5)
}
 0x173   : > { %s2303_s9 = scalar_lea.vmem %s509_s30, 16  ;;  %s2310_s16 = scalar_lea.vmem %s509_s30, 32 }
 0x174   : > { %p2304_p1 = scmp.ne.s32.totalorder %s509_s30, %s2303_s9  ;;  %p2311_p12 = scmp.lt.s32.totalorder %s509_s30, %s509_s30 }
 0x175   : > { %p2312_p0 = scmp.lt.s32.totalorder %s2310_s16, %s2303_s9 }
 0x176   : > { %p2306_p11 = pnand %p2304_p1, %p3466_p4 }
 0x177   : > { %p2313_p3 = por %p2312_p0, %p2311_p12 }
 0x178   : > { %p2307_p8 = pneg %p2306_p11 }
 0x17a   : > { %p2314_p6 = pnand %p2313_p3, %p2307_p8 }
 0x17c   : > { %2317 = shalt.err (!%p2314_p6)
}
 0x17d   : > { %1850 = dma.hbm_to_vmem [thread:$0]  (!%p3467_p7), %s3472_s25, 16, %s509_s30, [#allocation24]  }
 0x17e   : > { %s3473_s28 = sshll.u32 %s2558_s22, 7  ;;  %s3474_s2 = sld [smem:[#allocation54_spill]] }
 0x17f   : > { %s523_s20 = scalar_lea.vmem [#allocation2], %s2860_s8  ;;  %s1669_s12 = sshll.u32 %s2554_s21, 9 }
 0x180   : > { %s530_s29 = sshll.u32 %s523_s20, 4  ;;  %s3475_s7 = sand.u32 1, %s2542_s18   ;;  %s3100_s29 = int_to_ptr.vmem [resolvable:$true] %s530_s29 }
 0x181   : > { %s520_s11 = scalar_lea.sflag [#allocation3], %s3475_s7  ;;  %p3476_p7 = scmp.ne.s32.totalorder %s3447_s10, 0 }
 0x183   : > { %p3477_p13 = pneg %p3476_p7 }
 0x184   : > { %s3097_s23 = scalar_lea.hbm %s3474_s2, %s3473_s28  ;;  %s2323_s15 = scalar_lea.hbm %s3474_s2, 256 }
 0x185   : > { %s2318_s9 = scalar_lea.hbm %s3097_s23, 128  ;;  %p2324_p2 = scmp.lt.u32.totalorder %s3097_s23, %s3474_s2 }
 0x186   : > { %p2319_p4 = scmp.ne.s32.totalorder %s3097_s23, %s2318_s9  ;;  %p2325_p5 = scmp.lt.u32.totalorder %s2323_s15, %s2318_s9 }
 0x187   : > { %p2327_p11 = scmp.lt.u32.totalorder %s2318_s9, %s3097_s23 }
 0x188   : > { %p2321_p9 = pnand %p2319_p4, %p3477_p13  ;;  %p2326_p1 = por %p2325_p5, %p2324_p2 }
 0x18a   : > { %p2322_p10 = pneg %p2321_p9  ;;  %p2328_p8 = por %p2327_p11, %p2326_p1 }
 0x18c   : > { %p2329_p12 = pnand %p2328_p8, %p2322_p10 }
 0x18e   : > { %2332 = shalt.err (!%p2329_p12)
}
 0x18f   : > { %s2333_s8 = scalar_lea.vmem %s3100_s29, 128  ;;  %p3478_p3 = pmov %p3477_p13 }
 0x190   : > { %p2334_p0 = scmp.ne.s32.totalorder %s3100_s29, %s2333_s8  ;;  %s2577_s17 = smov [#allocation2]  }
 0x191   : > { %s2338_s24 = sshll.u32 %s2577_s17, 4  ;;  %s2339_s24 = int_to_ptr.vmem [resolvable:$false] %s2338_s24 }
 0x192   : > { %p2336_p6 = pnand %p2334_p0, %p3478_p3  ;;  %s2340_s20 = scalar_lea.vmem %s2339_s24, 256 }
 0x193   : > { %p2341_p13 = scmp.lt.s32.totalorder %s3100_s29, %s2339_s24  ;;  %p2342_p9 = scmp.lt.s32.totalorder %s2340_s20, %s2333_s8 }
 0x194   : > { %p2337_p4 = pneg %p2336_p6 }
 0x195   : > { %p2343_p2 = por %p2342_p9, %p2341_p13 }
 0x197   : > { %p2344_p5 = pnand %p2343_p2, %p2337_p4 }
 0x199   : > { %2347 = shalt.err (!%p2344_p5)
}
 0x19a   : > { %1854 = dma.hbm_to_vmem [thread:$0]  (!%p3476_p7), %s3097_s23, 128, %s3100_s29, %s520_s11  }
 0x19b   : > { %s3479_s30 = sld [smem:[#allocation56_spill]]  ;;  %s1630_s15 = sshll.u32 %s2917_s4, 3 }
 0x19c   : > { %p3481_p1 = scmp.ne.s32.totalorder %s3464_s1, 0 }
 0x1a1   : > { %s3480_s3 = smov %s3479_s30  ;;  %s3133_s16 = scalar_lea.hbm %s3479_s30, %s1669_s12 }
 0x1a2   : > { %s2348_s28 = scalar_lea.hbm %s3133_s16, 512  ;;  %s2353_s23 = scalar_lea.hbm %s3480_s3, 2048 }
 0x1a3   : > { %p2349_p10 = scmp.ne.s32.totalorder %s3133_s16, %s2348_s28  ;;  %p2354_p7 = scmp.lt.u32.totalorder %s3133_s16, %s3480_s3 }
 0x1a4   : > { %p2355_p12 = scmp.lt.u32.totalorder %s2353_s23, %s2348_s28  ;;  %p2357_p3 = scmp.lt.u32.totalorder %s2348_s28, %s3133_s16 }
 0x1a5   : > { %p2351_p11 = pnand %p2349_p10, %p3481_p1 }
 0x1a6   : > { %p2356_p0 = por %p2355_p12, %p2354_p7 }
 0x1a7   : > { %p2352_p8 = pneg %p2351_p11 }
 0x1a8   : > { %p2358_p6 = por %p2357_p3, %p2356_p0 }
 0x1aa   : > { %p2359_p4 = pnand %p2358_p6, %p2352_p8 }
 0x1ac   : > { %2362 = shalt.err (!%p2359_p4)
}
 0x1ad   : > { %s2363_s12 = scalar_lea.vmem %s2942_s13, 512  ;;  %s2578_s17 = smov [#allocation7]  }
 0x1ae   : > { %p2364_p13 = scmp.ne.s32.totalorder %s2942_s13, %s2363_s12  ;;  %s2368_s24 = sshll.u32 %s2578_s17, 4  ;;  %s2369_s24 = int_to_ptr.vmem [resolvable:$false] %s2368_s24 }
 0x1af   : > { %s2370_s20 = scalar_lea.vmem %s2369_s24, 1024  ;;  %p2371_p5 = scmp.lt.s32.totalorder %s2942_s13, %s2369_s24 }
 0x1b0   : > { %p2366_p9 = pnand %p2364_p13, %p3481_p1  ;;  %p2372_p10 = scmp.lt.s32.totalorder %s2370_s20, %s2363_s12 }
 0x1b2   : > { %p2367_p2 = pneg %p2366_p9  ;;  %p2373_p11 = por %p2372_p10, %p2371_p5 }
 0x1b4   : > { %p2374_p7 = pnand %p2373_p11, %p2367_p2 }
 0x1b6   : > { %2377 = shalt.err (!%p2374_p7)
}
 0x1b7   : > { %p3482_p8 = scmp.ne.s32.totalorder %s3458_s19, 0  ;;  %s1631_s7 = sshll.u32 %s2554_s21, 7 }
 0x1b8   : > { %s3483_s28 = sld [smem:[#allocation58_spill]]  ;;  %s597_s8 = scalar_lea.vmem [#allocation10], %s1630_s15 }
 0x1b9   : > { %1860 = dma.hbm_to_vmem [thread:$0]  (!%p3482_p8), %s3133_s16, 512, %s2942_s13, %s2882_s5, %s2572_s27, %s2572_s27, %s2573_s26  }
 0x1ba   : > { %s604_s23 = sshll.u32 %s597_s8, 4  ;;  %s605_s23 = int_to_ptr.vmem [resolvable:$true] %s604_s23 }
 0x1be   : > { %s3165_s10 = scalar_lea.hbm %s3483_s28, %s1631_s7  ;;  %s2383_s27 = scalar_lea.hbm %s3483_s28, 512 }
 0x1bf   : > { %s2378_s29 = scalar_lea.hbm %s3165_s10, 128  ;;  %p2384_p6 = scmp.lt.u32.totalorder %s3165_s10, %s3483_s28 }
 0x1c0   : > { %p2379_p12 = scmp.ne.s32.totalorder %s3165_s10, %s2378_s29  ;;  %p2385_p4 = scmp.lt.u32.totalorder %s2383_s27, %s2378_s29 }
 0x1c1   : > { %p2387_p9 = scmp.lt.u32.totalorder %s2378_s29, %s3165_s10 }
 0x1c2   : > { %p2381_p0 = pnand %p2379_p12, %p3481_p1  ;;  %p2386_p13 = por %p2385_p4, %p2384_p6 }
 0x1c4   : > { %p2382_p3 = pneg %p2381_p0  ;;  %p2388_p2 = por %p2387_p9, %p2386_p13 }
 0x1c6   : > { %p2389_p5 = pnand %p2388_p2, %p2382_p3 }
 0x1c8   : > { %2392 = shalt.err (!%p2389_p5)
}
 0x1c9   : > { %s2393_s4 = scalar_lea.vmem %s605_s23, 128  ;;  %s2579_s15 = smov [#allocation10]  }
 0x1ca   : > { %p2394_p10 = scmp.ne.s32.totalorder %s605_s23, %s2393_s4  ;;  %s2398_s11 = sshll.u32 %s2579_s15, 4  ;;  %s2399_s11 = int_to_ptr.vmem [resolvable:$false] %s2398_s11 }
 0x1cb   : > { %s2400_s12 = scalar_lea.vmem %s2399_s11, 256  ;;  %p2401_p12 = scmp.lt.s32.totalorder %s605_s23, %s2399_s11 }
 0x1cc   : > { %p2396_p11 = pnand %p2394_p10, %p3481_p1  ;;  %p2402_p0 = scmp.lt.s32.totalorder %s2400_s12, %s2393_s4 }
 0x1ce   : > { %p2397_p7 = pneg %p2396_p11  ;;  %p2403_p8 = por %p2402_p0, %p2401_p12 }
 0x1d0   : > { %p2404_p4 = pnand %p2403_p8, %p2397_p7 }
 0x1d2   : > { %2407 = shalt.err (!%p2404_p4)
}
 0x1d3   : > { %p3484_p6 = scmp.ne.s32.totalorder %s3458_s19, 0  ;;  %s3485_s17 = sld [smem:[#allocation53_spill]] }
 0x1d4   : > { %s3486_s24 = sld [smem:[#allocation44_spill]] }
 0x1d9   : > { %1866 = dma.hbm_to_vmem [thread:$0]  (!%p3484_p6), %s3165_s10, 128, %s605_s23, %s3485_s17  }
 0x1da   : > { %p3487_p3 = scmp.ne.s32.totalorder %s3486_s24, 0 }
 0x1db   : > { %s3488_s1 = sld [smem:[#allocation39_spill]] (!%p3487_p3)  ;;  %s3489_s20 = sld [smem:[#allocation45_spill]] (!%p3487_p3) }
 0x1dc   : > { %613 = sbr.rel (%p3487_p3) target bundleno = 2776 (0xad8), region = 76 }
 0x1e1   : > { %s3190_s7 = sand.u32 (!%p3487_p3), 1, %s3488_s1   ;;  %p3490_p1 = scmp.ne.s32.totalorder (!%p3487_p3), %s3489_s20, 0 }
 0x1e2   : > { %s3193_s9 = sshll.u32 (!%p3487_p3), %s3190_s7, 3  ;;  %s616_s30 = scalar_lea.sflag (!%p3487_p3), [#allocation3], %s3190_s7 }
 0x1e3   : > { %s619_s8 = scalar_lea.vmem [#allocation2], %s3193_s9 }
 0x1e4   : > { %2481 = dma.done.wait (%p3490_p1), %s616_s30, 128  }
 0x1e5   : > { %2483 = vsyncadd (%p3490_p1), %s616_s30, 4294967168  ;;  %s3491_s19 = sld [smem:[#allocation43_spill]]  ;;  %s628_s29 = scalar_lea.vmem [#allocation5], %s3193_s9 }
 0x1eb   : > { %s624_s10 = sand.u32 1, %s3491_s19  }
 0x1ec   : > { %s625_s23 = scalar_lea.sflag [#allocation6], %s624_s10 }
 0x1ed   : > { %2485 = dma.done.wait (%p3490_p1), %s625_s23, 128  }
 0x1ee   : > { %2487 = vsyncadd (%p3490_p1), %s625_s23, 4294967168  ;;  %s3492_s5 = sld [smem:[#allocation36_spill]] }
 0x1ef   : > { %s3493_s13 = sld [smem:[#allocation49_spill]] }
 0x1f4   : > { %s3208_s27 = sand.u32 1, %s3492_s5  }
 0x1f5   : > { %s1635_s26 = sshll.u32 %s3208_s27, 5  ;;  %p3494_p8 = scmp.ne.s32.totalorder %s3493_s13, 0 }
 0x1f6   : > { %s637_s16 = scalar_lea.vmem [#allocation7], %s1635_s26 }
 0x1f7   : > { %2489 = dma.done.wait (%p3494_p8), %s625_s23, 512  }
 0x1f8   : > { %2491 = vsyncadd (%p3494_p8), %s625_s23, 4294966784  ;;  %s643_s4 = scalar_lea.sflag [#allocation9], %s624_s10  ;;  %s645_s15 = scalar_lea.vmem [#allocation8], %s3208_s27 }
 0x1f9   : > { %2493 = dma.done.wait (%p3494_p8), %s643_s4, 144  }
 0x1fa   : > { %2495 = vsyncadd (%p3494_p8), %s643_s4, 4294967152  ;;  %s1636_s11 = sshll.u32 %s3208_s27, 3  ;;  %p3495_p13 = scmp.eq.s32.totalorder %s3491_s19, 0 }
 0x1fb   : > { %s3221_s12 = scalar_lea.vmem [#allocation10], %s1636_s11 }
 0x1fc   : > { %2497 = dma.done.wait (%p3495_p13), [#allocation12], 32   ;;  %p3496_p9 = pmov %p3495_p13 }
 0x1fe   : > { %2499 = vsyncadd (%p3496_p9), [#allocation12], 4294967264  ;;  %p3497_p2 = pmov %p3496_p9 }
 0x200   : > { %2501 = dma.done.wait (%p3497_p2), [#allocation15], 528   ;;  %p3498_p5 = pmov %p3497_p2 }
 0x201   : > { %p3499_p10 = pmov %p3497_p2 }
 0x202   : > { %2503 = vsyncadd (%p3498_p5), [#allocation15], 4294966768 }
 0x203   : > { %2505 = dma.done.wait (%p3499_p10), [#allocation18], 1040   ;;  %p3500_p11 = pmov %p3497_p2 }
 0x204   : > { %p3501_p7 = pmov %p3497_p2 }
 0x205   : > { %2507 = vsyncadd (%p3500_p11), [#allocation18], 4294966256 }
 0x206   : > { %2509 = dma.done.wait (%p3501_p7), [#allocation21], 32   ;;  %p3502_p12 = pmov %p3497_p2 }
 0x207   : > { %p3503_p0 = pmov %p3497_p2 }
 0x208   : > { %2511 = vsyncadd (%p3502_p12), [#allocation21], 4294967264 }
 0x209   : > { %2513 = dma.done.wait (%p3503_p0), [#allocation24], 16   ;;  %p3504_p4 = pmov %p3503_p0 }
 0x20a   : > { %v2580_v0 = vmov 0.0|0.0   ;;  %vm2581_vm0 = vmmov 0   ;;  %v2582_v1 = vmov 0.0   ;;  %v755_v2 = vld [vmem:[%s637_s16] sm:$0xff]  ;;  %v756_v3 = vld [vmem:[%s637_s16 + $0x8] sm:$0xff]  ;;  %v757_v4 = vld [vmem:[%s637_s16 + $0x10] sm:$0xff] }
 0x20b   : > { %2515 = vsyncadd (%p3504_p4), [#allocation24], 4294967280  ;;  %1751 = vmatprep.subr.bf16.mxu0 %v2580_v0  ;;  %1703 = vmatprep.mubr.msk.f32.mxu0 %vm2581_vm0, %v2582_v1  ;;  %v1752_v5 = vpack.c.bf16 %v756_v3, %v755_v2  ;;  %v758_v6 = vld [vmem:[%s637_s16 + $0x18] sm:$0xff]  ;;  %v3247_v8 = vld [vmem:[%s619_s8] sm:$0xff]  ;;  %vm766_vm1 = vcmask 261120   ;;  %s2583_s17 = smov 112  }
 0x20c   : > { %1706 = vmatprep.subr.mxu1 %v2582_v1  ;;  %1708 = vmatprep.mubr.msk.f32.mxu1 %vm2581_vm0, %v2582_v1  ;;  %v1755_v7 = vpack.c.bf16 %v758_v6, %v757_v4  ;;  %v1647_v9 = vld [vmem:[%s645_s15] ss:$0 sm:$0xff]  ;;  %s2584_s24 = smov 120   ;;  %vm844_vm2 = vcmask 64512   ;;  %v920_v16 = vld [vmem:[%s628_s29] sm:$0xff]  ;;  %v1010_v27 = vld [vmem:[%s3221_s12] sm:$0xff] }
 0x20d   : > { %1753 = vmatpush3.bf16.msra.mxu0 %v1752_v5  ;;  %v921_v17 = vmul.f32 1000000.0, %v920_v16  ;;  %s3265_s1 = scalar_lea.vmem [#allocation25], %s3193_s9  ;;  %s3505_s20 = sld [smem:[#allocation40_spill]] }
 0x20e   : > { %1754 = vmatprep.subr.bf16.mxu0 %v2580_v0 }
 0x211   : > { %1756 = vmatpush3.bf16.msra.mxu0 %v1755_v7 }
 0x212   : > { %1716 = vmatprep.subr.mxu0 %v2582_v1 }
 0x213   : > { %p1653_p6 = scmp.ne.s32.totalorder %s3505_s20, 0 }
 0x214   : > { %1704 = vmatmul.mubr.msk.f32.vlgmr.msra.gmra.mrb[0].mxu0 %vm766_vm1, %v3247_v8 }
 0x215   : > { %1718 = vmatprep.mubr.msk.f32.mxu0 %vm2581_vm0, %v2582_v1  ;;  %1717 = vmatpush3.msra.mxu0 %v1010_v27 }
 0x2e7   : > { %v836_v10 = vpop.f32.mrb[0].mxu0 }
 0x2e8   : > { %v837_v11 = vadd.f32 %v1647_v9, %v836_v10  ;;  %v1705_v12 = vpop.f32.mrb[1].mxu0 }
 0x2ea   : > { %932 = vrot.lane.b32.xlu1 %v837_v11, %s2583_s17  ;;  %842 = vrot.lane.b32.xlu0 %v837_v11, %s2584_s24  ;;  %v840_v14 = vmul.f32 0.35355338, %v837_v11 }
 0x35c   : > { %v843_v13 = vpop.permute.xlu0 %842  ;;  %v933_v15 = vpop.permute.xlu1 %932 }
 0x35d   : > { %1707 = vmatpush3.xpose.msk.msra.mxu1 %vm844_vm2, %v843_v13 }
 0x35e   : > { %1711 = vmatprep.subr.mxu1 %v2582_v1 }
 0x360   : > { %1709 = vmatmul.mubr.msk.f32.vlgmr.msra.gmra.mrb[0].mxu1 %vm844_vm2, %v840_v14 }
 0x361   : > { %1712 = vmatpush3.msra.mxu1 %v933_v15  ;;  %1713 = vmatprep.mubr.msk.f32.mxu1 %vm2581_vm0, %v2582_v1 }
 0x433   : > { %v916_v18 = vpop.f32.mrb[0].mxu1 }
 0x434   : > { %v922_v19 = vsub.f32 %v916_v18, %v921_v17  ;;  %v1710_v20 = vpop.f32.mrb[1].mxu1 }
 0x436   : > { %v923_v21 = vsel %vm844_vm2, %v922_v19, -inf }
 0x437   : > { %924 = vmax.xlane.f32.xlu0 %v923_v21 }
 0x4c4   : > { %v925_v22 = vpop.xlane.xlu0 %924 }
 0x4c5   : > { %v926_v23 = vsub.f32 %v922_v19, %v925_v22 }
 0x4c7   : > { %v927_v24 = vmul.f32 1.442695, %v926_v23 }
 0x4c9   : > { %1998 = vpow2.f32 %v927_v24 }
 0x4d3   : > { %v1999_v25 = vpop.eup %1998 }
 0x4d4   : > { %1714 = vmatmul.mubr.msk.f32.vlgmr.msra.gmra.mrb[2].mxu1 %vm844_vm2, %v1999_v25  ;;  %v929_v26 = vsel %vm844_vm2, %v1999_v25, 0.0 }
 0x4d5   : > { %930 = vadd.xlane.f32.xlu1 %v929_v26 }
 0x562   : > { %v931_v28 = vpop.xlane.xlu1 %930 }
 0x563   : > { %2000 = vrcp.f32 %v931_v28 }
 0x56d   : > { %v2001_v29 = vpop.eup %2000 }
 0x5a7   : > { %v1004_v30 = vpop.f32.mrb[2].mxu1 }
 0x5a8   : > { %v1009_v31 = vmul.f32 %v2001_v29, %v1004_v30  ;;  %v1715_v32 = vpop.f32.mrb[3].mxu1 }
 0x5aa   : > { %1719 = vmatmul.mubr.msk.f32.vlgmr.msra.gmra.mrb[2].mxu0 %vm844_vm2, %v1009_v31 }
 0x678   : > { %1087 = sbr.rel (%p1653_p6) target bundleno = 1663 (0x67f), region = 136 }
 0x67d   : > { %v1080_v33 = vpop.f32.mrb[2].mxu0 }
 0x67e   : > { %v1720_v34 = vpop.f32.mrb[3].mxu0  ;;  %1088 = vst.msk [vmem:[%s3265_s1] sm:$0xff] (!%p1653_p6), %vm766_vm1, %v1080_v33 }
 0x67f PF: > { %s3506_s30 = sld [smem:[#allocation40_spill]] }
 0x685   : > { %p1654_p3 = scmp.le.s32.totalorder %s3506_s30, 0 }
 0x686   : > { %v1093_v35 = vld [vmem:[%s3265_s1] sm:$0xff] (!%p1654_p3) }
 0x687   : > { %1092 = sbr.rel (%p1654_p3) target bundleno = 1678 (0x68e), region = 140  ;;  %v1094_v36 = vadd.f32 (!%p1654_p3), %v1093_v35, %v1080_v33 }
 0x689   : > { %1095 = vst.msk [vmem:[%s3265_s1] sm:$0xff] (!%p1654_p3), %vm766_vm1, %v1094_v36 }
 0x68e PF: > { %s3507_s8 = sld [smem:[#allocation40_spill]] }
 0x694   : > { %p1655_p1 = scmp.ne.s32.totalorder %s3507_s8, 3 }
 0x695   : > { %v1100_v37 = vld [vmem:[%s3265_s1] sm:$0xff] (!%p1655_p1)  ;;  %v1656_v38 = vld [vmem:[#allocation11] ss:$0 sm:$0xff] (!%p1655_p1)  ;;  %v1140_v47 = vld [vmem:[#allocation16] sm:$0xff] (!%p1655_p1)  ;;  %v2585_v50 = vmov (!%p1655_p1), 0.0|0.0   ;;  %vm2586_vm3 = vmmov (!%p1655_p1), 0  }
 0x696   : > { %1099 = sbr.rel (%p1655_p1) target bundleno = 2749 (0xabd), region = 144  ;;  %v1108_v39 = vadd.f32 (!%p1655_p1), %v1656_v38, %v1100_v37  ;;  %v1141_v48 = vld [vmem:[#allocation16 + $0x8] sm:$0xff] (!%p1655_p1)  ;;  %v1142_v49 = vld [vmem:[#allocation16 + $0x10] sm:$0xff] (!%p1655_p1)  ;;  %1757 = vmatprep.subr.bf16.mxu0 (!%p1655_p1), %v2585_v50  ;;  %v1143_v52 = vld [vmem:[#allocation16 + $0x18] sm:$0xff] (!%p1655_p1)  ;;  %v2587_v53 = vmov (!%p1655_p1), 0.0   ;;  %1763 = vmatprep.subr.bf16.mxu1 (!%p1655_p1), %v2585_v50  ;;  %vm1240_vm4 = vcmask (!%p1655_p1), 523264  }
 0x697   : > { %v1758_v51 = vpack.c.bf16 (!%p1655_p1), %v1141_v48, %v1140_v47  ;;  %1729 = vmatprep.mubr.msk.f32.mxu0 (!%p1655_p1), %vm2586_vm3, %v2587_v53  ;;  %1748 = vmatprep.mubr.msk.f32.mxu1 (!%p1655_p1), %vm2586_vm3, %v2587_v53  ;;  %v1761_v54 = vpack.c.bf16 (!%p1655_p1), %v1143_v52, %v1142_v49  ;;  %v1225_v55 = vld [vmem:[#allocation19] sm:$0xff] (!%p1655_p1)  ;;  %v1226_v56 = vld [vmem:[#allocation19 + $0x8] sm:$0xff] (!%p1655_p1)  ;;  %v1227_v57 = vld [vmem:[#allocation19 + $0x10] sm:$0xff] (!%p1655_p1) }
 0x698   : > { %v1109_v40 = vadd.f32 (!%p1655_p1), %v1108_v39, %v3247_v8  ;;  %v1764_v58 = vpack.c.bf16 (!%p1655_p1), %v1226_v56, %v1225_v55  ;;  %v1228_v59 = vld [vmem:[#allocation19 + $0x18] sm:$0xff] (!%p1655_p1)  ;;  %v1229_v61 = vld [vmem:[#allocation19 + $0x20] sm:$0xff] (!%p1655_p1)  ;;  %v1230_v62 = vld [vmem:[#allocation19 + $0x28] sm:$0xff] (!%p1655_p1) }
 0x699   : > { %1759 = vmatpush3.bf16.msra.mxu0 (!%p1655_p1), %v1758_v51  ;;  %v1767_v60 = vpack.c.bf16 (!%p1655_p1), %v1228_v59, %v1227_v57  ;;  %v1770_v63 = vpack.c.bf16 (!%p1655_p1), %v1230_v62, %v1229_v61  ;;  %v1657_v4 = vld [vmem:[#allocation13] ss:$0 sm:$0xff] (!%p1655_p1)  ;;  %v1658_v6 = vld [vmem:[#allocation14] ss:$0 sm:$0xff] (!%p1655_p1)  ;;  %v1231_v9 = vld [vmem:[#allocation19 + $0x30] sm:$0xff] (!%p1655_p1) }
 0x69a   : > { %v1110_v41 = vsel (!%p1655_p1), %vm766_vm1, %v1109_v40, 0.0  ;;  %1760 = vmatprep.subr.bf16.mxu0 (!%p1655_p1), %v2585_v50  ;;  %1765 = vmatpush3.bf16.msra.mxu1 (!%p1655_p1), %v1764_v58  ;;  %v1232_v10 = vld [vmem:[#allocation19 + $0x38] sm:$0xff] (!%p1655_p1)  ;;  %v1661_v17 = vld [vmem:[#allocation20] ss:$0 sm:$0xff] (!%p1655_p1)  ;;  %v1663_v32 = vld [vmem:[#allocation22] ss:$0 sm:$0xff] (!%p1655_p1) }
 0x69b   : > { %1111 = vadd.xlane.f32.xlu0 (!%p1655_p1), %v1110_v41  ;;  %1766 = vmatprep.subr.bf16.mxu1 (!%p1655_p1), %v2585_v50  ;;  %v1773_v11 = vpack.c.bf16 (!%p1655_p1), %v1232_v10, %v1231_v9  ;;  %v1659_v12 = vld [vmem:[#allocation17] ss:$0 sm:$0xff] (!%p1655_p1)  ;;  %v1664_v34 = vld [vmem:[#allocation23] ss:$0 sm:$0xff] (!%p1655_p1) }
 0x69d   : > { %1762 = vmatpush3.bf16.msra.mxu0 %v1761_v54 }
 0x69e   : > { %1768 = vmatpush3.bf16.msra.mxu1 %v1767_v60 }
 0x69f   : > { %1769 = vmatprep.subr.bf16.mxu1 %v2585_v50 }
 0x6a2   : > { %1771 = vmatpush3.bf16.msra.mxu1 %v1770_v63 }
 0x6a3   : > { %1772 = vmatprep.subr.bf16.mxu1 %v2585_v50 }
 0x6a6   : > { %1774 = vmatpush3.bf16.msra.mxu1 %v1773_v11 }
 0x728   : > { %v1112_v42 = vpop.xlane.xlu0 %1111 }
 0x729   : > { %v1114_v43 = vmul.f32 0.03125, %v1112_v42 }
 0x72b   : > { %v1115_v44 = vsub.f32 %v1109_v40, %v1114_v43 }
 0x72d   : > { %v1116_v45 = vmul.f32 %v1115_v44, %v1115_v44 }
 0x72f   : > { %v1117_v46 = vsel %vm766_vm1, %v1116_v45, 0.0 }
 0x730   : > { %1118 = vadd.xlane.f32.xlu0 %v1117_v46 }
 0x7bd   : > { %v1119_v0 = vpop.xlane.xlu0 %1118 }
 0x7be   : > { %v1120_v1 = vmul.f32 0.03125, %v1119_v0 }
 0x7c0   : > { %v1121_v2 = vadd.f32 1e-06, %v1120_v1 }
 0x7c2   : > { %2002 = vrsqrt.f32 %v1121_v2 }
 0x7cc   : > { %v2003_v3 = vpop.eup %2002 }
 0x7cd   : > { %v1123_v5 = vmul.f32 %v2003_v3, %v1115_v44 }
 0x7cf   : > { %v1131_v7 = vmul.f32 %v1657_v4, %v1123_v5 }
 0x7d1   : > { %v1139_v8 = vadd.f32 %v1658_v6, %v1131_v7 }
 0x7d3   : > { %1730 = vmatmul.mubr.msk.f32.vlgmr.msra.gmra.mrb[0].mxu0 %vm766_vm1, %v1139_v8 }
 0x8a6   : > { %v1220_v13 = vpop.f32.mrb[0].mxu0 }
 0x8a7   : > { %v1221_v14 = vadd.f32 %v1659_v12, %v1220_v13  ;;  %v1731_v15 = vpop.f32.mrb[1].mxu0 }
 0x8a9   : > { %v1224_v16 = vmax.f32 %v1221_v14, 0.0 }
 0x8ab   : > { %1749 = vmatmul.mubr.msk.f32.vlgmr.msra.gmra.mrb[0].mxu1 %vm1240_vm4, %v1224_v16 }
 0x97e   : > { %v1310_v18 = vpop.f32.mrb[0].mxu1 }
 0x97f   : > { %v1311_v19 = vadd.f32 %v1661_v17, %v1310_v18  ;;  %v1750_v20 = vpop.f32.mrb[1].mxu1 }
 0x981   : > { %v1314_v21 = vadd.f32 %v1311_v19, %v1139_v8 }
 0x983   : > { %v1315_v22 = vsel %vm766_vm1, %v1314_v21, 0.0 }
 0x984   : > { %1316 = vadd.xlane.f32.xlu1 %v1315_v22 }
 0xa11   : > { %v1317_v23 = vpop.xlane.xlu1 %1316 }
 0xa12   : > { %v1318_v24 = vmul.f32 0.03125, %v1317_v23 }
 0xa14   : > { %v1319_v25 = vsub.f32 %v1314_v21, %v1318_v24 }
 0xa16   : > { %v1320_v26 = vmul.f32 %v1319_v25, %v1319_v25 }
 0xa18   : > { %v1321_v27 = vsel %vm766_vm1, %v1320_v26, 0.0 }
 0xa19   : > { %1322 = vadd.xlane.f32.xlu1 %v1321_v27 }
 0xaa6   : > { %v1323_v28 = vpop.xlane.xlu1 %1322 }
 0xaa7   : > { %v1324_v29 = vmul.f32 0.03125, %v1323_v28 }
 0xaa9   : > { %v1325_v30 = vadd.f32 1e-06, %v1324_v29 }
 0xaab   : > { %2004 = vrsqrt.f32 %v1325_v30 }
 0xab5   : > { %v2005_v31 = vpop.eup %2004 }
 0xab6   : > { %v1327_v33 = vmul.f32 %v2005_v31, %v1319_v25 }
 0xab8   : > { %v1335_v35 = vmul.f32 %v1663_v32, %v1327_v33 }
 0xaba   : > { %v1343_v36 = vadd.f32 %v1664_v34, %v1335_v35 }
 0xabc   : > { %1344 = vst.msk [vmem:[%s3265_s1] sm:$0xff] %vm766_vm1, %v1343_v36 }
 0xabd PF: > { %s3508_s9 = sld [smem:[#allocation41_spill]]  ;;  %s3509_s19 = sld [smem:[#allocation46_spill]] }
 0xabe   : > { %s3510_s5 = sld [smem:[#allocation68_spill]]  ;;  %s1359_s27 = sshll.u32 %s3265_s1, 4  ;;  %s1360_s27 = int_to_ptr.vmem [resolvable:$true] %s1359_s27 }
 0xabf   : > { %s1346_s26 = scalar_lea.sflag [#allocation4], %s3190_s7  ;;  %s2408_s16 = scalar_lea.vmem %s1360_s27, 128 }
 0xac0   : > { %p2409_p8 = scmp.ne.s32.totalorder %s1360_s27, %s2408_s16  ;;  %s2588_s4 = smov [#allocation25]  }
 0xac1   : > { %s2412_s15 = sshll.u32 %s2588_s4, 4  ;;  %s2413_s15 = int_to_ptr.vmem [resolvable:$false] %s2412_s15 }
 0xac2   : > { %s2414_s11 = scalar_lea.vmem %s2413_s15, 256  ;;  %p2415_p5 = scmp.lt.s32.totalorder %s1360_s27, %s2413_s15 }
 0xac3   : > { %s1666_s10 = sshll.u32 %s3508_s9, 7  ;;  %p3511_p13 = scmp.ne.s32.totalorder %s3509_s19, 0 }
 0xac4   : > { %s3288_s13 = scalar_lea.hbm %s3510_s5, %s1666_s10  ;;  %p2416_p10 = scmp.lt.s32.totalorder %s2414_s11, %s2408_s16 }
 0xac5   : > { %p2410_p9 = pnand %p2409_p8, %p3511_p13 }
 0xac6   : > { %p2417_p11 = por %p2416_p10, %p2415_p5 }
 0xac7   : > { %p2411_p2 = pneg %p2410_p9 }
 0xac9   : > { %p2418_p7 = pnand %p2417_p11, %p2411_p2 }
 0xacb   : > { %2421 = shalt.err (!%p2418_p7)
}
 0xacc   : > { %s2422_s7 = scalar_lea.hbm %s3288_s13, 128  ;;  %s2426_s24 = scalar_lea.hbm %s3510_s5, 256 }
 0xacd   : > { %p2423_p12 = scmp.ne.s32.totalorder %s3288_s13, %s2422_s7  ;;  %p2427_p6 = scmp.lt.u32.totalorder %s3288_s13, %s3510_s5 }
 0xace   : > { %p2428_p3 = scmp.lt.u32.totalorder %s2426_s24, %s2422_s7  ;;  %p2430_p8 = scmp.lt.u32.totalorder %s2422_s7, %s3288_s13 }
 0xacf   : > { %p2424_p0 = pnand %p2423_p12, %p3511_p13 }
 0xad0   : > { %p2429_p1 = por %p2428_p3, %p2427_p6 }
 0xad1   : > { %p2425_p4 = pneg %p2424_p0 }
 0xad2   : > { %p2431_p9 = por %p2430_p8, %p2429_p1 }
 0xad4   : > { %p2432_p2 = pnand %p2431_p9, %p2425_p4 }
 0xad6   : > { %2435 = shalt.err (!%p2432_p2)
}
 0xad7   : > { %1821 = dma.vmem_to_hbm [thread:$0]  (%p3511_p13), %s1360_s27, 128, %s3288_s13, %s1346_s26  }
 0xad8 PF: > { %s3512_s30 = sld [smem:[#allocation42_spill]]  ;;  %s3513_s8 = sld [smem:[#allocation38_spill]] }
 0xad9   : > { %s3514_s9 = sld [smem:[#allocation47_spill]] }
 0xade   : > { %p1890_p5 = scmp.ge.s32.totalorder %s3512_s30, 2  ;;  %s1371_s10 = sand.u32 1, %s3513_s8  }
 0xadf   : > { %p3515_p10 = scmp.ne.s32.totalorder %s3514_s9, 0  ;;  %s1372_s23 = scalar_lea.sflag [#allocation4], %s1371_s10 }
 0xae1   : > { %p1868_p11 = pnand %p1890_p5, %p3515_p10 }
 0xae3   : > { %2517 = dma.done.wait (!%p1868_p11), %s1372_s23, 128  }
 0xae4   : > { %2519 = vsyncadd (!%p1868_p11), %s1372_s23, 4294967168  ;;  %s41_s23 = sadd.s32 1, %s3512_s30   ;;  %s3516_s29 = sld [smem:[#allocation36_spill]] }
 0xae5   : > { %p38_p7 = scmp.ge.s32.totalorder %s41_s23, 10   ;;  %s3517_s30 = sld [smem:[#allocation37_spill]] }
 0xae6   : > { %s3518_s15 = sld [smem:[#allocation51_spill]]  ;;  %s3519_s16 = sld [smem:[#allocation39_spill]] }
 0xae7   : > { %s3520_s19 = sld [smem:[#allocation52_spill]]  ;;  %s3521_s13 = sld [smem:[#allocation48_spill]] }
 0xae8   : > { %s3522_s27 = sld [smem:[#allocation50_spill]]  ;;  %s3523_s17 = smov %s2542_s18 }
 0xae9   : > { %s3526_s20 = smov %s2558_s22  ;;  %40 = sbr.rel (!%p38_p7) target bundleno = 34 (0x22), region = 217 }
 0xaed   : > { %s3524_s18 = smov %s3520_s19  ;;  %s3525_s19 = smov %s2554_s21 }
 0xaee   : > { %s3527_s21 = smov %s3521_s13  ;;  %s3528_s22 = smov %s3522_s27 }
 0xaf0   :  { %1377 = vsyncpa [#allocation3], 1 }
 0xaf1   :  { %1379 = vsyncpa [#allocation3 + $0x1], 1 }
 0xaf2   :  { %1380 = vsyncpa [#allocation6], 1 }
 0xaf3   :  { %1382 = vsyncpa [#allocation6 + $0x1], 1 }
 0xaf4   :  { %1383 = vsyncpa [#allocation9], 1 }
 0xaf5   :  { %1385 = vsyncpa [#allocation9 + $0x1], 1 }
 0xaf6   :  { %1386 = vsyncpa [#allocation12], 1 }
 0xaf7   :  { %1387 = vsyncpa [#allocation15], 1 }
 0xaf8   :  { %1388 = vsyncpa [#allocation18], 1 }
 0xaf9   :  { %1389 = vsyncpa [#allocation21], 1 }
 0xafa   :  { %1390 = vsyncpa [#allocation24], 1 }
 0xafb   :  { %1391 = vsyncpa [#allocation4], 1 }
 0xafc   :  { %1393 = vsyncpa [#allocation4 + $0x1], 1 }

</bundles_post_ra>
